<compile_context>
chip_gen: v6e
topology: v6e:2x2x1
jax: 0.10.0
libtpu: 0.0.40
codegen_flags: <defaults>
</compile_context>

<pallas_src>
import functools
import math

import jax
import jax.numpy as jnp
from jax.experimental import pallas as pl
from jax.experimental.pallas import tpu as pltpu


def _round_up(x, m):
    return (x + m - 1) // m * m


# ---------------------------------------------------------------------------
# Fused block-diagonal weights (built once in the wrapper, outside the kernel)
# ---------------------------------------------------------------------------
def _build_fused_weights(params, token_num, d_state, e_pad, mm_dtype):
    L, S, Ep = token_num, d_state, e_pad
    w_in = params["w_in"].astype(jnp.float32)              # (Dm, 2E)
    Dm, two_e = w_in.shape
    E = two_e // 2
    R = params["w_dtp"].shape[0]

    def pad_cols(w):
        return jnp.pad(w, ((0, 0), (0, Ep - w.shape[1])))

    def pad_rows(w):
        return jnp.pad(w, ((0, Ep - w.shape[0]), (0, 0)))

    eye = jnp.eye(L, dtype=jnp.float32)
    blk = lambda w: jnp.kron(eye, w.T)                     # (L*out, L*in)

    # in_proj: (C, n) -> rows [x tokens (L*Ep) | z tokens (L*Ep)]
    w_in_t = jnp.concatenate(
        [blk(pad_cols(w_in[:, :E])), blk(pad_cols(w_in[:, E:]))], axis=0)

    # x_proj with dt_proj folded in: rows [dt (L*Ep) | B (L*S) | C (L*S)]
    w_xp = params["w_xp"].astype(jnp.float32)              # (E, R + 2S)
    w_dtp = params["w_dtp"].astype(jnp.float32)            # (R, E)
    w_dt_full = pad_rows(pad_cols(w_xp[:, :R] @ w_dtp))    # (Ep, Ep)
    w_b = pad_rows(w_xp[:, R:R + S])                       # (Ep, S)
    w_c = pad_rows(w_xp[:, R + S:R + 2 * S])               # (Ep, S)
    w_xp_t = jnp.concatenate([blk(w_dt_full), blk(w_b), blk(w_c)], axis=0)

    # out_proj: (L*Ep, n) -> (C, n)
    w_out_t = blk(pad_rows(params["w_out"].astype(jnp.float32)))

    return (w_in_t.astype(mm_dtype), w_xp_t.astype(mm_dtype),
            w_out_t.astype(mm_dtype))


# ---------------------------------------------------------------------------
# Kernel 1: Mamba (in_proj -> causal conv -> selective scan -> out_proj)
#           + fused per-tile GroupNorm partial statistics
# ---------------------------------------------------------------------------
def _mamba_kernel(x_ref, w_in_ref, w_conv_ref, b_conv_ref, w_xp_ref, b_dt_ref,
                  a_t_ref, d_ref, w_out_ref, pre_ref, stats_ref, *,
                  token_num, d_conv, d_state, e_pad, hw, matmul_dtype):
    L, S, E = token_num, d_state, e_pad
    mmd = matmul_dtype
    x = x_ref[0]                                           # (C, n), n lane-dense
    C, n = x.shape
    LE = L * E

    # ---- in_proj: one block-diagonal MXU matmul ---------------------------
    xz = jnp.dot(w_in_ref[...], x.astype(mmd),
                 preferred_element_type=jnp.float32)       # (2*L*E, n)

    w_conv = w_conv_ref[...]                               # (E, d_conv)
    b_conv = b_conv_ref[...]                               # (E, 1)

    # ---- causal depthwise conv + SiLU (shifted static slices, no pad buf) --
    x_act = []
    for t in range(L):                                     # L = token_num = 8
        acc = b_conv
        for k in range(d_conv):
            src = t + k - (d_conv - 1)
            if src >= 0:
                acc = acc + xz[src * E:(src + 1) * E] * w_conv[:, k:k + 1]
        x_act.append(jax.nn.silu(acc))                     # (E, n)
    x_act_all = jnp.concatenate(x_act, axis=0)             # (L*E, n)

    # ---- fused x_proj (dt_proj folded): rows = [dt | B | C] ----------------
    xp = jnp.dot(w_xp_ref[...], x_act_all.astype(mmd),
                 preferred_element_type=jnp.float32)       # (L*E + 2*L*S, n)

    a_b = a_t_ref[...][:, :, None]                         # (S, E, 1), hoisted
    b_dt = b_dt_ref[...]                                   # (E, 1)
    d_par = d_ref[...]                                     # (E, 1)

    # ---- selective scan: dA/dBx computed per step, S on the leading axis ---
    h = jnp.zeros((S, E, n), jnp.float32)
    y_rows = []
    for t in range(L):
        xa = x_act[t]                                              # (E, n)
        dt = jax.nn.softplus(xp[t * E:(t + 1) * E] + b_dt)         # (E, n)
        bm = xp[LE + t * S:LE + (t + 1) * S]                       # (S, n)
        cm = xp[LE + L * S + t * S:LE + L * S + (t + 1) * S]       # (S, n)
        dA = jnp.exp(dt[None, :, :] * a_b)                         # (S, E, n)
        h = dA * h + (dt * xa)[None, :, :] * bm[:, None, :]
        y_t = jnp.sum(h * cm[:, None, :], axis=0)                  # leading-axis adds
        y_t = (y_t + d_par * xa) * jax.nn.silu(xz[LE + t * E:LE + (t + 1) * E])
        y_rows.append(y_t)
    y_all = jnp.concatenate(y_rows, axis=0)                        # (L*E, n)

    # ---- out_proj (block-diagonal) ------------------------------------------
    pre = jnp.dot(w_out_ref[...], y_all.astype(mmd),
                  preferred_element_type=jnp.float32)              # (C, n)

    # ---- fused GroupNorm partial statistics (padded pixels masked) ----------
    pix = pl.program_id(1) * n + jax.lax.broadcasted_iota(jnp.int32, (1, n), 1)
    valid = (pix < hw).astype(jnp.float32)                         # (1, n)
    masked = pre * valid
    s1 = jnp.sum(masked, axis=1, keepdims=True)                    # (C, 1)
    s2 = jnp.sum(masked * pre, axis=1, keepdims=True)              # (C, 1)
    stats_ref[0, 0] = jnp.concatenate([s1, s2], axis=1)            # (C, 2)

    pre_ref[0] = pre.astype(pre_ref.dtype)                         # bf16 store


# ---------------------------------------------------------------------------
# Kernel 2: GroupNorm apply + SiLU (+ residual), lane-dense elementwise
# ---------------------------------------------------------------------------
def _groupnorm_silu_kernel(*refs, use_residual):
    if use_residual:
        pre_ref, scale_ref, shift_ref, x_ref, o_ref = refs
    else:
        pre_ref, scale_ref, shift_ref, o_ref = refs
        x_ref = None
    v = pre_ref[0].astype(jnp.float32) * scale_ref[0] + shift_ref[0]
    v = jax.nn.silu(v)
    if use_residual:
        v = v + x_ref[0]
    o_ref[0] = v


# ---------------------------------------------------------------------------
# Wrapper
# ---------------------------------------------------------------------------
def spe_mamba_forward(x_nchw, params, *, token_num=8, group_num=4, d_state=16,
                      d_conv=4, use_residual=True, pixel_tile=512,
                      pixel_tile_elementwise=2048,
                      matmul_dtype=jnp.bfloat16, pre_dtype=jnp.bfloat16,
                      vmem_limit_mb=48):
    B, C_in, H, W = x_nchw.shape
    Dm, two_e = params["w_in"].shape
    E = two_e // 2
    Ep = _round_up(E, 8)                         # pad d_inner to sublane multiple
    L, S, G = token_num, d_state, group_num
    C = L * Dm                                   # channel_num
    HW = H * W

    if use_residual:
        # Same constraint as the PyTorch module (residual add needs matching C).
        assert C_in == C, "residual requires channels % token_num == 0"

    # ---- pixel tiling: lane-dense tiles, pixel axis padded ------------------
    tile1 = _round_up(min(pixel_tile, _round_up(HW, 128)), 128)
    n_pad = _round_up(HW, tile1)
    T1 = n_pad // tile1

    x = x_nchw.astype(jnp.float32).reshape(B, C_in, HW)    # NCHW -> (B, C, HW)
    if C_in < C:                                           # padding_feature
        x = jnp.pad(x, ((0, 0), (0, C - C_in), (0, 0)))
    if n_pad > HW:
        x = jnp.pad(x, ((0, 0), (0, 0), (0, n_pad - HW)))

    # ---- fused weights / per-channel params (E zero-padded to Ep) ----------
    w_in_t, w_xp_t, w_out_t = _build_fused_weights(params, L, S, Ep, matmul_dtype)

    def pad_col(v):                              # (1, E) -> (Ep, 1) f32
        v = v.reshape(-1).astype(jnp.float32)
        return jnp.pad(v, (0, Ep - E)).reshape(Ep, 1)

    b_conv_col = pad_col(params["b_conv"])
    b_dt_col = pad_col(params["b_dt"])
    d_col = pad_col(params["d"])
    w_conv_t = jnp.pad(params["w_conv"].astype(jnp.float32).T,
                       ((0, Ep - E), (0, 0)))              # (Ep, d_conv)
    a_log_p = jnp.pad(params["a_log"].astype(jnp.float32),
                      ((0, Ep - E), (0, 0)))               # (Ep, S)
    a_t = (-jnp.exp(a_log_p)).T                            # (S, Ep), hoisted exp

    weight_args = [w_in_t, w_conv_t, b_conv_col, w_xp_t, b_dt_col, a_t, d_col,
                   w_out_t]
    w_specs = [pl.BlockSpec(w.shape, lambda b, t: (0, 0)) for w in weight_args]

    # ---- advisory cost estimate for kernel 1 --------------------------------
    LEp = L * Ep
    n_tot = B * n_pad
    mm_flops = 2 * n_tot * (2 * LEp * C + (LEp + 2 * L * S) * LEp + C * LEp)
    scan_flops = n_tot * L * (8 * Ep * S + 16 * Ep)
    w_bytes = sum(int(w.size) * w.dtype.itemsize for w in weight_args)
    cost1 = pl.CostEstimate(
        flops=int(mm_flops + scan_flops),
        transcendentals=int(n_tot * L * (Ep * S + 5 * Ep)),
        bytes_accessed=int(4 * B * C * n_pad
                           + jnp.dtype(pre_dtype).itemsize * B * C * n_pad
                           + 4 * B * T1 * C * 2 + w_bytes))

    kern1 = functools.partial(_mamba_kernel, token_num=L, d_conv=d_conv,
                              d_state=S, e_pad=Ep, hw=HW,
                              matmul_dtype=matmul_dtype)

    pre, stats = pl.pallas_call(
        kern1,
        out_shape=(jax.ShapeDtypeStruct((B, C, n_pad), pre_dtype),
                   jax.ShapeDtypeStruct((B, T1, C, 2), jnp.float32)),
        grid=(B, T1),
        in_specs=[pl.BlockSpec((1, C, tile1), lambda b, t: (b, 0, t))] + w_specs,
        out_specs=(pl.BlockSpec((1, C, tile1), lambda b, t: (b, 0, t)),
                   pl.BlockSpec((1, 1, C, 2), lambda b, t: (b, t, 0, 0))),
        compiler_params=pltpu.CompilerParams(
            dimension_semantics=("parallel", "parallel"),
            vmem_limit_bytes=vmem_limit_mb * 1024 * 1024),   # v7x-safe headroom
        cost_estimate=cost1,
    )(x, *weight_args)

    # ---- tiny cross-tile GroupNorm combine (no re-read of `pre` from HBM) ---
    # TODO(synk): the per-(B, C) partial-sum combine is done in plain jnp; it
    # touches only B*T1*C*2 floats.
    Cg = C // G
    ch_stats = stats.sum(axis=1)                                     # (B, C, 2)
    g_stats = ch_stats.reshape(B, G, Cg, 2).sum(axis=2)              # (B, G, 2)
    count = float(Cg * HW)
    mean = g_stats[..., 0] / count                                   # (B, G)
    var = jnp.maximum(g_stats[..., 1] / count - mean * mean, 0.0)
    inv = jax.lax.rsqrt(var + 1e-5)
    gamma = params["gamma"].reshape(G, Cg).astype(jnp.float32)
    beta = params["beta"].reshape(G, Cg).astype(jnp.float32)
    scale = (gamma[None] * inv[:, :, None]).reshape(B, C, 1)
    shift = (beta[None] - mean[:, :, None] * gamma[None] * inv[:, :, None]
             ).reshape(B, C, 1)

    # ---- normalize + affine + SiLU (+ residual), decoupled (bigger) tile ----
    g2 = 1
    for g in range(T1, 0, -1):
        if T1 % g == 0 and tile1 * g <= max(tile1, pixel_tile_elementwise):
            g2 = g
            break
    tile2 = tile1 * g2
    T2 = T1 // g2

    in2 = [pre, scale, shift] + ([x] if use_residual else [])
    in_specs2 = [pl.BlockSpec((1, C, tile2), lambda b, t: (b, 0, t)),
                 pl.BlockSpec((1, C, 1), lambda b, t: (b, 0, 0)),
                 pl.BlockSpec((1, C, 1), lambda b, t: (b, 0, 0))]
    if use_residual:
        in_specs2.append(pl.BlockSpec((1, C, tile2), lambda b, t: (b, 0, t)))

    out = pl.pallas_call(
        functools.partial(_groupnorm_silu_kernel, use_residual=use_residual),
        out_shape=jax.ShapeDtypeStruct((B, C, n_pad), jnp.float32),
        grid=(B, T2),
        in_specs=in_specs2,
        out_specs=pl.BlockSpec((1, C, tile2), lambda b, t: (b, 0, t)),
        compiler_params=pltpu.CompilerParams(
            dimension_semantics=("parallel", "parallel")),
    )(*in2)

    return out[:, :, :HW].reshape(B, C, H, W)


# ---------------------------------------------------------------------------
# Independent pure-JAX (f32) reference following the PyTorch module
# ---------------------------------------------------------------------------
def spe_mamba_reference(x_nchw, params, *, token_num=8, group_num=4,
                        d_state=16, d_conv=4, use_residual=True):
    B, C_in, H, W = x_nchw.shape
    Dm, two_e = params["w_in"].shape
    E = two_e // 2
    L, S, G = token_num, d_state, group_num
    R = params["w_dtp"].shape[0]
    C = L * Dm

    x = x_nchw.astype(jnp.float32)
    if C_in < C:
        x = jnp.pad(x, ((0, 0), (0, C - C_in), (0, 0), (0, 0)))
    xf = jnp.transpose(x, (0, 2, 3, 1)).reshape(B * H * W, L, Dm)

    xz = jnp.einsum("nld,de->nle", xf, params["w_in"].astype(jnp.float32))
    xm, z = xz[..., :E], xz[..., E:]

    w_conv = params["w_conv"].astype(jnp.float32)          # (d_conv, E)
    xpad = jnp.pad(xm, ((0, 0), (d_conv - 1, 0), (0, 0)))
    conv = params["b_conv"].astype(jnp.float32)[0][None, None, :]
    for k in range(d_conv):
        conv = conv + xpad[:, k:k + L, :] * w_conv[k][None, None, :]
    x_act = jax.nn.silu(conv)

    xp = jnp.einsum("nle,ef->nlf", x_act, params["w_xp"].astype(jnp.float32))
    dt_raw, bm, cm = xp[..., :R], xp[..., R:R + S], xp[..., R + S:R + 2 * S]
    dt = jax.nn.softplus(
        jnp.einsum("nlr,re->nle", dt_raw, params["w_dtp"].astype(jnp.float32))
        + params["b_dt"].astype(jnp.float32)[0][None, None, :])
    a_mat = -jnp.exp(params["a_log"].astype(jnp.float32))  # (E, S)

    h = jnp.zeros((B * H * W, E, S), jnp.float32)
    ys = []
    for t in range(L):
        dA = jnp.exp(dt[:, t, :, None] * a_mat[None])
        h = dA * h + dt[:, t, :, None] * bm[:, t, None, :] * x_act[:, t, :, None]
        ys.append(jnp.einsum("nes,ns->ne", h, cm[:, t]))
    y = jnp.stack(ys, axis=1) + params["d"].astype(jnp.float32)[0][None, None, :] * x_act
    y = y * jax.nn.silu(z)

    out = jnp.einsum("nle,ed->nld", y, params["w_out"].astype(jnp.float32))
    out = jnp.transpose(out.reshape(B, H, W, C), (0, 3, 1, 2))      # (B, C, H, W)

    Cg = C // G
    og = out.reshape(B, G, Cg * H * W)
    mean = og.mean(axis=2, keepdims=True)
    var = og.var(axis=2, keepdims=True)
    on = ((og - mean) / jnp.sqrt(var + 1e-5)).reshape(B, C, H, W)
    on = (on * params["gamma"].reshape(C)[None, :, None, None]
          + params["beta"].reshape(C)[None, :, None, None])
    proj = jax.nn.silu(on)
    return x_nchw + proj if use_residual else proj


# ---------------------------------------------------------------------------
# Deterministic synthetic parameters (shapes from the module's __init__)
# ---------------------------------------------------------------------------
def init_params(key, channels, token_num=8, group_num=4, d_state=16,
                d_conv=4, expand=2):
    Dm = math.ceil(channels / token_num)         # group_channel_num = d_model
    channel_num = token_num * Dm
    E = expand * Dm                              # d_inner
    R = math.ceil(Dm / 16)                       # dt_rank (Mamba default)
    ks = jax.random.split(key, 5)

    def nrm(k, shape, scale):
        return scale * jax.random.normal(k, shape, jnp.float32)

    return {
        "w_in":   nrm(ks[0], (Dm, 2 * E), 1.0 / math.sqrt(Dm)),
        "w_conv": nrm(ks[1], (d_conv, E), 0.3),
        "b_conv": jnp.zeros((1, E), jnp.float32),
        "w_xp":   nrm(ks[2], (E, R + 2 * d_state), 1.0 / math.sqrt(E)),
        "w_dtp":  nrm(ks[3], (R, E), 1.0 / math.sqrt(max(R, 1))),
        "b_dt":   jnp.full((1, E), -2.0, jnp.float32),
        "a_log":  jnp.log(jnp.broadcast_to(
            jnp.arange(1, d_state + 1, dtype=jnp.float32), (E, d_state))),
        "d":      jnp.ones((1, E), jnp.float32),
        "w_out":  nrm(ks[4], (E, Dm), 1.0 / math.sqrt(E)),
        "gamma":  jnp.ones((1, channel_num), jnp.float32),
        "beta":   jnp.zeros((1, channel_num), jnp.float32),
    }


if __name__ == "__main__":
    # channels divisible by token_num -> residual path matches PyTorch exactly.
    B, C, H, W = 2, 32, 8, 8          # token_num=8 -> group_channel_num=4
    key = jax.random.PRNGKey(0)
    kx, kp = jax.random.split(key)

    x = jax.random.normal(kx, (B, C, H, W), jnp.float32)
    params = init_params(kp, channels=C)

    fwd = jax.jit(spe_mamba_forward)
    out = jax.block_until_ready(fwd(x, params))   # bf16 MXU inputs + bf16 `pre`
    ref = spe_mamba_reference(x, params)          # independent f32 reference

    assert out.shape == x.shape
    assert bool(jnp.all(jnp.isfinite(out)))
    max_err = float(jnp.max(jnp.abs(out - ref)))
    mean_err = float(jnp.mean(jnp.abs(out - ref)))
    # bf16 matmul inputs and bf16 intermediate storage vs the f32 reference ->
    # small numeric drift expected; structural bugs would produce O(1) errors
    # and fail these bounds.
    assert max_err < 1.5e-1 and mean_err < 3e-2, (
        f"mismatch vs reference: max={max_err}, mean={mean_err}")
    print("KERNEL_OK")
</pallas_src>

<mosaic_0001>
module attributes {stable_mosaic.version = 11 : i64} {
  func.func @_mamba_kernel(%arg0: i32, %arg1: i32, %arg2: memref<1x32x128xf32, #tpu.memory_space<vmem>>, %arg3: memref<128x32xbf16, #tpu.memory_space<vmem>>, %arg4: memref<8x4xf32, #tpu.memory_space<vmem>>, %arg5: memref<8x1xf32, #tpu.memory_space<vmem>>, %arg6: memref<320x64xbf16, #tpu.memory_space<vmem>>, %arg7: memref<8x1xf32, #tpu.memory_space<vmem>>, %arg8: memref<16x8xf32, #tpu.memory_space<vmem>>, %arg9: memref<8x1xf32, #tpu.memory_space<vmem>>, %arg10: memref<32x64xbf16, #tpu.memory_space<vmem>>, %arg11: memref<1x32x128xbf16, #tpu.memory_space<vmem>>, %arg12: memref<1x1x32x2xf32, #tpu.memory_space<vmem>>) attributes {dimension_semantics = [#tpu.dimension_semantics<parallel>, #tpu.dimension_semantics<parallel>], iteration_bounds = array<i64: 2, 1>, scalar_prefetch = 0 : i64, scratch_operands = 0 : i64, tpu.core_type = #tpu.core_type<tc>, window_params = [{transform_indices = @transform_0, window_bounds = array<i64: 1, 32, 128>}, {pipeline_mode = #tpu.pipeline_mode<synchronous>, transform_indices = @transform_1, window_bounds = array<i64: 128, 32>}, {pipeline_mode = #tpu.pipeline_mode<synchronous>, transform_indices = @transform_2, window_bounds = array<i64: 8, 4>}, {pipeline_mode = #tpu.pipeline_mode<synchronous>, transform_indices = @transform_3, window_bounds = array<i64: 8, 1>}, {pipeline_mode = #tpu.pipeline_mode<synchronous>, transform_indices = @transform_4, window_bounds = array<i64: 320, 64>}, {pipeline_mode = #tpu.pipeline_mode<synchronous>, transform_indices = @transform_5, window_bounds = array<i64: 8, 1>}, {pipeline_mode = #tpu.pipeline_mode<synchronous>, transform_indices = @transform_6, window_bounds = array<i64: 16, 8>}, {pipeline_mode = #tpu.pipeline_mode<synchronous>, transform_indices = @transform_7, window_bounds = array<i64: 8, 1>}, {pipeline_mode = #tpu.pipeline_mode<synchronous>, transform_indices = @transform_8, window_bounds = array<i64: 32, 64>}, {transform_indices = @transform_9, window_bounds = array<i64: 1, 32, 128>}, {transform_indices = @transform_10, window_bounds = array<i64: 1, 1, 32, 2>}]} {
    %c0 = arith.constant 0 : index
    %c0_0 = arith.constant 0 : index
    %c0_1 = arith.constant 0 : index
    %0 = vector.load %arg2[%c0, %c0_0, %c0_1] : memref<1x32x128xf32, #tpu.memory_space<vmem>>, vector<1x32x128xf32>
    %1 = vector.shape_cast %0 : vector<1x32x128xf32> to vector<32x128xf32>
    %c0_2 = arith.constant 0 : index
    %c0_3 = arith.constant 0 : index
    %2 = vector.load %arg3[%c0_2, %c0_3] : memref<128x32xbf16, #tpu.memory_space<vmem>>, vector<128x32xbf16>
    %3 = arith.truncf %1 : vector<32x128xf32> to vector<32x128xbf16>
    %cst = arith.constant dense<0.000000e+00> : vector<128x128xf32>
    %4 = tpu.matmul %2, %3, %cst {dimension_numbers = #tpu.dot_dimension_numbers<[1], [0], [0], [1], [0, 0, 1, 1], [], []>} : vector<128x32xbf16>, vector<32x128xbf16>, vector<128x128xf32> -> vector<128x128xf32>
    %c0_4 = arith.constant 0 : index
    %c0_5 = arith.constant 0 : index
    %5 = vector.load %arg4[%c0_4, %c0_5] : memref<8x4xf32, #tpu.memory_space<vmem>>, vector<8x4xf32>
    %c0_6 = arith.constant 0 : index
    %c0_7 = arith.constant 0 : index
    %6 = vector.load %arg5[%c0_6, %c0_7] : memref<8x1xf32, #tpu.memory_space<vmem>>, vector<8x1xf32>
    %7 = vector.extract_strided_slice %4 {offsets = [0, 0], sizes = [8, 128], strides = [1, 1]} : vector<128x128xf32> to vector<8x128xf32>
    %8 = vector.extract_strided_slice %5 {offsets = [0, 3], sizes = [8, 1], strides = [1, 1]} : vector<8x4xf32> to vector<8x1xf32>
    %9 = vector.broadcast %8 : vector<8x1xf32> to vector<8x128xf32>
    %10 = arith.mulf %7, %9 : vector<8x128xf32>
    %11 = vector.broadcast %6 : vector<8x1xf32> to vector<8x128xf32>
    %12 = arith.addf %11, %10 : vector<8x128xf32>
    %13 = arith.negf %12 : vector<8x128xf32>
    %14 = math.exp %13 : vector<8x128xf32>
    %cst_8 = arith.constant 1.000000e+00 : f32
    %15 = vector.broadcast %cst_8 : f32 to vector<8x128xf32>
    %16 = arith.addf %15, %14 : vector<8x128xf32>
    %17 = arith.divf %15, %16 : vector<8x128xf32>
    %18 = arith.mulf %12, %17 : vector<8x128xf32>
    %19 = vector.extract_strided_slice %4 {offsets = [0, 0], sizes = [8, 128], strides = [1, 1]} : vector<128x128xf32> to vector<8x128xf32>
    %20 = vector.extract_strided_slice %5 {offsets = [0, 2], sizes = [8, 1], strides = [1, 1]} : vector<8x4xf32> to vector<8x1xf32>
    %21 = vector.broadcast %20 : vector<8x1xf32> to vector<8x128xf32>
    %22 = arith.mulf %19, %21 : vector<8x128xf32>
    %23 = vector.broadcast %6 : vector<8x1xf32> to vector<8x128xf32>
    %24 = arith.addf %23, %22 : vector<8x128xf32>
    %25 = vector.extract_strided_slice %4 {offsets = [8, 0], sizes = [8, 128], strides = [1, 1]} : vector<128x128xf32> to vector<8x128xf32>
    %26 = vector.extract_strided_slice %5 {offsets = [0, 3], sizes = [8, 1], strides = [1, 1]} : vector<8x4xf32> to vector<8x1xf32>
    %27 = vector.broadcast %26 : vector<8x1xf32> to vector<8x128xf32>
    %28 = arith.mulf %25, %27 : vector<8x128xf32>
    %29 = arith.addf %24, %28 : vector<8x128xf32>
    %30 = arith.negf %29 : vector<8x128xf32>
    %31 = math.exp %30 : vector<8x128xf32>
    %cst_9 = arith.constant 1.000000e+00 : f32
    %32 = vector.broadcast %cst_9 : f32 to vector<8x128xf32>
    %33 = arith.addf %32, %31 : vector<8x128xf32>
    %34 = arith.divf %32, %33 : vector<8x128xf32>
    %35 = arith.mulf %29, %34 : vector<8x128xf32>
    %36 = vector.extract_strided_slice %4 {offsets = [0, 0], sizes = [8, 128], strides = [1, 1]} : vector<128x128xf32> to vector<8x128xf32>
    %37 = vector.extract_strided_slice %5 {offsets = [0, 1], sizes = [8, 1], strides = [1, 1]} : vector<8x4xf32> to vector<8x1xf32>
    %38 = vector.broadcast %37 : vector<8x1xf32> to vector<8x128xf32>
    %39 = arith.mulf %36, %38 : vector<8x128xf32>
    %40 = vector.broadcast %6 : vector<8x1xf32> to vector<8x128xf32>
    %41 = arith.addf %40, %39 : vector<8x128xf32>
    %42 = vector.extract_strided_slice %4 {offsets = [8, 0], sizes = [8, 128], strides = [1, 1]} : vector<128x128xf32> to vector<8x128xf32>
    %43 = vector.extract_strided_slice %5 {offsets = [0, 2], sizes = [8, 1], strides = [1, 1]} : vector<8x4xf32> to vector<8x1xf32>
    %44 = vector.broadcast %43 : vector<8x1xf32> to vector<8x128xf32>
    %45 = arith.mulf %42, %44 : vector<8x128xf32>
    %46 = arith.addf %41, %45 : vector<8x128xf32>
    %47 = vector.extract_strided_slice %4 {offsets = [16, 0], sizes = [8, 128], strides = [1, 1]} : vector<128x128xf32> to vector<8x128xf32>
    %48 = vector.extract_strided_slice %5 {offsets = [0, 3], sizes = [8, 1], strides = [1, 1]} : vector<8x4xf32> to vector<8x1xf32>
    %49 = vector.broadcast %48 : vector<8x1xf32> to vector<8x128xf32>
    %50 = arith.mulf %47, %49 : vector<8x128xf32>
    %51 = arith.addf %46, %50 : vector<8x128xf32>
    %52 = arith.negf %51 : vector<8x128xf32>
    %53 = math.exp %52 : vector<8x128xf32>
    %cst_10 = arith.constant 1.000000e+00 : f32
    %54 = vector.broadcast %cst_10 : f32 to vector<8x128xf32>
    %55 = arith.addf %54, %53 : vector<8x128xf32>
    %56 = arith.divf %54, %55 : vector<8x128xf32>
    %57 = arith.mulf %51, %56 : vector<8x128xf32>
    %58 = vector.extract_strided_slice %4 {offsets = [0, 0], sizes = [8, 128], strides = [1, 1]} : vector<128x128xf32> to vector<8x128xf32>
    %59 = vector.extract_strided_slice %5 {offsets = [0, 0], sizes = [8, 1], strides = [1, 1]} : vector<8x4xf32> to vector<8x1xf32>
    %60 = vector.broadcast %59 : vector<8x1xf32> to vector<8x128xf32>
    %61 = arith.mulf %58, %60 : vector<8x128xf32>
    %62 = vector.broadcast %6 : vector<8x1xf32> to vector<8x128xf32>
    %63 = arith.addf %62, %61 : vector<8x128xf32>
    %64 = vector.extract_strided_slice %4 {offsets = [8, 0], sizes = [8, 128], strides = [1, 1]} : vector<128x128xf32> to vector<8x128xf32>
    %65 = vector.extract_strided_slice %5 {offsets = [0, 1], sizes = [8, 1], strides = [1, 1]} : vector<8x4xf32> to vector<8x1xf32>
    %66 = vector.broadcast %65 : vector<8x1xf32> to vector<8x128xf32>
    %67 = arith.mulf %64, %66 : vector<8x128xf32>
    %68 = arith.addf %63, %67 : vector<8x128xf32>
    %69 = vector.extract_strided_slice %4 {offsets = [16, 0], sizes = [8, 128], strides = [1, 1]} : vector<128x128xf32> to vector<8x128xf32>
    %70 = vector.extract_strided_slice %5 {offsets = [0, 2], sizes = [8, 1], strides = [1, 1]} : vector<8x4xf32> to vector<8x1xf32>
    %71 = vector.broadcast %70 : vector<8x1xf32> to vector<8x128xf32>
    %72 = arith.mulf %69, %71 : vector<8x128xf32>
    %73 = arith.addf %68, %72 : vector<8x128xf32>
    %74 = vector.extract_strided_slice %4 {offsets = [24, 0], sizes = [8, 128], strides = [1, 1]} : vector<128x128xf32> to vector<8x128xf32>
    %75 = vector.extract_strided_slice %5 {offsets = [0, 3], sizes = [8, 1], strides = [1, 1]} : vector<8x4xf32> to vector<8x1xf32>
    %76 = vector.broadcast %75 : vector<8x1xf32> to vector<8x128xf32>
    %77 = arith.mulf %74, %76 : vector<8x128xf32>
    %78 = arith.addf %73, %77 : vector<8x128xf32>
    %79 = arith.negf %78 : vector<8x128xf32>
    %80 = math.exp %79 : vector<8x128xf32>
    %cst_11 = arith.constant 1.000000e+00 : f32
    %81 = vector.broadcast %cst_11 : f32 to vector<8x128xf32>
    %82 = arith.addf %81, %80 : vector<8x128xf32>
    %83 = arith.divf %81, %82 : vector<8x128xf32>
    %84 = arith.mulf %78, %83 : vector<8x128xf32>
    %85 = vector.extract_strided_slice %4 {offsets = [8, 0], sizes = [8, 128], strides = [1, 1]} : vector<128x128xf32> to vector<8x128xf32>
    %86 = vector.extract_strided_slice %5 {offsets = [0, 0], sizes = [8, 1], strides = [1, 1]} : vector<8x4xf32> to vector<8x1xf32>
    %87 = vector.broadcast %86 : vector<8x1xf32> to vector<8x128xf32>
    %88 = arith.mulf %85, %87 : vector<8x128xf32>
    %89 = vector.broadcast %6 : vector<8x1xf32> to vector<8x128xf32>
    %90 = arith.addf %89, %88 : vector<8x128xf32>
    %91 = vector.extract_strided_slice %4 {offsets = [16, 0], sizes = [8, 128], strides = [1, 1]} : vector<128x128xf32> to vector<8x128xf32>
    %92 = vector.extract_strided_slice %5 {offsets = [0, 1], sizes = [8, 1], strides = [1, 1]} : vector<8x4xf32> to vector<8x1xf32>
    %93 = vector.broadcast %92 : vector<8x1xf32> to vector<8x128xf32>
    %94 = arith.mulf %91, %93 : vector<8x128xf32>
    %95 = arith.addf %90, %94 : vector<8x128xf32>
    %96 = vector.extract_strided_slice %4 {offsets = [24, 0], sizes = [8, 128], strides = [1, 1]} : vector<128x128xf32> to vector<8x128xf32>
    %97 = vector.extract_strided_slice %5 {offsets = [0, 2], sizes = [8, 1], strides = [1, 1]} : vector<8x4xf32> to vector<8x1xf32>
    %98 = vector.broadcast %97 : vector<8x1xf32> to vector<8x128xf32>
    %99 = arith.mulf %96, %98 : vector<8x128xf32>
    %100 = arith.addf %95, %99 : vector<8x128xf32>
    %101 = vector.extract_strided_slice %4 {offsets = [32, 0], sizes = [8, 128], strides = [1, 1]} : vector<128x128xf32> to vector<8x128xf32>
    %102 = vector.extract_strided_slice %5 {offsets = [0, 3], sizes = [8, 1], strides = [1, 1]} : vector<8x4xf32> to vector<8x1xf32>
    %103 = vector.broadcast %102 : vector<8x1xf32> to vector<8x128xf32>
    %104 = arith.mulf %101, %103 : vector<8x128xf32>
    %105 = arith.addf %100, %104 : vector<8x128xf32>
    %106 = arith.negf %105 : vector<8x128xf32>
    %107 = math.exp %106 : vector<8x128xf32>
    %cst_12 = arith.constant 1.000000e+00 : f32
    %108 = vector.broadcast %cst_12 : f32 to vector<8x128xf32>
    %109 = arith.addf %108, %107 : vector<8x128xf32>
    %110 = arith.divf %108, %109 : vector<8x128xf32>
    %111 = arith.mulf %105, %110 : vector<8x128xf32>
    %112 = vector.extract_strided_slice %4 {offsets = [16, 0], sizes = [8, 128], strides = [1, 1]} : vector<128x128xf32> to vector<8x128xf32>
    %113 = vector.extract_strided_slice %5 {offsets = [0, 0], sizes = [8, 1], strides = [1, 1]} : vector<8x4xf32> to vector<8x1xf32>
    %114 = vector.broadcast %113 : vector<8x1xf32> to vector<8x128xf32>
    %115 = arith.mulf %112, %114 : vector<8x128xf32>
    %116 = vector.broadcast %6 : vector<8x1xf32> to vector<8x128xf32>
    %117 = arith.addf %116, %115 : vector<8x128xf32>
    %118 = vector.extract_strided_slice %4 {offsets = [24, 0], sizes = [8, 128], strides = [1, 1]} : vector<128x128xf32> to vector<8x128xf32>
    %119 = vector.extract_strided_slice %5 {offsets = [0, 1], sizes = [8, 1], strides = [1, 1]} : vector<8x4xf32> to vector<8x1xf32>
    %120 = vector.broadcast %119 : vector<8x1xf32> to vector<8x128xf32>
    %121 = arith.mulf %118, %120 : vector<8x128xf32>
    %122 = arith.addf %117, %121 : vector<8x128xf32>
    %123 = vector.extract_strided_slice %4 {offsets = [32, 0], sizes = [8, 128], strides = [1, 1]} : vector<128x128xf32> to vector<8x128xf32>
    %124 = vector.extract_strided_slice %5 {offsets = [0, 2], sizes = [8, 1], strides = [1, 1]} : vector<8x4xf32> to vector<8x1xf32>
    %125 = vector.broadcast %124 : vector<8x1xf32> to vector<8x128xf32>
    %126 = arith.mulf %123, %125 : vector<8x128xf32>
    %127 = arith.addf %122, %126 : vector<8x128xf32>
    %128 = vector.extract_strided_slice %4 {offsets = [40, 0], sizes = [8, 128], strides = [1, 1]} : vector<128x128xf32> to vector<8x128xf32>
    %129 = vector.extract_strided_slice %5 {offsets = [0, 3], sizes = [8, 1], strides = [1, 1]} : vector<8x4xf32> to vector<8x1xf32>
    %130 = vector.broadcast %129 : vector<8x1xf32> to vector<8x128xf32>
    %131 = arith.mulf %128, %130 : vector<8x128xf32>
    %132 = arith.addf %127, %131 : vector<8x128xf32>
    %133 = arith.negf %132 : vector<8x128xf32>
    %134 = math.exp %133 : vector<8x128xf32>
    %cst_13 = arith.constant 1.000000e+00 : f32
    %135 = vector.broadcast %cst_13 : f32 to vector<8x128xf32>
    %136 = arith.addf %135, %134 : vector<8x128xf32>
    %137 = arith.divf %135, %136 : vector<8x128xf32>
    %138 = arith.mulf %132, %137 : vector<8x128xf32>
    %139 = vector.extract_strided_slice %4 {offsets = [24, 0], sizes = [8, 128], strides = [1, 1]} : vector<128x128xf32> to vector<8x128xf32>
    %140 = vector.extract_strided_slice %5 {offsets = [0, 0], sizes = [8, 1], strides = [1, 1]} : vector<8x4xf32> to vector<8x1xf32>
    %141 = vector.broadcast %140 : vector<8x1xf32> to vector<8x128xf32>
    %142 = arith.mulf %139, %141 : vector<8x128xf32>
    %143 = vector.broadcast %6 : vector<8x1xf32> to vector<8x128xf32>
    %144 = arith.addf %143, %142 : vector<8x128xf32>
    %145 = vector.extract_strided_slice %4 {offsets = [32, 0], sizes = [8, 128], strides = [1, 1]} : vector<128x128xf32> to vector<8x128xf32>
    %146 = vector.extract_strided_slice %5 {offsets = [0, 1], sizes = [8, 1], strides = [1, 1]} : vector<8x4xf32> to vector<8x1xf32>
    %147 = vector.broadcast %146 : vector<8x1xf32> to vector<8x128xf32>
    %148 = arith.mulf %145, %147 : vector<8x128xf32>
    %149 = arith.addf %144, %148 : vector<8x128xf32>
    %150 = vector.extract_strided_slice %4 {offsets = [40, 0], sizes = [8, 128], strides = [1, 1]} : vector<128x128xf32> to vector<8x128xf32>
    %151 = vector.extract_strided_slice %5 {offsets = [0, 2], sizes = [8, 1], strides = [1, 1]} : vector<8x4xf32> to vector<8x1xf32>
    %152 = vector.broadcast %151 : vector<8x1xf32> to vector<8x128xf32>
    %153 = arith.mulf %150, %152 : vector<8x128xf32>
    %154 = arith.addf %149, %153 : vector<8x128xf32>
    %155 = vector.extract_strided_slice %4 {offsets = [48, 0], sizes = [8, 128], strides = [1, 1]} : vector<128x128xf32> to vector<8x128xf32>
    %156 = vector.extract_strided_slice %5 {offsets = [0, 3], sizes = [8, 1], strides = [1, 1]} : vector<8x4xf32> to vector<8x1xf32>
    %157 = vector.broadcast %156 : vector<8x1xf32> to vector<8x128xf32>
    %158 = arith.mulf %155, %157 : vector<8x128xf32>
    %159 = arith.addf %154, %158 : vector<8x128xf32>
    %160 = arith.negf %159 : vector<8x128xf32>
    %161 = math.exp %160 : vector<8x128xf32>
    %cst_14 = arith.constant 1.000000e+00 : f32
    %162 = vector.broadcast %cst_14 : f32 to vector<8x128xf32>
    %163 = arith.addf %162, %161 : vector<8x128xf32>
    %164 = arith.divf %162, %163 : vector<8x128xf32>
    %165 = arith.mulf %159, %164 : vector<8x128xf32>
    %166 = vector.extract_strided_slice %4 {offsets = [32, 0], sizes = [8, 128], strides = [1, 1]} : vector<128x128xf32> to vector<8x128xf32>
    %167 = vector.extract_strided_slice %5 {offsets = [0, 0], sizes = [8, 1], strides = [1, 1]} : vector<8x4xf32> to vector<8x1xf32>
    %168 = vector.broadcast %167 : vector<8x1xf32> to vector<8x128xf32>
    %169 = arith.mulf %166, %168 : vector<8x128xf32>
    %170 = vector.broadcast %6 : vector<8x1xf32> to vector<8x128xf32>
    %171 = arith.addf %170, %169 : vector<8x128xf32>
    %172 = vector.extract_strided_slice %4 {offsets = [40, 0], sizes = [8, 128], strides = [1, 1]} : vector<128x128xf32> to vector<8x128xf32>
    %173 = vector.extract_strided_slice %5 {offsets = [0, 1], sizes = [8, 1], strides = [1, 1]} : vector<8x4xf32> to vector<8x1xf32>
    %174 = vector.broadcast %173 : vector<8x1xf32> to vector<8x128xf32>
    %175 = arith.mulf %172, %174 : vector<8x128xf32>
    %176 = arith.addf %171, %175 : vector<8x128xf32>
    %177 = vector.extract_strided_slice %4 {offsets = [48, 0], sizes = [8, 128], strides = [1, 1]} : vector<128x128xf32> to vector<8x128xf32>
    %178 = vector.extract_strided_slice %5 {offsets = [0, 2], sizes = [8, 1], strides = [1, 1]} : vector<8x4xf32> to vector<8x1xf32>
    %179 = vector.broadcast %178 : vector<8x1xf32> to vector<8x128xf32>
    %180 = arith.mulf %177, %179 : vector<8x128xf32>
    %181 = arith.addf %176, %180 : vector<8x128xf32>
    %182 = vector.extract_strided_slice %4 {offsets = [56, 0], sizes = [8, 128], strides = [1, 1]} : vector<128x128xf32> to vector<8x128xf32>
    %183 = vector.extract_strided_slice %5 {offsets = [0, 3], sizes = [8, 1], strides = [1, 1]} : vector<8x4xf32> to vector<8x1xf32>
    %184 = vector.broadcast %183 : vector<8x1xf32> to vector<8x128xf32>
    %185 = arith.mulf %182, %184 : vector<8x128xf32>
    %186 = arith.addf %181, %185 : vector<8x128xf32>
    %187 = arith.negf %186 : vector<8x128xf32>
    %188 = math.exp %187 : vector<8x128xf32>
    %cst_15 = arith.constant 1.000000e+00 : f32
    %189 = vector.broadcast %cst_15 : f32 to vector<8x128xf32>
    %190 = arith.addf %189, %188 : vector<8x128xf32>
    %191 = arith.divf %189, %190 : vector<8x128xf32>
    %192 = arith.mulf %186, %191 : vector<8x128xf32>
    %193 = tpu.concatenate %18, %35, %57, %84, %111, %138, %165, %192 in 0 : vector<8x128xf32>, vector<8x128xf32>, vector<8x128xf32>, vector<8x128xf32>, vector<8x128xf32>, vector<8x128xf32>, vector<8x128xf32>, vector<8x128xf32> -> vector<64x128xf32>
    %c0_16 = arith.constant 0 : index
    %c0_17 = arith.constant 0 : index
    %194 = vector.load %arg6[%c0_16, %c0_17] : memref<320x64xbf16, #tpu.memory_space<vmem>>, vector<320x64xbf16>
    %195 = arith.truncf %193 : vector<64x128xf32> to vector<64x128xbf16>
    %cst_18 = arith.constant dense<0.000000e+00> : vector<320x128xf32>
    %196 = tpu.matmul %194, %195, %cst_18 {dimension_numbers = #tpu.dot_dimension_numbers<[1], [0], [0], [1], [0, 0, 1, 1], [], []>} : vector<320x64xbf16>, vector<64x128xbf16>, vector<320x128xf32> -> vector<320x128xf32>
    %c0_19 = arith.constant 0 : index
    %c0_20 = arith.constant 0 : index
    %197 = vector.load %arg8[%c0_19, %c0_20] : memref<16x8xf32, #tpu.memory_space<vmem>>, vector<16x8xf32>
    %198 = vector.shape_cast %197 : vector<16x8xf32> to vector<16x8x1xf32>
    %c0_21 = arith.constant 0 : index
    %c0_22 = arith.constant 0 : index
    %199 = vector.load %arg7[%c0_21, %c0_22] : memref<8x1xf32, #tpu.memory_space<vmem>>, vector<8x1xf32>
    %c0_23 = arith.constant 0 : index
    %c0_24 = arith.constant 0 : index
    %200 = vector.load %arg9[%c0_23, %c0_24] : memref<8x1xf32, #tpu.memory_space<vmem>>, vector<8x1xf32>
    %cst_25 = arith.constant 0.000000e+00 : f32
    %201 = vector.broadcast %cst_25 : f32 to vector<16x8x128xf32>
    %202 = vector.extract_strided_slice %196 {offsets = [0, 0], sizes = [8, 128], strides = [1, 1]} : vector<320x128xf32> to vector<8x128xf32>
    %203 = vector.broadcast %199 : vector<8x1xf32> to vector<8x128xf32>
    %204 = arith.addf %202, %203 : vector<8x128xf32>
    %cst_26 = arith.constant 0.000000e+00 : f32
    %205 = vector.broadcast %cst_26 : f32 to vector<8x128xf32>
    %206 = arith.maximumf %204, %205 : vector<8x128xf32>
    %207 = vector.broadcast %cst_26 : f32 to vector<8x128xf32>
    %208 = arith.subf %204, %207 : vector<8x128xf32>
    %209 = arith.cmpf one, %208, %208 : vector<8x128xf32>
    %210 = vector.broadcast %cst_26 : f32 to vector<8x128xf32>
    %211 = arith.addf %204, %210 : vector<8x128xf32>
    %212 = math.absf %208 : vector<8x128xf32>
    %cst_27 = arith.constant 0.000000e+00 : f32
    %213 = vector.broadcast %cst_27 : f32 to vector<8x128xf32>
    %214 = arith.subf %213, %212 : vector<8x128xf32>
    %215 = math.exp %214 : vector<8x128xf32>
    %216 = math.log1p %215 : vector<8x128xf32>
    %217 = arith.addf %206, %216 : vector<8x128xf32>
    %218 = arith.select %209, %211, %217 : vector<8x128xi1>, vector<8x128xf32>
    %219 = vector.extract_strided_slice %196 {offsets = [64, 0], sizes = [16, 128], strides = [1, 1]} : vector<320x128xf32> to vector<16x128xf32>
    %220 = vector.extract_strided_slice %196 {offsets = [192, 0], sizes = [16, 128], strides = [1, 1]} : vector<320x128xf32> to vector<16x128xf32>
    %221 = vector.shape_cast %218 : vector<8x128xf32> to vector<1x8x128xf32>
    %222 = vector.broadcast %221 : vector<1x8x128xf32> to vector<16x8x128xf32>
    %223 = vector.broadcast %198 : vector<16x8x1xf32> to vector<16x8x128xf32>
    %224 = arith.mulf %222, %223 : vector<16x8x128xf32>
    %225 = math.exp %224 : vector<16x8x128xf32>
    %226 = arith.mulf %225, %201 : vector<16x8x128xf32>
    %227 = arith.mulf %218, %18 : vector<8x128xf32>
    %228 = vector.shape_cast %227 : vector<8x128xf32> to vector<1x8x128xf32>
    %229 = vector.shape_cast %219 : vector<16x128xf32> to vector<16x1x128xf32>
    %230 = vector.broadcast %228 : vector<1x8x128xf32> to vector<16x8x128xf32>
    %231 = vector.broadcast %229 : vector<16x1x128xf32> to vector<16x8x128xf32>
    %232 = arith.mulf %230, %231 : vector<16x8x128xf32>
    %233 = arith.addf %226, %232 : vector<16x8x128xf32>
    %234 = vector.shape_cast %220 : vector<16x128xf32> to vector<16x1x128xf32>
    %235 = vector.broadcast %234 : vector<16x1x128xf32> to vector<16x8x128xf32>
    %236 = arith.mulf %233, %235 : vector<16x8x128xf32>
    %cst_28 = arith.constant dense<0.000000e+00> : vector<8x128xf32>
    %237 = vector.multi_reduction <add>, %236, %cst_28 [0] : vector<16x8x128xf32> to vector<8x128xf32>
    %238 = vector.broadcast %200 : vector<8x1xf32> to vector<8x128xf32>
    %239 = arith.mulf %238, %18 : vector<8x128xf32>
    %240 = arith.addf %237, %239 : vector<8x128xf32>
    %241 = vector.extract_strided_slice %4 {offsets = [64, 0], sizes = [8, 128], strides = [1, 1]} : vector<128x128xf32> to vector<8x128xf32>
    %242 = arith.negf %241 : vector<8x128xf32>
    %243 = math.exp %242 : vector<8x128xf32>
    %cst_29 = arith.constant 1.000000e+00 : f32
    %244 = vector.broadcast %cst_29 : f32 to vector<8x128xf32>
    %245 = arith.addf %244, %243 : vector<8x128xf32>
    %246 = arith.divf %244, %245 : vector<8x128xf32>
    %247 = arith.mulf %241, %246 : vector<8x128xf32>
    %248 = arith.mulf %240, %247 : vector<8x128xf32>
    %249 = vector.extract_strided_slice %196 {offsets = [8, 0], sizes = [8, 128], strides = [1, 1]} : vector<320x128xf32> to vector<8x128xf32>
    %250 = vector.broadcast %199 : vector<8x1xf32> to vector<8x128xf32>
    %251 = arith.addf %249, %250 : vector<8x128xf32>
    %cst_30 = arith.constant 0.000000e+00 : f32
    %252 = vector.broadcast %cst_30 : f32 to vector<8x128xf32>
    %253 = arith.maximumf %251, %252 : vector<8x128xf32>
    %254 = vector.broadcast %cst_30 : f32 to vector<8x128xf32>
    %255 = arith.subf %251, %254 : vector<8x128xf32>
    %256 = arith.cmpf one, %255, %255 : vector<8x128xf32>
    %257 = vector.broadcast %cst_30 : f32 to vector<8x128xf32>
    %258 = arith.addf %251, %257 : vector<8x128xf32>
    %259 = math.absf %255 : vector<8x128xf32>
    %cst_31 = arith.constant 0.000000e+00 : f32
    %260 = vector.broadcast %cst_31 : f32 to vector<8x128xf32>
    %261 = arith.subf %260, %259 : vector<8x128xf32>
    %262 = math.exp %261 : vector<8x128xf32>
    %263 = math.log1p %262 : vector<8x128xf32>
    %264 = arith.addf %253, %263 : vector<8x128xf32>
    %265 = arith.select %256, %258, %264 : vector<8x128xi1>, vector<8x128xf32>
    %266 = vector.extract_strided_slice %196 {offsets = [80, 0], sizes = [16, 128], strides = [1, 1]} : vector<320x128xf32> to vector<16x128xf32>
    %267 = vector.extract_strided_slice %196 {offsets = [208, 0], sizes = [16, 128], strides = [1, 1]} : vector<320x128xf32> to vector<16x128xf32>
    %268 = vector.shape_cast %265 : vector<8x128xf32> to vector<1x8x128xf32>
    %269 = vector.broadcast %268 : vector<1x8x128xf32> to vector<16x8x128xf32>
    %270 = vector.broadcast %198 : vector<16x8x1xf32> to vector<16x8x128xf32>
    %271 = arith.mulf %269, %270 : vector<16x8x128xf32>
    %272 = math.exp %271 : vector<16x8x128xf32>
    %273 = arith.mulf %272, %233 : vector<16x8x128xf32>
    %274 = arith.mulf %265, %35 : vector<8x128xf32>
    %275 = vector.shape_cast %274 : vector<8x128xf32> to vector<1x8x128xf32>
    %276 = vector.shape_cast %266 : vector<16x128xf32> to vector<16x1x128xf32>
    %277 = vector.broadcast %275 : vector<1x8x128xf32> to vector<16x8x128xf32>
    %278 = vector.broadcast %276 : vector<16x1x128xf32> to vector<16x8x128xf32>
    %279 = arith.mulf %277, %278 : vector<16x8x128xf32>
    %280 = arith.addf %273, %279 : vector<16x8x128xf32>
    %281 = vector.shape_cast %267 : vector<16x128xf32> to vector<16x1x128xf32>
    %282 = vector.broadcast %281 : vector<16x1x128xf32> to vector<16x8x128xf32>
    %283 = arith.mulf %280, %282 : vector<16x8x128xf32>
    %cst_32 = arith.constant dense<0.000000e+00> : vector<8x128xf32>
    %284 = vector.multi_reduction <add>, %283, %cst_32 [0] : vector<16x8x128xf32> to vector<8x128xf32>
    %285 = vector.broadcast %200 : vector<8x1xf32> to vector<8x128xf32>
    %286 = arith.mulf %285, %35 : vector<8x128xf32>
    %287 = arith.addf %284, %286 : vector<8x128xf32>
    %288 = vector.extract_strided_slice %4 {offsets = [72, 0], sizes = [8, 128], strides = [1, 1]} : vector<128x128xf32> to vector<8x128xf32>
    %289 = arith.negf %288 : vector<8x128xf32>
    %290 = math.exp %289 : vector<8x128xf32>
    %cst_33 = arith.constant 1.000000e+00 : f32
    %291 = vector.broadcast %cst_33 : f32 to vector<8x128xf32>
    %292 = arith.addf %291, %290 : vector<8x128xf32>
    %293 = arith.divf %291, %292 : vector<8x128xf32>
    %294 = arith.mulf %288, %293 : vector<8x128xf32>
    %295 = arith.mulf %287, %294 : vector<8x128xf32>
    %296 = vector.extract_strided_slice %196 {offsets = [16, 0], sizes = [8, 128], strides = [1, 1]} : vector<320x128xf32> to vector<8x128xf32>
    %297 = vector.broadcast %199 : vector<8x1xf32> to vector<8x128xf32>
    %298 = arith.addf %296, %297 : vector<8x128xf32>
    %cst_34 = arith.constant 0.000000e+00 : f32
    %299 = vector.broadcast %cst_34 : f32 to vector<8x128xf32>
    %300 = arith.maximumf %298, %299 : vector<8x128xf32>
    %301 = vector.broadcast %cst_34 : f32 to vector<8x128xf32>
    %302 = arith.subf %298, %301 : vector<8x128xf32>
    %303 = arith.cmpf one, %302, %302 : vector<8x128xf32>
    %304 = vector.broadcast %cst_34 : f32 to vector<8x128xf32>
    %305 = arith.addf %298, %304 : vector<8x128xf32>
    %306 = math.absf %302 : vector<8x128xf32>
    %cst_35 = arith.constant 0.000000e+00 : f32
    %307 = vector.broadcast %cst_35 : f32 to vector<8x128xf32>
    %308 = arith.subf %307, %306 : vector<8x128xf32>
    %309 = math.exp %308 : vector<8x128xf32>
    %310 = math.log1p %309 : vector<8x128xf32>
    %311 = arith.addf %300, %310 : vector<8x128xf32>
    %312 = arith.select %303, %305, %311 : vector<8x128xi1>, vector<8x128xf32>
    %313 = vector.extract_strided_slice %196 {offsets = [96, 0], sizes = [16, 128], strides = [1, 1]} : vector<320x128xf32> to vector<16x128xf32>
    %314 = vector.extract_strided_slice %196 {offsets = [224, 0], sizes = [16, 128], strides = [1, 1]} : vector<320x128xf32> to vector<16x128xf32>
    %315 = vector.shape_cast %312 : vector<8x128xf32> to vector<1x8x128xf32>
    %316 = vector.broadcast %315 : vector<1x8x128xf32> to vector<16x8x128xf32>
    %317 = vector.broadcast %198 : vector<16x8x1xf32> to vector<16x8x128xf32>
    %318 = arith.mulf %316, %317 : vector<16x8x128xf32>
    %319 = math.exp %318 : vector<16x8x128xf32>
    %320 = arith.mulf %319, %280 : vector<16x8x128xf32>
    %321 = arith.mulf %312, %57 : vector<8x128xf32>
    %322 = vector.shape_cast %321 : vector<8x128xf32> to vector<1x8x128xf32>
    %323 = vector.shape_cast %313 : vector<16x128xf32> to vector<16x1x128xf32>
    %324 = vector.broadcast %322 : vector<1x8x128xf32> to vector<16x8x128xf32>
    %325 = vector.broadcast %323 : vector<16x1x128xf32> to vector<16x8x128xf32>
    %326 = arith.mulf %324, %325 : vector<16x8x128xf32>
    %327 = arith.addf %320, %326 : vector<16x8x128xf32>
    %328 = vector.shape_cast %314 : vector<16x128xf32> to vector<16x1x128xf32>
    %329 = vector.broadcast %328 : vector<16x1x128xf32> to vector<16x8x128xf32>
    %330 = arith.mulf %327, %329 : vector<16x8x128xf32>
    %cst_36 = arith.constant dense<0.000000e+00> : vector<8x128xf32>
    %331 = vector.multi_reduction <add>, %330, %cst_36 [0] : vector<16x8x128xf32> to vector<8x128xf32>
    %332 = vector.broadcast %200 : vector<8x1xf32> to vector<8x128xf32>
    %333 = arith.mulf %332, %57 : vector<8x128xf32>
    %334 = arith.addf %331, %333 : vector<8x128xf32>
    %335 = vector.extract_strided_slice %4 {offsets = [80, 0], sizes = [8, 128], strides = [1, 1]} : vector<128x128xf32> to vector<8x128xf32>
    %336 = arith.negf %335 : vector<8x128xf32>
    %337 = math.exp %336 : vector<8x128xf32>
    %cst_37 = arith.constant 1.000000e+00 : f32
    %338 = vector.broadcast %cst_37 : f32 to vector<8x128xf32>
    %339 = arith.addf %338, %337 : vector<8x128xf32>
    %340 = arith.divf %338, %339 : vector<8x128xf32>
    %341 = arith.mulf %335, %340 : vector<8x128xf32>
    %342 = arith.mulf %334, %341 : vector<8x128xf32>
    %343 = vector.extract_strided_slice %196 {offsets = [24, 0], sizes = [8, 128], strides = [1, 1]} : vector<320x128xf32> to vector<8x128xf32>
    %344 = vector.broadcast %199 : vector<8x1xf32> to vector<8x128xf32>
    %345 = arith.addf %343, %344 : vector<8x128xf32>
    %cst_38 = arith.constant 0.000000e+00 : f32
    %346 = vector.broadcast %cst_38 : f32 to vector<8x128xf32>
    %347 = arith.maximumf %345, %346 : vector<8x128xf32>
    %348 = vector.broadcast %cst_38 : f32 to vector<8x128xf32>
    %349 = arith.subf %345, %348 : vector<8x128xf32>
    %350 = arith.cmpf one, %349, %349 : vector<8x128xf32>
    %351 = vector.broadcast %cst_38 : f32 to vector<8x128xf32>
    %352 = arith.addf %345, %351 : vector<8x128xf32>
    %353 = math.absf %349 : vector<8x128xf32>
    %cst_39 = arith.constant 0.000000e+00 : f32
    %354 = vector.broadcast %cst_39 : f32 to vector<8x128xf32>
    %355 = arith.subf %354, %353 : vector<8x128xf32>
    %356 = math.exp %355 : vector<8x128xf32>
    %357 = math.log1p %356 : vector<8x128xf32>
    %358 = arith.addf %347, %357 : vector<8x128xf32>
    %359 = arith.select %350, %352, %358 : vector<8x128xi1>, vector<8x128xf32>
    %360 = vector.extract_strided_slice %196 {offsets = [112, 0], sizes = [16, 128], strides = [1, 1]} : vector<320x128xf32> to vector<16x128xf32>
    %361 = vector.extract_strided_slice %196 {offsets = [240, 0], sizes = [16, 128], strides = [1, 1]} : vector<320x128xf32> to vector<16x128xf32>
    %362 = vector.shape_cast %359 : vector<8x128xf32> to vector<1x8x128xf32>
    %363 = vector.broadcast %362 : vector<1x8x128xf32> to vector<16x8x128xf32>
    %364 = vector.broadcast %198 : vector<16x8x1xf32> to vector<16x8x128xf32>
    %365 = arith.mulf %363, %364 : vector<16x8x128xf32>
    %366 = math.exp %365 : vector<16x8x128xf32>
    %367 = arith.mulf %366, %327 : vector<16x8x128xf32>
    %368 = arith.mulf %359, %84 : vector<8x128xf32>
    %369 = vector.shape_cast %368 : vector<8x128xf32> to vector<1x8x128xf32>
    %370 = vector.shape_cast %360 : vector<16x128xf32> to vector<16x1x128xf32>
    %371 = vector.broadcast %369 : vector<1x8x128xf32> to vector<16x8x128xf32>
    %372 = vector.broadcast %370 : vector<16x1x128xf32> to vector<16x8x128xf32>
    %373 = arith.mulf %371, %372 : vector<16x8x128xf32>
    %374 = arith.addf %367, %373 : vector<16x8x128xf32>
    %375 = vector.shape_cast %361 : vector<16x128xf32> to vector<16x1x128xf32>
    %376 = vector.broadcast %375 : vector<16x1x128xf32> to vector<16x8x128xf32>
    %377 = arith.mulf %374, %376 : vector<16x8x128xf32>
    %cst_40 = arith.constant dense<0.000000e+00> : vector<8x128xf32>
    %378 = vector.multi_reduction <add>, %377, %cst_40 [0] : vector<16x8x128xf32> to vector<8x128xf32>
    %379 = vector.broadcast %200 : vector<8x1xf32> to vector<8x128xf32>
    %380 = arith.mulf %379, %84 : vector<8x128xf32>
    %381 = arith.addf %378, %380 : vector<8x128xf32>
    %382 = vector.extract_strided_slice %4 {offsets = [88, 0], sizes = [8, 128], strides = [1, 1]} : vector<128x128xf32> to vector<8x128xf32>
    %383 = arith.negf %382 : vector<8x128xf32>
    %384 = math.exp %383 : vector<8x128xf32>
    %cst_41 = arith.constant 1.000000e+00 : f32
    %385 = vector.broadcast %cst_41 : f32 to vector<8x128xf32>
    %386 = arith.addf %385, %384 : vector<8x128xf32>
    %387 = arith.divf %385, %386 : vector<8x128xf32>
    %388 = arith.mulf %382, %387 : vector<8x128xf32>
    %389 = arith.mulf %381, %388 : vector<8x128xf32>
    %390 = vector.extract_strided_slice %196 {offsets = [32, 0], sizes = [8, 128], strides = [1, 1]} : vector<320x128xf32> to vector<8x128xf32>
    %391 = vector.broadcast %199 : vector<8x1xf32> to vector<8x128xf32>
    %392 = arith.addf %390, %391 : vector<8x128xf32>
    %cst_42 = arith.constant 0.000000e+00 : f32
    %393 = vector.broadcast %cst_42 : f32 to vector<8x128xf32>
    %394 = arith.maximumf %392, %393 : vector<8x128xf32>
    %395 = vector.broadcast %cst_42 : f32 to vector<8x128xf32>
    %396 = arith.subf %392, %395 : vector<8x128xf32>
    %397 = arith.cmpf one, %396, %396 : vector<8x128xf32>
    %398 = vector.broadcast %cst_42 : f32 to vector<8x128xf32>
    %399 = arith.addf %392, %398 : vector<8x128xf32>
    %400 = math.absf %396 : vector<8x128xf32>
    %cst_43 = arith.constant 0.000000e+00 : f32
    %401 = vector.broadcast %cst_43 : f32 to vector<8x128xf32>
    %402 = arith.subf %401, %400 : vector<8x128xf32>
    %403 = math.exp %402 : vector<8x128xf32>
    %404 = math.log1p %403 : vector<8x128xf32>
    %405 = arith.addf %394, %404 : vector<8x128xf32>
    %406 = arith.select %397, %399, %405 : vector<8x128xi1>, vector<8x128xf32>
    %407 = vector.extract_strided_slice %196 {offsets = [128, 0], sizes = [16, 128], strides = [1, 1]} : vector<320x128xf32> to vector<16x128xf32>
    %408 = vector.extract_strided_slice %196 {offsets = [256, 0], sizes = [16, 128], strides = [1, 1]} : vector<320x128xf32> to vector<16x128xf32>
    %409 = vector.shape_cast %406 : vector<8x128xf32> to vector<1x8x128xf32>
    %410 = vector.broadcast %409 : vector<1x8x128xf32> to vector<16x8x128xf32>
    %411 = vector.broadcast %198 : vector<16x8x1xf32> to vector<16x8x128xf32>
    %412 = arith.mulf %410, %411 : vector<16x8x128xf32>
    %413 = math.exp %412 : vector<16x8x128xf32>
    %414 = arith.mulf %413, %374 : vector<16x8x128xf32>
    %415 = arith.mulf %406, %111 : vector<8x128xf32>
    %416 = vector.shape_cast %415 : vector<8x128xf32> to vector<1x8x128xf32>
    %417 = vector.shape_cast %407 : vector<16x128xf32> to vector<16x1x128xf32>
    %418 = vector.broadcast %416 : vector<1x8x128xf32> to vector<16x8x128xf32>
    %419 = vector.broadcast %417 : vector<16x1x128xf32> to vector<16x8x128xf32>
    %420 = arith.mulf %418, %419 : vector<16x8x128xf32>
    %421 = arith.addf %414, %420 : vector<16x8x128xf32>
    %422 = vector.shape_cast %408 : vector<16x128xf32> to vector<16x1x128xf32>
    %423 = vector.broadcast %422 : vector<16x1x128xf32> to vector<16x8x128xf32>
    %424 = arith.mulf %421, %423 : vector<16x8x128xf32>
    %cst_44 = arith.constant dense<0.000000e+00> : vector<8x128xf32>
    %425 = vector.multi_reduction <add>, %424, %cst_44 [0] : vector<16x8x128xf32> to vector<8x128xf32>
    %426 = vector.broadcast %200 : vector<8x1xf32> to vector<8x128xf32>
    %427 = arith.mulf %426, %111 : vector<8x128xf32>
    %428 = arith.addf %425, %427 : vector<8x128xf32>
    %429 = vector.extract_strided_slice %4 {offsets = [96, 0], sizes = [8, 128], strides = [1, 1]} : vector<128x128xf32> to vector<8x128xf32>
    %430 = arith.negf %429 : vector<8x128xf32>
    %431 = math.exp %430 : vector<8x128xf32>
    %cst_45 = arith.constant 1.000000e+00 : f32
    %432 = vector.broadcast %cst_45 : f32 to vector<8x128xf32>
    %433 = arith.addf %432, %431 : vector<8x128xf32>
    %434 = arith.divf %432, %433 : vector<8x128xf32>
    %435 = arith.mulf %429, %434 : vector<8x128xf32>
    %436 = arith.mulf %428, %435 : vector<8x128xf32>
    %437 = vector.extract_strided_slice %196 {offsets = [40, 0], sizes = [8, 128], strides = [1, 1]} : vector<320x128xf32> to vector<8x128xf32>
    %438 = vector.broadcast %199 : vector<8x1xf32> to vector<8x128xf32>
    %439 = arith.addf %437, %438 : vector<8x128xf32>
    %cst_46 = arith.constant 0.000000e+00 : f32
    %440 = vector.broadcast %cst_46 : f32 to vector<8x128xf32>
    %441 = arith.maximumf %439, %440 : vector<8x128xf32>
    %442 = vector.broadcast %cst_46 : f32 to vector<8x128xf32>
    %443 = arith.subf %439, %442 : vector<8x128xf32>
    %444 = arith.cmpf one, %443, %443 : vector<8x128xf32>
    %445 = vector.broadcast %cst_46 : f32 to vector<8x128xf32>
    %446 = arith.addf %439, %445 : vector<8x128xf32>
    %447 = math.absf %443 : vector<8x128xf32>
    %cst_47 = arith.constant 0.000000e+00 : f32
    %448 = vector.broadcast %cst_47 : f32 to vector<8x128xf32>
    %449 = arith.subf %448, %447 : vector<8x128xf32>
    %450 = math.exp %449 : vector<8x128xf32>
    %451 = math.log1p %450 : vector<8x128xf32>
    %452 = arith.addf %441, %451 : vector<8x128xf32>
    %453 = arith.select %444, %446, %452 : vector<8x128xi1>, vector<8x128xf32>
    %454 = vector.extract_strided_slice %196 {offsets = [144, 0], sizes = [16, 128], strides = [1, 1]} : vector<320x128xf32> to vector<16x128xf32>
    %455 = vector.extract_strided_slice %196 {offsets = [272, 0], sizes = [16, 128], strides = [1, 1]} : vector<320x128xf32> to vector<16x128xf32>
    %456 = vector.shape_cast %453 : vector<8x128xf32> to vector<1x8x128xf32>
    %457 = vector.broadcast %456 : vector<1x8x128xf32> to vector<16x8x128xf32>
    %458 = vector.broadcast %198 : vector<16x8x1xf32> to vector<16x8x128xf32>
    %459 = arith.mulf %457, %458 : vector<16x8x128xf32>
    %460 = math.exp %459 : vector<16x8x128xf32>
    %461 = arith.mulf %460, %421 : vector<16x8x128xf32>
    %462 = arith.mulf %453, %138 : vector<8x128xf32>
    %463 = vector.shape_cast %462 : vector<8x128xf32> to vector<1x8x128xf32>
    %464 = vector.shape_cast %454 : vector<16x128xf32> to vector<16x1x128xf32>
    %465 = vector.broadcast %463 : vector<1x8x128xf32> to vector<16x8x128xf32>
    %466 = vector.broadcast %464 : vector<16x1x128xf32> to vector<16x8x128xf32>
    %467 = arith.mulf %465, %466 : vector<16x8x128xf32>
    %468 = arith.addf %461, %467 : vector<16x8x128xf32>
    %469 = vector.shape_cast %455 : vector<16x128xf32> to vector<16x1x128xf32>
    %470 = vector.broadcast %469 : vector<16x1x128xf32> to vector<16x8x128xf32>
    %471 = arith.mulf %468, %470 : vector<16x8x128xf32>
    %cst_48 = arith.constant dense<0.000000e+00> : vector<8x128xf32>
    %472 = vector.multi_reduction <add>, %471, %cst_48 [0] : vector<16x8x128xf32> to vector<8x128xf32>
    %473 = vector.broadcast %200 : vector<8x1xf32> to vector<8x128xf32>
    %474 = arith.mulf %473, %138 : vector<8x128xf32>
    %475 = arith.addf %472, %474 : vector<8x128xf32>
    %476 = vector.extract_strided_slice %4 {offsets = [104, 0], sizes = [8, 128], strides = [1, 1]} : vector<128x128xf32> to vector<8x128xf32>
    %477 = arith.negf %476 : vector<8x128xf32>
    %478 = math.exp %477 : vector<8x128xf32>
    %cst_49 = arith.constant 1.000000e+00 : f32
    %479 = vector.broadcast %cst_49 : f32 to vector<8x128xf32>
    %480 = arith.addf %479, %478 : vector<8x128xf32>
    %481 = arith.divf %479, %480 : vector<8x128xf32>
    %482 = arith.mulf %476, %481 : vector<8x128xf32>
    %483 = arith.mulf %475, %482 : vector<8x128xf32>
    %484 = vector.extract_strided_slice %196 {offsets = [48, 0], sizes = [8, 128], strides = [1, 1]} : vector<320x128xf32> to vector<8x128xf32>
    %485 = vector.broadcast %199 : vector<8x1xf32> to vector<8x128xf32>
    %486 = arith.addf %484, %485 : vector<8x128xf32>
    %cst_50 = arith.constant 0.000000e+00 : f32
    %487 = vector.broadcast %cst_50 : f32 to vector<8x128xf32>
    %488 = arith.maximumf %486, %487 : vector<8x128xf32>
    %489 = vector.broadcast %cst_50 : f32 to vector<8x128xf32>
    %490 = arith.subf %486, %489 : vector<8x128xf32>
    %491 = arith.cmpf one, %490, %490 : vector<8x128xf32>
    %492 = vector.broadcast %cst_50 : f32 to vector<8x128xf32>
    %493 = arith.addf %486, %492 : vector<8x128xf32>
    %494 = math.absf %490 : vector<8x128xf32>
    %cst_51 = arith.constant 0.000000e+00 : f32
    %495 = vector.broadcast %cst_51 : f32 to vector<8x128xf32>
    %496 = arith.subf %495, %494 : vector<8x128xf32>
    %497 = math.exp %496 : vector<8x128xf32>
    %498 = math.log1p %497 : vector<8x128xf32>
    %499 = arith.addf %488, %498 : vector<8x128xf32>
    %500 = arith.select %491, %493, %499 : vector<8x128xi1>, vector<8x128xf32>
    %501 = vector.extract_strided_slice %196 {offsets = [160, 0], sizes = [16, 128], strides = [1, 1]} : vector<320x128xf32> to vector<16x128xf32>
    %502 = vector.extract_strided_slice %196 {offsets = [288, 0], sizes = [16, 128], strides = [1, 1]} : vector<320x128xf32> to vector<16x128xf32>
    %503 = vector.shape_cast %500 : vector<8x128xf32> to vector<1x8x128xf32>
    %504 = vector.broadcast %503 : vector<1x8x128xf32> to vector<16x8x128xf32>
    %505 = vector.broadcast %198 : vector<16x8x1xf32> to vector<16x8x128xf32>
    %506 = arith.mulf %504, %505 : vector<16x8x128xf32>
    %507 = math.exp %506 : vector<16x8x128xf32>
    %508 = arith.mulf %507, %468 : vector<16x8x128xf32>
    %509 = arith.mulf %500, %165 : vector<8x128xf32>
    %510 = vector.shape_cast %509 : vector<8x128xf32> to vector<1x8x128xf32>
    %511 = vector.shape_cast %501 : vector<16x128xf32> to vector<16x1x128xf32>
    %512 = vector.broadcast %510 : vector<1x8x128xf32> to vector<16x8x128xf32>
    %513 = vector.broadcast %511 : vector<16x1x128xf32> to vector<16x8x128xf32>
    %514 = arith.mulf %512, %513 : vector<16x8x128xf32>
    %515 = arith.addf %508, %514 : vector<16x8x128xf32>
    %516 = vector.shape_cast %502 : vector<16x128xf32> to vector<16x1x128xf32>
    %517 = vector.broadcast %516 : vector<16x1x128xf32> to vector<16x8x128xf32>
    %518 = arith.mulf %515, %517 : vector<16x8x128xf32>
    %cst_52 = arith.constant dense<0.000000e+00> : vector<8x128xf32>
    %519 = vector.multi_reduction <add>, %518, %cst_52 [0] : vector<16x8x128xf32> to vector<8x128xf32>
    %520 = vector.broadcast %200 : vector<8x1xf32> to vector<8x128xf32>
    %521 = arith.mulf %520, %165 : vector<8x128xf32>
    %522 = arith.addf %519, %521 : vector<8x128xf32>
    %523 = vector.extract_strided_slice %4 {offsets = [112, 0], sizes = [8, 128], strides = [1, 1]} : vector<128x128xf32> to vector<8x128xf32>
    %524 = arith.negf %523 : vector<8x128xf32>
    %525 = math.exp %524 : vector<8x128xf32>
    %cst_53 = arith.constant 1.000000e+00 : f32
    %526 = vector.broadcast %cst_53 : f32 to vector<8x128xf32>
    %527 = arith.addf %526, %525 : vector<8x128xf32>
    %528 = arith.divf %526, %527 : vector<8x128xf32>
    %529 = arith.mulf %523, %528 : vector<8x128xf32>
    %530 = arith.mulf %522, %529 : vector<8x128xf32>
    %531 = vector.extract_strided_slice %196 {offsets = [56, 0], sizes = [8, 128], strides = [1, 1]} : vector<320x128xf32> to vector<8x128xf32>
    %532 = vector.broadcast %199 : vector<8x1xf32> to vector<8x128xf32>
    %533 = arith.addf %531, %532 : vector<8x128xf32>
    %cst_54 = arith.constant 0.000000e+00 : f32
    %534 = vector.broadcast %cst_54 : f32 to vector<8x128xf32>
    %535 = arith.maximumf %533, %534 : vector<8x128xf32>
    %536 = vector.broadcast %cst_54 : f32 to vector<8x128xf32>
    %537 = arith.subf %533, %536 : vector<8x128xf32>
    %538 = arith.cmpf one, %537, %537 : vector<8x128xf32>
    %539 = vector.broadcast %cst_54 : f32 to vector<8x128xf32>
    %540 = arith.addf %533, %539 : vector<8x128xf32>
    %541 = math.absf %537 : vector<8x128xf32>
    %cst_55 = arith.constant 0.000000e+00 : f32
    %542 = vector.broadcast %cst_55 : f32 to vector<8x128xf32>
    %543 = arith.subf %542, %541 : vector<8x128xf32>
    %544 = math.exp %543 : vector<8x128xf32>
    %545 = math.log1p %544 : vector<8x128xf32>
    %546 = arith.addf %535, %545 : vector<8x128xf32>
    %547 = arith.select %538, %540, %546 : vector<8x128xi1>, vector<8x128xf32>
    %548 = vector.extract_strided_slice %196 {offsets = [176, 0], sizes = [16, 128], strides = [1, 1]} : vector<320x128xf32> to vector<16x128xf32>
    %549 = vector.extract_strided_slice %196 {offsets = [304, 0], sizes = [16, 128], strides = [1, 1]} : vector<320x128xf32> to vector<16x128xf32>
    %550 = vector.shape_cast %547 : vector<8x128xf32> to vector<1x8x128xf32>
    %551 = vector.broadcast %550 : vector<1x8x128xf32> to vector<16x8x128xf32>
    %552 = vector.broadcast %198 : vector<16x8x1xf32> to vector<16x8x128xf32>
    %553 = arith.mulf %551, %552 : vector<16x8x128xf32>
    %554 = math.exp %553 : vector<16x8x128xf32>
    %555 = arith.mulf %554, %515 : vector<16x8x128xf32>
    %556 = arith.mulf %547, %192 : vector<8x128xf32>
    %557 = vector.shape_cast %556 : vector<8x128xf32> to vector<1x8x128xf32>
    %558 = vector.shape_cast %548 : vector<16x128xf32> to vector<16x1x128xf32>
    %559 = vector.broadcast %557 : vector<1x8x128xf32> to vector<16x8x128xf32>
    %560 = vector.broadcast %558 : vector<16x1x128xf32> to vector<16x8x128xf32>
    %561 = arith.mulf %559, %560 : vector<16x8x128xf32>
    %562 = arith.addf %555, %561 : vector<16x8x128xf32>
    %563 = vector.shape_cast %549 : vector<16x128xf32> to vector<16x1x128xf32>
    %564 = vector.broadcast %563 : vector<16x1x128xf32> to vector<16x8x128xf32>
    %565 = arith.mulf %562, %564 : vector<16x8x128xf32>
    %cst_56 = arith.constant dense<0.000000e+00> : vector<8x128xf32>
    %566 = vector.multi_reduction <add>, %565, %cst_56 [0] : vector<16x8x128xf32> to vector<8x128xf32>
    %567 = vector.broadcast %200 : vector<8x1xf32> to vector<8x128xf32>
    %568 = arith.mulf %567, %192 : vector<8x128xf32>
    %569 = arith.addf %566, %568 : vector<8x128xf32>
    %570 = vector.extract_strided_slice %4 {offsets = [120, 0], sizes = [8, 128], strides = [1, 1]} : vector<128x128xf32> to vector<8x128xf32>
    %571 = arith.negf %570 : vector<8x128xf32>
    %572 = math.exp %571 : vector<8x128xf32>
    %cst_57 = arith.constant 1.000000e+00 : f32
    %573 = vector.broadcast %cst_57 : f32 to vector<8x128xf32>
    %574 = arith.addf %573, %572 : vector<8x128xf32>
    %575 = arith.divf %573, %574 : vector<8x128xf32>
    %576 = arith.mulf %570, %575 : vector<8x128xf32>
    %577 = arith.mulf %569, %576 : vector<8x128xf32>
    %578 = tpu.concatenate %248, %295, %342, %389, %436, %483, %530, %577 in 0 : vector<8x128xf32>, vector<8x128xf32>, vector<8x128xf32>, vector<8x128xf32>, vector<8x128xf32>, vector<8x128xf32>, vector<8x128xf32>, vector<8x128xf32> -> vector<64x128xf32>
    %c0_58 = arith.constant 0 : index
    %c0_59 = arith.constant 0 : index
    %579 = vector.load %arg10[%c0_58, %c0_59] : memref<32x64xbf16, #tpu.memory_space<vmem>>, vector<32x64xbf16>
    %580 = arith.truncf %578 : vector<64x128xf32> to vector<64x128xbf16>
    %cst_60 = arith.constant dense<0.000000e+00> : vector<32x128xf32>
    %581 = tpu.matmul %579, %580, %cst_60 {dimension_numbers = #tpu.dot_dimension_numbers<[1], [0], [0], [1], [0, 0, 1, 1], [], []>} : vector<32x64xbf16>, vector<64x128xbf16>, vector<32x128xf32> -> vector<32x128xf32>
    %c128_i32 = arith.constant 128 : i32
    %582 = arith.muli %arg1, %c128_i32 : i32
    %583 = tpu.iota {dimensions = array<i32: 1>} : vector<1x128xi32>
    %584 = vector.broadcast %582 : i32 to vector<1x128xi32>
    %585 = arith.addi %584, %583 : vector<1x128xi32>
    %c64_i32 = arith.constant 64 : i32
    %586 = vector.broadcast %c64_i32 : i32 to vector<1x128xi32>
    %587 = arith.cmpi slt, %585, %586 : vector<1x128xi32>
    %588 = arith.extui %587 : vector<1x128xi1> to vector<1x128xi32>
    %589 = arith.sitofp %588 : vector<1x128xi32> to vector<1x128xf32>
    %590 = vector.broadcast %589 : vector<1x128xf32> to vector<32x128xf32>
    %591 = arith.mulf %581, %590 : vector<32x128xf32>
    %cst_61 = arith.constant dense<0.000000e+00> : vector<32xf32>
    %592 = vector.multi_reduction <add>, %591, %cst_61 [1] : vector<32x128xf32> to vector<32xf32>
    %593 = vector.shape_cast %592 : vector<32xf32> to vector<32x1xf32>
    %594 = arith.mulf %591, %581 : vector<32x128xf32>
    %cst_62 = arith.constant dense<0.000000e+00> : vector<32xf32>
    %595 = vector.multi_reduction <add>, %594, %cst_62 [1] : vector<32x128xf32> to vector<32xf32>
    %596 = vector.shape_cast %595 : vector<32xf32> to vector<32x1xf32>
    %597 = tpu.concatenate %593, %596 in 1 : vector<32x1xf32>, vector<32x1xf32> -> vector<32x2xf32>
    %c0_63 = arith.constant 0 : index
    %c0_64 = arith.constant 0 : index
    %c0_65 = arith.constant 0 : index
    %c0_66 = arith.constant 0 : index
    %598 = vector.load %arg12[%c0_63, %c0_64, %c0_65, %c0_66] : memref<1x1x32x2xf32, #tpu.memory_space<vmem>>, vector<1x1x32x2xf32>
    %599 = vector.shape_cast %598 : vector<1x1x32x2xf32> to vector<32x2xf32>
    %600 = vector.shape_cast %597 : vector<32x2xf32> to vector<1x1x32x2xf32>
    tpu.vector_store %arg12[%c0_63, %c0_64, %c0_65, %c0_66], %600 {strides = array<i32>} : memref<1x1x32x2xf32, #tpu.memory_space<vmem>>, vector<1x1x32x2xf32>,
    %601 = arith.truncf %581 : vector<32x128xf32> to vector<32x128xbf16>
    %c0_67 = arith.constant 0 : index
    %c0_68 = arith.constant 0 : index
    %c0_69 = arith.constant 0 : index
    %602 = vector.load %arg11[%c0_67, %c0_68, %c0_69] : memref<1x32x128xbf16, #tpu.memory_space<vmem>>, vector<1x32x128xbf16>
    %603 = vector.shape_cast %602 : vector<1x32x128xbf16> to vector<32x128xbf16>
    %604 = vector.shape_cast %601 : vector<32x128xbf16> to vector<1x32x128xbf16>
    tpu.vector_store %arg11[%c0_67, %c0_68, %c0_69], %604 {strides = array<i32>} : memref<1x32x128xbf16, #tpu.memory_space<vmem>>, vector<1x32x128xbf16>,
    return
  }
  func.func @transform_0(%arg0: i32, %arg1: i32) -> (i32, i32, i32) {
    %c0_i32 = arith.constant 0 : i32
    %c0_i32_0 = arith.constant 0 : i32
    return %arg0, %c0_i32, %arg1 : i32, i32, i32
  }
  func.func @transform_1(%arg0: i32, %arg1: i32) -> (i32, i32) {
    %c0_i32 = arith.constant 0 : i32
    %c0_i32_0 = arith.constant 0 : i32
    %c0_i32_1 = arith.constant 0 : i32
    return %c0_i32, %c0_i32_0 : i32, i32
  }
  func.func @transform_2(%arg0: i32, %arg1: i32) -> (i32, i32) {
    %c0_i32 = arith.constant 0 : i32
    %c0_i32_0 = arith.constant 0 : i32
    %c0_i32_1 = arith.constant 0 : i32
    return %c0_i32, %c0_i32_0 : i32, i32
  }
  func.func @transform_3(%arg0: i32, %arg1: i32) -> (i32, i32) {
    %c0_i32 = arith.constant 0 : i32
    %c0_i32_0 = arith.constant 0 : i32
    %c0_i32_1 = arith.constant 0 : i32
    return %c0_i32, %c0_i32_0 : i32, i32
  }
  func.func @transform_4(%arg0: i32, %arg1: i32) -> (i32, i32) {
    %c0_i32 = arith.constant 0 : i32
    %c0_i32_0 = arith.constant 0 : i32
    %c0_i32_1 = arith.constant 0 : i32
    return %c0_i32, %c0_i32_0 : i32, i32
  }
  func.func @transform_5(%arg0: i32, %arg1: i32) -> (i32, i32) {
    %c0_i32 = arith.constant 0 : i32
    %c0_i32_0 = arith.constant 0 : i32
    %c0_i32_1 = arith.constant 0 : i32
    return %c0_i32, %c0_i32_0 : i32, i32
  }
  func.func @transform_6(%arg0: i32, %arg1: i32) -> (i32, i32) {
    %c0_i32 = arith.constant 0 : i32
    %c0_i32_0 = arith.constant 0 : i32
    %c0_i32_1 = arith.constant 0 : i32
    return %c0_i32, %c0_i32_0 : i32, i32
  }
  func.func @transform_7(%arg0: i32, %arg1: i32) -> (i32, i32) {
    %c0_i32 = arith.constant 0 : i32
    %c0_i32_0 = arith.constant 0 : i32
    %c0_i32_1 = arith.constant 0 : i32
    return %c0_i32, %c0_i32_0 : i32, i32
  }
  func.func @transform_8(%arg0: i32, %arg1: i32) -> (i32, i32) {
    %c0_i32 = arith.constant 0 : i32
    %c0_i32_0 = arith.constant 0 : i32
    %c0_i32_1 = arith.constant 0 : i32
    return %c0_i32, %c0_i32_0 : i32, i32
  }
  func.func @transform_9(%arg0: i32, %arg1: i32) -> (i32, i32, i32) {
    %c0_i32 = arith.constant 0 : i32
    %c0_i32_0 = arith.constant 0 : i32
    return %arg0, %c0_i32, %arg1 : i32, i32, i32
  }
  func.func @transform_10(%arg0: i32, %arg1: i32) -> (i32, i32, i32, i32) {
    %c0_i32 = arith.constant 0 : i32
    %c0_i32_0 = arith.constant 0 : i32
    %c0_i32_1 = arith.constant 0 : i32
    return %arg0, %arg1, %c0_i32, %c0_i32_0 : i32, i32, i32, i32
  }
}

module attributes {stable_mosaic.version = 11 : i64} {
  func.func @_groupnorm_silu_kernel(%arg0: i32, %arg1: i32, %arg2: memref<1x32x128xbf16, #tpu.memory_space<vmem>>, %arg3: memref<1x32x1xf32, #tpu.memory_space<vmem>>, %arg4: memref<1x32x1xf32, #tpu.memory_space<vmem>>, %arg5: memref<1x32x128xf32, #tpu.memory_space<vmem>>, %arg6: memref<1x32x128xf32, #tpu.memory_space<vmem>>) attributes {dimension_semantics = [#tpu.dimension_semantics<parallel>, #tpu.dimension_semantics<parallel>], iteration_bounds = array<i64: 2, 1>, scalar_prefetch = 0 : i64, scratch_operands = 0 : i64, tpu.core_type = #tpu.core_type<tc>, window_params = [{transform_indices = @transform_0, window_bounds = array<i64: 1, 32, 128>}, {transform_indices = @transform_1, window_bounds = array<i64: 1, 32, 1>}, {transform_indices = @transform_2, window_bounds = array<i64: 1, 32, 1>}, {transform_indices = @transform_3, window_bounds = array<i64: 1, 32, 128>}, {transform_indices = @transform_4, window_bounds = array<i64: 1, 32, 128>}]} {
    %c0 = arith.constant 0 : index
    %c0_0 = arith.constant 0 : index
    %c0_1 = arith.constant 0 : index
    %0 = vector.load %arg2[%c0, %c0_0, %c0_1] : memref<1x32x128xbf16, #tpu.memory_space<vmem>>, vector<1x32x128xbf16>
    %1 = vector.shape_cast %0 : vector<1x32x128xbf16> to vector<32x128xbf16>
    %2 = arith.extf %1 : vector<32x128xbf16> to vector<32x128xf32>
    %c0_2 = arith.constant 0 : index
    %c0_3 = arith.constant 0 : index
    %c0_4 = arith.constant 0 : index
    %3 = vector.load %arg3[%c0_2, %c0_3, %c0_4] : memref<1x32x1xf32, #tpu.memory_space<vmem>>, vector<1x32x1xf32>
    %4 = vector.shape_cast %3 : vector<1x32x1xf32> to vector<32x1xf32>
    %5 = vector.broadcast %4 : vector<32x1xf32> to vector<32x128xf32>
    %6 = arith.mulf %2, %5 : vector<32x128xf32>
    %c0_5 = arith.constant 0 : index
    %c0_6 = arith.constant 0 : index
    %c0_7 = arith.constant 0 : index
    %7 = vector.load %arg4[%c0_5, %c0_6, %c0_7] : memref<1x32x1xf32, #tpu.memory_space<vmem>>, vector<1x32x1xf32>
    %8 = vector.shape_cast %7 : vector<1x32x1xf32> to vector<32x1xf32>
    %9 = vector.broadcast %8 : vector<32x1xf32> to vector<32x128xf32>
    %10 = arith.addf %6, %9 : vector<32x128xf32>
    %11 = arith.negf %10 : vector<32x128xf32>
    %12 = math.exp %11 : vector<32x128xf32>
    %cst = arith.constant 1.000000e+00 : f32
    %13 = vector.broadcast %cst : f32 to vector<32x128xf32>
    %14 = arith.addf %13, %12 : vector<32x128xf32>
    %15 = arith.divf %13, %14 : vector<32x128xf32>
    %16 = arith.mulf %10, %15 : vector<32x128xf32>
    %c0_8 = arith.constant 0 : index
    %c0_9 = arith.constant 0 : index
    %c0_10 = arith.constant 0 : index
    %17 = vector.load %arg5[%c0_8, %c0_9, %c0_10] : memref<1x32x128xf32, #tpu.memory_space<vmem>>, vector<1x32x128xf32>
    %18 = vector.shape_cast %17 : vector<1x32x128xf32> to vector<32x128xf32>
    %19 = arith.addf %16, %18 : vector<32x128xf32>
    %c0_11 = arith.constant 0 : index
    %c0_12 = arith.constant 0 : index
    %c0_13 = arith.constant 0 : index
    %20 = vector.load %arg6[%c0_11, %c0_12, %c0_13] : memref<1x32x128xf32, #tpu.memory_space<vmem>>, vector<1x32x128xf32>
    %21 = vector.shape_cast %20 : vector<1x32x128xf32> to vector<32x128xf32>
    %22 = vector.shape_cast %19 : vector<32x128xf32> to vector<1x32x128xf32>
    tpu.vector_store %arg6[%c0_11, %c0_12, %c0_13], %22 {strides = array<i32>} : memref<1x32x128xf32, #tpu.memory_space<vmem>>, vector<1x32x128xf32>,
    return
  }
  func.func @transform_0(%arg0: i32, %arg1: i32) -> (i32, i32, i32) {
    %c0_i32 = arith.constant 0 : i32
    %c0_i32_0 = arith.constant 0 : i32
    return %arg0, %c0_i32, %arg1 : i32, i32, i32
  }
  func.func @transform_1(%arg0: i32, %arg1: i32) -> (i32, i32, i32) {
    %c0_i32 = arith.constant 0 : i32
    %c0_i32_0 = arith.constant 0 : i32
    %c0_i32_1 = arith.constant 0 : i32
    return %arg0, %c0_i32, %c0_i32_0 : i32, i32, i32
  }
  func.func @transform_2(%arg0: i32, %arg1: i32) -> (i32, i32, i32) {
    %c0_i32 = arith.constant 0 : i32
    %c0_i32_0 = arith.constant 0 : i32
    %c0_i32_1 = arith.constant 0 : i32
    return %arg0, %c0_i32, %c0_i32_0 : i32, i32, i32
  }
  func.func @transform_3(%arg0: i32, %arg1: i32) -> (i32, i32, i32) {
    %c0_i32 = arith.constant 0 : i32
    %c0_i32_0 = arith.constant 0 : i32
    return %arg0, %c0_i32, %arg1 : i32, i32, i32
  }
  func.func @transform_4(%arg0: i32, %arg1: i32) -> (i32, i32, i32) {
    %c0_i32 = arith.constant 0 : i32
    %c0_i32_0 = arith.constant 0 : i32
    return %arg0, %c0_i32, %arg1 : i32, i32, i32
  }
}

</mosaic_0001>

<bundles_post_ra>
// kernel: spe_mamba_forward.3
= control target key start
LH: loop header
LB: loop body
LE: loop exit
PB: predicated region body
PF: predicated region fallthrough
CT: control target
= control target key end

     0   :  { %s657_s15 = smov 0   ;;  %s659_s16 = smov 0   ;;  %s705_s0 = inlined_call_operand.vmem [shape: bf16[2,32,128], index: 0, kind: input, shape index: {}]   ;;  %s706_s1 = inlined_call_operand.vmem [shape: f32[2,32,1], index: 1, kind: input, shape index: {}]   ;;  %s707_s2 = inlined_call_operand.vmem [shape: f32[2,32,1], index: 2, kind: input, shape index: {}]   ;;  %s708_s3 = inlined_call_operand.vmem [shape: f32[2,32,128], index: 3, kind: input, shape index: {}]   ;;  %s709_s4 = inlined_call_operand.vmem [shape: f32[2,32,128], index: 4, kind: output, shape index: {}]  }
   0x1   :  { %s661_s17 = smov 0  }
   0x2 LB: > { %s26_s18 = sadd.s32 1, %s625_s16  ;;  %p533_p0 = scmp.ge.s32.totalorder %s629_s17, 1  ;;  %s629_s17 = sphi %s661_s17, %s14_s17   ;;  %s625_s16 = sphi %s659_s16, %s711_s16   ;;  %s621_s15 = sphi %s657_s15, %s710_s15  }
   0x3   : > { %p28_p1 = scmp.ge.s32.totalorder %s26_s18, 2  ;;  %p216_p2 = scmp.lt.s32.totalorder %s629_s17, 3 }
   0x5   : > { %s713_s18 = smov (%p28_p1, %s26_s18), 0  ;;  %p217_p3 = pnand %p533_p0, %p216_p2 }
   0x6   : > { %p266_p4 = scmp.lt.s32.totalorder (!%p217_p3), %s621_s15, 1 }
   0x7   : > { %220 = sbr.rel (%p217_p3) target bundleno = 192 (0xc0), region = 36 }
   0xc   : > { %v631_v0 = vmov 0   ;;  %s715_s15 = smov (!%p266_p4, %s621_s15), 1 }
   0xd   : > { %590 = vset.pattern.permute.xlu1 %v631_v0  ;;  %589 = vset.pattern.permute.xlu0 %v631_v0  ;;  %s675_s19 = sshll.u32 %s715_s15, 5  ;;  %s550_s26 = sshll.u32 %s715_s15, 4 }
   0xe   : > { %s278_s22 = scalar_lea.vmem %s706_s1, %s675_s19  ;;  %s283_s25 = scalar_lea.vmem %s707_s2, %s675_s19 }
   0xf   : > { %v310_v1 = vld [vmem:[%s278_s22 + $0x10] sm:$0xff]  ;;  %v308_v2 = vld [vmem:[%s278_s22] sm:$0xff]  ;;  %v311_v3 = vld [vmem:[%s278_s22 + $0x18] sm:$0xff]  ;;  %s273_s29 = scalar_lea.vmem %s705_s0, %s550_s26  ;;  %s291_s6 = scalar_lea.vmem %s708_s3, %s675_s19 }
  0x10   : > { %324 = vperm.xlu1 %590, %v310_v1   ;;  %314 = vperm.xlu0 %589, %v308_v2   ;;  %v309_v4 = vld [vmem:[%s278_s22 + $0x8] sm:$0xff]  ;;  %v336_v6 = vld [vmem:[%s283_s25] sm:$0xff]  ;;  %v339_v7 = vld [vmem:[%s283_s25 + $0x18] sm:$0xff]  ;;  %s299_s9 = scalar_lea.vmem %s709_s4, %s675_s19 }
  0x11   : > { %v337_v5 = vld [vmem:[%s283_s25 + $0x8] sm:$0xff]  ;;  %v338_v8 = vld [vmem:[%s283_s25 + $0x10] sm:$0xff]  ;;  %v556_v11 = vld [vmem:[%s273_s29] sm:$0xff]  }
  0x12   : > { %v557_v12 = vunpack.c.l.bf16 %v556_v11  ;;  %v558_v13 = vunpack.c.h.bf16 %v556_v11  ;;  %v563_v14 = vld [vmem:[%s273_s29 + $0x8] sm:$0xff]   ;;  %v392_v47 = vld [vmem:[%s291_s6] sm:$0xff]  ;;  %v395_v52 = vld [vmem:[%s291_s6 + $0x18] sm:$0xff] }
  0x13   : > { %v561_v17 = vunpack.c.l.bf16 %v563_v14  ;;  %v562_v19 = vunpack.c.h.bf16 %v563_v14  ;;  %v393_v44 = vld [vmem:[%s291_s6 + $0x8] sm:$0xff]  ;;  %v394_v55 = vld [vmem:[%s291_s6 + $0x10] sm:$0xff] }
  0x14   : > { %329 = vperm.xlu1 %590, %v311_v3   ;;  %319 = vperm.xlu0 %589, %v309_v4  }
  0x18   : > { %347 = vperm.xlu1 %590, %v337_v5   ;;  %342 = vperm.xlu0 %589, %v336_v6  }
  0x1c   : > { %357 = vperm.xlu1 %590, %v339_v7   ;;  %352 = vperm.xlu0 %589, %v338_v8  }
  0x8b   : > { %v325_v9 = vpop.permute.xlu1 %324  ;;  %v315_v10 = vpop.permute.xlu0 %314 }
  0x8c   : > { %v332_v18 = vmul.f32 %v557_v12, %v315_v10  ;;  %v334_v25 = vmul.f32 %v561_v17, %v325_v9 }
  0x8f   : > { %v330_v15 = vpop.permute.xlu1 %329  ;;  %v320_v16 = vpop.permute.xlu0 %319 }
  0x90   : > { %v333_v20 = vmul.f32 %v558_v13, %v320_v16  ;;  %v335_v26 = vmul.f32 %v562_v19, %v330_v15 }
  0x93   : > { %v348_v21 = vpop.permute.xlu1 %347  ;;  %v343_v22 = vpop.permute.xlu0 %342 }
  0x94   : > { %v361_v23 = vadd.f32 %v348_v21, %v333_v20  ;;  %v360_v24 = vadd.f32 %v343_v22, %v332_v18 }
  0x96   : > { %v545_v27 = vmul.f32 -1.442695, %v361_v23  ;;  %v544_v28 = vmul.f32 -1.442695, %v360_v24 }
  0x97   : > { %v358_v29 = vpop.permute.xlu1 %357  ;;  %v353_v30 = vpop.permute.xlu0 %352 }
  0x98   : > { %591 = vpow2.f32 %v545_v27  ;;  %v363_v31 = vadd.f32 %v358_v29, %v335_v26  ;;  %v362_v32 = vadd.f32 %v353_v30, %v334_v25 }
  0x99   : > { %593 = vpow2.f32 %v544_v28 }
  0x9a   : > { %v547_v33 = vmul.f32 -1.442695, %v363_v31  ;;  %v546_v34 = vmul.f32 -1.442695, %v362_v32 }
  0x9c   : > { %595 = vpow2.f32 %v547_v33 }
  0x9d   : > { %597 = vpow2.f32 %v546_v34 }
  0xa5   : > { %v592_v35 = vpop.eup %591 }
  0xa6   : > { %v594_v36 = vpop.eup %593  ;;  %v377_v37 = vadd.f32 1.0, %v592_v35 }
  0xa7   : > { %v376_v38 = vadd.f32 1.0, %v594_v36 }
  0xa8   : > { %599 = vrcp.f32 %v377_v37 }
  0xa9   : > { %v596_v39 = vpop.eup %595  ;;  %601 = vrcp.f32 %v376_v38 }
  0xaa   : > { %v598_v40 = vpop.eup %597  ;;  %v379_v41 = vadd.f32 1.0, %v596_v39 }
  0xab   : > { %v378_v42 = vadd.f32 1.0, %v598_v40 }
  0xac   : > { %603 = vrcp.f32 %v379_v41 }
  0xad   : > { %605 = vrcp.f32 %v378_v42 }
  0xb5   : > { %v600_v43 = vpop.eup %599 }
  0xb6   : > { %v602_v45 = vpop.eup %601  ;;  %v389_v46 = vmul.f32 %v600_v43, %v361_v23 }
  0xb7   : > { %v388_v48 = vmul.f32 %v602_v45, %v360_v24 }
  0xb8   : > { %v397_v49 = vadd.f32 %v393_v44, %v389_v46 }
  0xb9   : > { %v604_v50 = vpop.eup %603  ;;  %v396_v51 = vadd.f32 %v392_v47, %v388_v48 }
  0xba   : > { %v606_v53 = vpop.eup %605  ;;  %401 = vst [vmem:[%s299_s9 + $0x8] sm:$0xff] %v397_v49  ;;  %v391_v54 = vmul.f32 %v604_v50, %v363_v31 }
  0xbb   : > { %400 = vst [vmem:[%s299_s9] sm:$0xff] %v396_v51  ;;  %v390_v56 = vmul.f32 %v606_v53, %v362_v32 }
  0xbc   : > { %v399_v57 = vadd.f32 %v395_v52, %v391_v54 }
  0xbd   : > { %v398_v58 = vadd.f32 %v394_v55, %v390_v56 }
  0xbe   : > { %403 = vst [vmem:[%s299_s9 + $0x18] sm:$0xff] %v399_v57 }
  0xbf   : > { %402 = vst [vmem:[%s299_s9 + $0x10] sm:$0xff] %v398_v58 }
  0xc0 PF: > { %s14_s17 = sadd.s32 1, %s629_s17   ;;  %s710_s15 = smov %s625_s16 }
  0xc1   : > { %p11_p5 = scmp.ge.s32.totalorder %s14_s17, 4   ;;  %s711_s16 = smov %s713_s18 }
  0xc3   :  { %13 = sbr.rel (!%p11_p5) target bundleno = 2 (0x2), region = 75 }

// kernel: spe_mamba_forward.2
= control target key start
LH: loop header
LB: loop body
LE: loop exit
PB: predicated region body
PF: predicated region fallthrough
CT: control target
= control target key end

     0   :  { %s6405_s13 = smov 0   ;;  %s6407_s14 = smov 0   ;;  %s9144_s0 = inlined_call_operand.vmem [shape: f32[2,32,128], index: 0, kind: input, shape index: {}]   ;;  %s9145_s1 = inlined_call_operand.vmem [shape: bf16[128,32], index: 1, kind: input, shape index: {}]   ;;  %s9146_s2 = inlined_call_operand.vmem [shape: f32[8,4], index: 2, kind: input, shape index: {}]   ;;  %s9147_s3 = inlined_call_operand.vmem [shape: f32[8,1], index: 3, kind: input, shape index: {}]   ;;  %s9148_s4 = inlined_call_operand.vmem [shape: bf16[320,64], index: 4, kind: input, shape index: {}]   ;;  %s9149_s5 = inlined_call_operand.vmem [shape: f32[8,1], index: 5, kind: input, shape index: {}]   ;;  %s9150_s6 = inlined_call_operand.vmem [shape: f32[16,8], index: 6, kind: input, shape index: {}]   ;;  %s9151_s7 = inlined_call_operand.vmem [shape: f32[8,1], index: 7, kind: input, shape index: {}]   ;;  %s9152_s8 = inlined_call_operand.vmem [shape: bf16[32,64], index: 8, kind: input, shape index: {}]   ;;  %s9153_s9 = inlined_call_operand.vmem [shape: bf16[2,32,128], index: 9, kind: output, shape index: {0}]   ;;  %s9154_s10 = inlined_call_operand.vmem [shape: f32[2,1,32,2], index: 10, kind: output, shape index: {1}]  }
   0x1   :  { %s6409_s15 = smov 0  }
   0x2 LB: > { %s33_s16 = sadd.s32 1, %s6338_s14  ;;  %p5666_p0 = scmp.ge.s32.totalorder %s6342_s15, 1  ;;  %s6342_s15 = sphi %s6409_s15, %s21_s15   ;;  %s6338_s14 = sphi %s6407_s14, %s9821_s14   ;;  %s6334_s13 = sphi %s6405_s13, %s9820_s13  }
   0x3   : > { %p35_p1 = scmp.ge.s32.totalorder %s33_s16, 2  ;;  %p336_p2 = scmp.lt.s32.totalorder %s6342_s15, 3 }
   0x5   : > { %s9823_s16 = smov (%p35_p1, %s33_s16), 0  ;;  %p337_p3 = pnand %p5666_p0, %p336_p2 }
   0x7   : > { %340 = sbr.rel (%p337_p3) target bundleno = 1342 (0x53e), region = 56 }
   0xc   : > { %p389_p4 = scmp.lt.s32.totalorder %s6334_s13, 1  ;;  %v5938_v0 = vld [vmem:[%s9145_s1] sm:$0xff]   ;;  %vm477_vm0 = vcmask 261120   ;;  %v9155_v1 = vlaneseq  ;;  %v6344_v2 = vmov 0   ;;  %v6345_v4 = vmov 1   ;;  %v5939_v16 = vld [vmem:[%s9145_s1 + $0x8] sm:$0xff]  }
   0xd   : > { %5818 = vmatprep.mubr.msk.bf16.mxu0 %vm477_vm0, %v5938_v0  ;;  %5932 = vset.pattern.permute.xlu0 %v6344_v2  ;;  %v599_v3 = vld [vmem:[%s9146_s2] sm:$0xff]  ;;  %v6346_v15 = vmov 2   ;;  %v5940_v19 = vld [vmem:[%s9145_s1 + $0x10] sm:$0xff]   ;;  %v6347_v20 = vmov 3   ;;  %v5941_v22 = vld [vmem:[%s9145_s1 + $0x18] sm:$0xff]   ;;  %vm875_vm1 = vcmask 523264  }
   0xe   : > { %s9825_s13 = smov (!%p389_p4, %s6334_s13), 1  ;;  %653 = vperm.xlu0 %5932, %v599_v3   ;;  %5933 = vset.pattern.permute.xlu1 %v6345_v4  ;;  %v600_v5 = vld [vmem:[%s9147_s3] sm:$0xff]  ;;  %v6442_v6 = vshrl.u32 %v9155_v1, 7  ;;  %v6478_v28 = vld [vmem:[%s9150_s6 + $0x8] sm:$0xff]  ;;  %v5944_v36 = vld [vmem:[%s9145_s1 + $0x30] sm:$0xff]  }
   0xf   : > { %s5756_s19 = sshll.u32 %s9825_s13, 5  ;;  %636 = vperm.xlu1 %5933, %v599_v3   ;;  %v1243_v17 = vld [vmem:[%s9149_s5] sm:$0xff]  ;;  %v5943_v35 = vld [vmem:[%s9145_s1 + $0x28] sm:$0xff]   ;;  %v5945_v37 = vld [vmem:[%s9145_s1 + $0x38] sm:$0xff]   ;;  %s5757_s17 = sshll.u32 %s9825_s13, 4 }
  0x10   : > { %s396_s24 = scalar_lea.vmem %s9144_s0, %s5756_s19  ;;  %v6445_v13 = vsub.s32 0, %v6442_v6  ;;  %v1147_v14 = vsub.s32 2, %v6442_v6  ;;  %v6457_v18 = vld [vmem:[%s9150_s6] sm:$0xff]  ;;  %v1161_v24 = vsub.s32 4, %v6442_v6  ;;  %v1175_v26 = vsub.s32 6, %v6442_v6  ;;  %v5950_v39 = vld [vmem:[%s9148_s4 + $0x30] sm:$0xff]   ;;  %s404_s21 = scalar_lea.vmem %s9153_s9, %s5757_s17 }
  0x11   : > { %v417_v7 = vld [vmem:[%s396_s24 + $0x10] sm:$0xff]  ;;  %v418_v8 = vld [vmem:[%s396_s24 + $0x18] sm:$0xff]  ;;  %v415_v9 = vld [vmem:[%s396_s24] sm:$0xff]  ;;  %5854 = vmatprep.mubr.msk.bf16.mxu1 %vm875_vm1, %v5950_v39  ;;  %v1140_v41 = vsub.s32 1, %v6442_v6  ;;  %v1154_v42 = vsub.s32 3, %v6442_v6  ;;  %v1168_v47 = vsub.s32 5, %v6442_v6 }
  0x12   : > { %v436_v10 = vpack.c.bf16 %v418_v8, %v417_v7  ;;  %v416_v11 = vld [vmem:[%s396_s24 + $0x8] sm:$0xff]  ;;  %609 = vperm.xlu0 %5932, %v600_v5   ;;  %v1134_v21 = vrot.slane %v6457_v18, %v6445_v13  ;;  %v1148_v23 = vrot.slane %v6457_v18, %v1147_v14  ;;  %v1162_v25 = vrot.slane %v6457_v18, %v1161_v24  ;;  %v1244_v33 = vld [vmem:[%s9151_s7] sm:$0xff]  ;;  %s413_s24 = scalar_lea.vmem %s9154_s10, %s5756_s19 }
  0x13   : > { %v435_v12 = vpack.c.bf16 %v416_v11, %v415_v9  ;;  %5934 = vset.pattern.permute.xlu1 %v6346_v15  ;;  %v1176_v27 = vrot.slane %v6457_v18, %v1175_v26  ;;  %v1190_v29 = vrot.slane %v6478_v28, %v6445_v13  ;;  %v1204_v30 = vrot.slane %v6478_v28, %v1147_v14  ;;  %v5942_v34 = vld [vmem:[%s9145_s1 + $0x20] sm:$0xff]  }
  0x14   : > { %5814 = vmatprep.subr.bf16.mxu0 %v436_v10  ;;  %621 = vperm.xlu1 %5934, %v599_v3   ;;  %v1218_v31 = vrot.slane %v6478_v28, %v1161_v24  ;;  %v1232_v32 = vrot.slane %v6478_v28, %v1175_v26  ;;  %v5946_v38 = vld [vmem:[%s9148_s4] sm:$0xff]   ;;  %v1141_v43 = vrot.slane %v6457_v18, %v1140_v41  ;;  %v1182_v50 = vsub.s32 7, %v6442_v6 }
  0x15   : > { %5815 = vmatpush3.bf16.msra.mxu0 %v436_v10  ;;  %v1155_v46 = vrot.slane %v6457_v18, %v1154_v42  ;;  %v1169_v53 = vrot.slane %v6457_v18, %v1168_v47  ;;  %v1211_v14 = vrot.slane %v6478_v28, %v1154_v42 }
  0x16   : > { %5816 = vmatprep.subr.bf16.mxu0 %v435_v12  ;;  %5935 = vset.pattern.permute.xlu0 %v6347_v20  ;;  %v1183_v56 = vrot.slane %v6457_v18, %v1182_v50 }
  0x17   : > { %603 = vperm.xlu0 %5935, %v599_v3   ;;  %v1197_v3 = vrot.slane %v6478_v28, %v1140_v41 }
  0x18   : > { %5936 = vset.pattern.permute.xlu1 %v6344_v2 }
  0x19   : > { %5817 = vmatpush3.bf16.msra.mxu0 %v435_v12  ;;  %1247 = vperm.xlu1 %5936, %v1243_v17  }
  0x1b   : > { %5937 = vset.pattern.permute.xlu0 %v6344_v2 }
  0x1c   : > { %5819 = vmatmul.mubr.msk.bf16.vlgmr.msra.gmra.mxu0 %vm477_vm0, %v5939_v16  ;;  %1143 = vbcast.lane.b32.xlu0 %v1141_v43, 256 }
  0x1d   : > { %5822 = vmatprep.mubr.msk.bf16.mxu0 %vm477_vm0, %v5940_v19  ;;  %1136 = vbcast.lane.b32.xlu1 %v1134_v21, 256 }
  0x20   : > { %1157 = vbcast.lane.b32.xlu0 %v1155_v46, 256 }
  0x21   : > { %1150 = vbcast.lane.b32.xlu1 %v1148_v23, 256 }
  0x24   : > { %5823 = vmatmul.mubr.msk.bf16.gmra.mxu0 %vm477_vm0, %v5941_v22  ;;  %1171 = vbcast.lane.b32.xlu0 %v1169_v53, 256 }
  0x25   : > { %1164 = vbcast.lane.b32.xlu1 %v1162_v25, 256  ;;  %5826 = vmatprep.mubr.msk.bf16.mxu0 %vm477_vm0, %v5942_v34 }
  0x28   : > { %1185 = vbcast.lane.b32.xlu0 %v1183_v56, 256 }
  0x29   : > { %1178 = vbcast.lane.b32.xlu1 %v1176_v27, 256 }
  0x2c   : > { %5827 = vmatmul.mubr.msk.bf16.gmra.mxu0 %vm477_vm0, %v5943_v35  ;;  %1199 = vbcast.lane.b32.xlu0 %v1197_v3, 256 }
  0x2d   : > { %1192 = vbcast.lane.b32.xlu1 %v1190_v29, 256  ;;  %5830 = vmatprep.mubr.msk.bf16.mxu0 %vm477_vm0, %v5944_v36 }
  0x30   : > { %1213 = vbcast.lane.b32.xlu0 %v1211_v14, 256 }
  0x31   : > { %1206 = vbcast.lane.b32.xlu1 %v1204_v30, 256 }
  0x34   : > { %5831 = vmatmul.mubr.msk.bf16.gmra.mxu0 %vm477_vm0, %v5945_v37 }
  0x35   : > { %1220 = vbcast.lane.b32.xlu1 %v1218_v31, 256  ;;  %5842 = vmatprep.mubr.msk.bf16.mxu0 %vm875_vm1, %v5946_v38 }
  0x39   : > { %1234 = vbcast.lane.b32.xlu1 %v1232_v32, 256 }
  0x3d   : > { %1759 = vperm.xlu1 %5936, %v1244_v33  }
  0x89   : > { %v654_v40 = vpop.permute.xlu0 %653 }
  0x8a   : > { %v637_v44 = vpop.permute.xlu1 %636 }
  0x8d   : > { %v6517_v48 = vpop.permute.xlu0 %609 }
  0x8f   : > { %v622_v54 = vpop.permute.xlu1 %621 }
  0x92   : > { %v604_v57 = vpop.permute.xlu0 %603 }
  0xdc   : > { %v5820_v45 = vpop.f32.mrf.mxu0 }
  0xdd   : > { %v686_v58 = vmul.f32 %v5820_v45, %v654_v40  ;;  %v660_v62 = vmul.f32 %v5820_v45, %v622_v54  ;;  %v643_v9 = vmul.f32 %v5820_v45, %v604_v57  ;;  %v673_v10 = vmul.f32 %v5820_v45, %v637_v44 }
  0xde   : > { %v536_v49 = vpop.f32.mrf.mxu0 }
  0xdf   : > { %v656_v51 = vmul.f32 %v654_v40, %v536_v49  ;;  %v639_v59 = vmul.f32 %v637_v44, %v536_v49  ;;  %v624_v63 = vmul.f32 %v622_v54, %v536_v49  ;;  %v687_v15 = vadd.f32 %v686_v58, %v6517_v48 }
  0xe0   : > { %v5821_v52 = vpop.f32.mrf.mxu0 }
  0xe1   : > { %v657_v60 = vadd.f32 %v656_v51, %v6517_v48  ;;  %v688_v4 = vmul.f32 %v5821_v52, %v637_v44  ;;  %v701_v5 = vmul.f32 %v5821_v52, %v654_v40  ;;  %v640_v16 = vadd.f32 %v639_v59, %v6517_v48 }
  0xe2   : > { %v539_v55 = vpop.f32.mrf.mxu0  ;;  %v675_v17 = vmul.f32 %v5821_v52, %v622_v54  ;;  %v625_v24 = vadd.f32 %v624_v63, %v6517_v48  ;;  %v662_v29 = vmul.f32 %v5821_v52, %v604_v57  ;;  %v606_v51 = vmul.f32 %v604_v57, %v536_v49 }
  0xe3   : > { %v658_v61 = vmul.f32 %v637_v44, %v539_v55  ;;  %v671_v0 = vmul.f32 %v654_v40, %v539_v55  ;;  %v641_v7 = vmul.f32 %v622_v54, %v539_v55  ;;  %v689_v25 = vadd.f32 %v688_v4, %v687_v15 }
  0xe4   : > { %v5824_v2 = vpop.f32.mrf.mxu0  ;;  %v702_v26 = vadd.f32 %v701_v5, %v6517_v48  ;;  %v626_v30 = vmul.f32 %v604_v57, %v539_v55  ;;  %v6550_v63 = vadd.f32 %v6517_v48, %v606_v51  ;;  %v5954_v51 = vld [vmem:[%s9148_s4 + $0x20] sm:$0xff]  }
  0xe5   : > { %v659_v8 = vadd.f32 %v658_v61, %v657_v60  ;;  %v672_v11 = vadd.f32 %v671_v0, %v6517_v48  ;;  %v642_v27 = vadd.f32 %v641_v7, %v640_v16  ;;  %v707_v43 = vmul.f32 %v5824_v2, %v604_v57 }
  0xe6   : > { %v552_v12 = vpop.f32.mrf.mxu0  ;;  %v720_v52 = vmul.f32 %v5824_v2, %v622_v54  ;;  %v6542_v56 = vadd.f32 %v626_v30, %v625_v24  ;;  %v1225_v60 = vrot.slane %v6478_v28, %v1168_v47  ;;  %v1239_v47 = vrot.slane %v6478_v28, %v1182_v50 }
  0xe7   : > { %v661_v18 = vadd.f32 %v660_v62, %v659_v8  ;;  %v674_v19 = vadd.f32 %v673_v10, %v672_v11  ;;  %v690_v20 = vmul.f32 %v622_v54, %v552_v12  ;;  %v703_v21 = vmul.f32 %v637_v44, %v552_v12 }
  0xe8   : > { %v716_v22 = vmul.f32 %v654_v40, %v552_v12  ;;  %v5825_v23 = vpop.f32.mrf.mxu0  ;;  %v677_v32 = vmul.f32 %v604_v57, %v552_v12  ;;  %v6539_v42 = vadd.f32 %v643_v9, %v642_v27  ;;  %v5690_v2 = vmul.f32 -1.442695, %v6542_v56  ;;  %1227 = vbcast.lane.b32.xlu0 %v1225_v60, 256  ;;  %v5961_v60 = vld [vmem:[%s9148_s4 + $0x78] sm:$0xff]  }
  0xe9   : > { %v676_v31 = vadd.f32 %v675_v17, %v674_v19  ;;  %v691_v34 = vadd.f32 %v690_v20, %v689_v25  ;;  %v704_v36 = vadd.f32 %v703_v21, %v702_v26  ;;  %v6534_v38 = vadd.f32 %v662_v29, %v661_v18 }
  0xea   : > { %v555_v33 = vpop.f32.mrf.mxu0  ;;  %v717_v40 = vadd.f32 %v716_v22, %v6517_v48  ;;  %v722_v61 = vmul.f32 %v5825_v23, %v604_v57  ;;  %v5691_v49 = vmul.f32 -1.442695, %v6539_v42 }
  0xeb   : > { %v692_v35 = vmul.f32 %v604_v57, %v555_v33  ;;  %v705_v37 = vmul.f32 %v622_v54, %v555_v33  ;;  %v6536_v39 = vadd.f32 %v677_v32, %v676_v31  ;;  %v718_v41 = vmul.f32 %v637_v44, %v555_v33 }
  0xec   : > { %v5692_v44 = vmul.f32 -1.442695, %v6534_v38  ;;  %v5689_v57 = vmul.f32 -1.442695, %v6550_v63  ;;  %1241 = vbcast.lane.b32.xlu0 %v1239_v47, 256 }
  0xed   : > { %v693_v45 = vadd.f32 %v692_v35, %v691_v34  ;;  %v706_v46 = vadd.f32 %v705_v37, %v704_v36  ;;  %v5693_v53 = vmul.f32 -1.442695, %v6536_v39  ;;  %v719_v55 = vadd.f32 %v718_v41, %v717_v40  ;;  %v5947_v40 = vld [vmem:[%s9148_s4 + $0x8] sm:$0xff]   ;;  %v5951_v41 = vld [vmem:[%s9148_s4 + $0x38] sm:$0xff]  }
  0xef   : > { %v5694_v58 = vmul.f32 -1.442695, %v693_v45  ;;  %v708_v59 = vadd.f32 %v707_v43, %v706_v46  ;;  %5968 = vpow2.f32 %v5693_v53  ;;  %v721_v62 = vadd.f32 %v720_v52, %v719_v55  ;;  %v5952_v43 = vld [vmem:[%s9148_s4 + $0x40] sm:$0xff]   ;;  %v5953_v46 = vld [vmem:[%s9148_s4 + $0x48] sm:$0xff]   ;;  %v5956_v52 = vld [vmem:[%s9148_s4 + $0x50] sm:$0xff]  }
  0xf0   : > { %v5955_v53 = vld [vmem:[%s9148_s4 + $0x28] sm:$0xff]   ;;  %v5957_v55 = vld [vmem:[%s9148_s4 + $0x58] sm:$0xff]  }
  0xf1   : > { %5970 = vpow2.f32 %v5694_v58  ;;  %v5695_v54 = vmul.f32 -1.442695, %v708_v59  ;;  %v723_v0 = vadd.f32 %v722_v61, %v721_v62  ;;  %v5959_v58 = vld [vmem:[%s9148_s4 + $0x68] sm:$0xff]   ;;  %v5964_v62 = vld [vmem:[%s9148_s4 + $0x90] sm:$0xff]  }
  0xf2   : > { %v5963_v61 = vld [vmem:[%s9148_s4 + $0x88] sm:$0xff]  }
  0xf3   : > { %5972 = vpow2.f32 %v5695_v54  ;;  %v5696_v3 = vmul.f32 -1.442695, %v723_v0  ;;  %v6658_v54 = vpop.f32.mrf.mxu0 }
  0xf4   : > { %5974 = vpow2.f32 %v5692_v44  ;;  %v5962_v44 = vld [vmem:[%s9148_s4 + $0x80] sm:$0xff]  }
  0xf5   : > { %5976 = vpow2.f32 %v5691_v49  ;;  %v5965_v49 = vld [vmem:[%s9148_s4 + $0x98] sm:$0xff]  }
  0xf6   : > { %5978 = vpow2.f32 %v5696_v3  ;;  %v5739_v3 = vmul.f32 -1.442695, %v6658_v54 }
  0xf7   : > { %5980 = vpow2.f32 %v5690_v2 }
  0xf8   : > { %5982 = vpow2.f32 %v5689_v57 }
  0xfc   : > { %v5969_v48 = vpop.eup %5968 }
  0xfd   : > { %v682_v9 = vadd.f32 1.0, %v5969_v48 }
  0xfe   : > { %v5971_v4 = vpop.eup %5970 }
  0xff   : > { %v697_v5 = vadd.f32 1.0, %v5971_v4 }
 0x100   : > { %v5973_v7 = vpop.eup %5972 }
 0x101   : > { %v5975_v8 = vpop.eup %5974  ;;  %v712_v10 = vadd.f32 1.0, %v5973_v7  ;;  %5984 = vrcp.f32 %v697_v5 }
 0x102   : > { %v5977_v11 = vpop.eup %5976  ;;  %v667_v14 = vadd.f32 1.0, %v5975_v8 }
 0x103   : > { %v5979_v12 = vpop.eup %5978  ;;  %5986 = vrcp.f32 %v712_v10  ;;  %v648_v15 = vadd.f32 1.0, %v5977_v11 }
 0x104   : > { %v727_v28 = vadd.f32 1.0, %v5979_v12  ;;  %v5981_v50 = vpop.eup %5980  ;;  %5988 = vrcp.f32 %v682_v9 }
 0x105   : > { %v5983_v16 = vpop.eup %5982  ;;  %v631_v17 = vadd.f32 1.0, %v5981_v50 }
 0x106   : > { %5990 = vrcp.f32 %v727_v28  ;;  %v616_v18 = vadd.f32 1.0, %v5983_v16 }
 0x107   : > { %5992 = vrcp.f32 %v667_v14 }
 0x108   : > { %5994 = vrcp.f32 %v648_v15 }
 0x109   : > { %5996 = vrcp.f32 %v631_v17  ;;  %v1248_v17 = vpop.permute.xlu1 %1247 }
 0x10a   : > { %5998 = vrcp.f32 %v616_v18 }
 0x10b   : > { %6000 = vpow2.f32 %v5739_v3 }
 0x10e   : > { %v5985_v19 = vpop.eup %5984 }
 0x10f   : > { %v6557_v23 = vmul.f32 %v5985_v19, %v693_v45  ;;  %v5949_v45 = vld [vmem:[%s9148_s4 + $0x18] sm:$0xff]  }
 0x110   : > { %v5987_v20 = vpop.eup %5986 }
 0x111   : > { %v5989_v21 = vpop.eup %5988  ;;  %9285 = vst [vmem:[#allocation2_spill] sm:$0xff] %v6557_v23  ;;  %v6559_v24 = vmul.f32 %v5987_v20, %v708_v59  ;;  %v5960_v59 = vld [vmem:[%s9148_s4 + $0x70] sm:$0xff]  }
 0x112   : > { %v6564_v27 = vmul.f32 %v5989_v21, %v6536_v39 }
 0x113   : > { %v5991_v22 = vpop.eup %5990  ;;  %9286 = vst [vmem:[#allocation3_spill] sm:$0xff] %v6559_v24 }
 0x114   : > { %v6561_v25 = vmul.f32 %v5991_v22, %v723_v0  ;;  %v5993_v26 = vpop.eup %5992  ;;  %9288 = vst [vmem:[#allocation5_spill] sm:$0xff] %v6564_v27  ;;  %v773_v31 = vpack.c.bf16 %v6557_v23, %v6564_v27 }
 0x115   : > { %v5995_v30 = vpop.eup %5994  ;;  %v6571_v32 = vmul.f32 %v5993_v26, %v6534_v38 }
 0x116   : > { %9287 = vst [vmem:[#allocation4_spill] sm:$0xff] %v6561_v25  ;;  %v774_v29 = vpack.c.bf16 %v6561_v25, %v6559_v24  ;;  %v5997_v33 = vpop.eup %5996  ;;  %v6574_v34 = vmul.f32 %v5995_v30, %v6539_v42  ;;  %v5948_v42 = vld [vmem:[%s9148_s4 + $0x10] sm:$0xff]  }
 0x117   : > { %9289 = vst [vmem:[#allocation6_spill] sm:$0xff] %v6571_v32  ;;  %v5999_v35 = vpop.eup %5998  ;;  %v6577_v36 = vmul.f32 %v5997_v33, %v6542_v56  ;;  %v5958_v56 = vld [vmem:[%s9148_s4 + $0x60] sm:$0xff]  }
 0x118   : > { %5834 = vmatprep.subr.bf16.mxu0 %v774_v29  ;;  %5894 = vmatprep.subr.bf16.mxu1 %v774_v29  ;;  %9290 = vst [vmem:[#allocation7_spill] sm:$0xff] %v6574_v34  ;;  %v772_v37 = vpack.c.bf16 %v6571_v32, %v6574_v34  ;;  %v6582_v38 = vmul.f32 %v5999_v35, %v6550_v63  ;;  %v6660_v63 = vpop.f32.mrf.mxu0  ;;  %v6001_v12 = vpop.eup %6000 }
 0x119   : > { %5835 = vmatpush3.bf16.msra.mxu0 %v774_v29  ;;  %5898 = vmatpush3.bf16.msra.mxu1 %v774_v29  ;;  %9291 = vst [vmem:[#allocation8_spill] sm:$0xff] %v6577_v36  ;;  %v5737_v47 = vmul.f32 -1.442695, %v6660_v63  ;;  %v2801_v16 = vadd.f32 1.0, %v6001_v12 }
 0x11a   : > { %5836 = vmatprep.subr.bf16.mxu0 %v773_v31  ;;  %5895 = vmatprep.subr.bf16.mxu1 %v773_v31  ;;  %9292 = vst [vmem:[#allocation9_spill] sm:$0xff] %v6582_v38  ;;  %v771_v39 = vpack.c.bf16 %v6577_v36, %v6582_v38  ;;  %v6662_v0 = vpop.f32.mrf.mxu0 }
 0x11b   : > { %v5740_v57 = vmul.f32 -1.442695, %v6662_v0  ;;  %6002 = vpow2.f32 %v5737_v47 }
 0x11c   : > { %v6664_v2 = vpop.f32.mrf.mxu0 }
 0x11d   : > { %5837 = vmatpush3.bf16.msra.mxu0 %v773_v31  ;;  %5899 = vmatpush3.bf16.msra.mxu1 %v773_v31  ;;  %v5738_v48 = vmul.f32 -1.442695, %v6664_v2  ;;  %6004 = vpow2.f32 %v5740_v57  ;;  %v6348_v31 = vmov 1966171168  }
 0x11e   : > { %5838 = vmatprep.subr.bf16.mxu0 %v772_v37  ;;  %5896 = vmatprep.subr.bf16.mxu1 %v772_v37  ;;  %v6670_v4 = vpop.f32.mrf.mxu0  ;;  %v1338_v33 = vunpack.c.l.s4 %v6348_v31 }
 0x11f   : > { %9293 = vst [vmem:[#allocation10_spill] sm:$0xff] %v6670_v4  ;;  %6006 = vpow2.f32 %v5738_v48  ;;  %v5743_v7 = vmul.f32 -1.442695, %v6670_v4 }
 0x120   : > { %v6672_v5 = vpop.f32.mrf.mxu0 }
 0x121   : > { %5839 = vmatpush3.bf16.msra.mxu0 %v772_v37  ;;  %5900 = vmatpush3.bf16.msra.mxu1 %v772_v37  ;;  %9294 = vst [vmem:[#allocation11_spill] sm:$0xff] %v6672_v5  ;;  %v5741_v9 = vmul.f32 -1.442695, %v6672_v5  ;;  %6008 = vpow2.f32 %v5743_v7 }
 0x122   : > { %5840 = vmatprep.subr.bf16.mxu0 %v771_v39  ;;  %5897 = vmatprep.subr.bf16.mxu1 %v771_v39  ;;  %v6675_v8 = vpop.f32.mrf.mxu0 }
 0x123   : > { %9295 = vst [vmem:[#allocation12_spill] sm:$0xff] %v6675_v8  ;;  %v5744_v10 = vmul.f32 -1.442695, %v6675_v8  ;;  %6010 = vpow2.f32 %v5741_v9 }
 0x124   : > { %v6679_v11 = vpop.f32.mrf.mxu0 }
 0x125   : > { %5841 = vmatpush3.bf16.msra.mxu0 %v771_v39  ;;  %5901 = vmatpush3.bf16.msra.mxu1 %v771_v39  ;;  %9296 = vst [vmem:[#allocation13_spill] sm:$0xff] %v6679_v11  ;;  %6012 = vpow2.f32 %v5744_v10  ;;  %v5742_v28 = vmul.f32 -1.442695, %v6679_v11 }
 0x127   : > { %6014 = vpow2.f32 %v5742_v28 }
 0x128   : > { %5843 = vmatmul.mubr.msk.bf16.vlgmr.msra.gmra.mxu0 %vm875_vm1, %v5947_v40  ;;  %5855 = vmatmul.mubr.msk.bf16.vlgmr.msra.gmra.mxu1 %vm875_vm1, %v5951_v41  ;;  %v6003_v14 = vpop.eup %6002  ;;  %6016 = vrcp.f32 %v2801_v16 }
 0x129   : > { %5846 = vmatprep.mubr.msk.bf16.mxu0 %vm875_vm1, %v5948_v42  ;;  %5858 = vmatprep.mubr.msk.bf16.mxu1 %vm875_vm1, %v5952_v43  ;;  %v1767_v18 = vadd.f32 1.0, %v6003_v14 }
 0x12a   : > { %v6005_v50 = vpop.eup %6004 }
 0x12b   : > { %v3318_v20 = vadd.f32 1.0, %v6005_v50  ;;  %6018 = vrcp.f32 %v1767_v18 }
 0x12c   : > { %v6007_v15 = vpop.eup %6006 }
 0x12d   : > { %v2284_v22 = vadd.f32 1.0, %v6007_v15  ;;  %6020 = vrcp.f32 %v3318_v20 }
 0x12e   : > { %v6009_v37 = vpop.eup %6008 }
 0x12f   : > { %6022 = vrcp.f32 %v2284_v22 }
 0x130   : > { %5847 = vmatmul.mubr.msk.bf16.gmra.mxu0 %vm875_vm1, %v5949_v45  ;;  %5859 = vmatmul.mubr.msk.bf16.gmra.mxu1 %vm875_vm1, %v5953_v46 }
 0x131   : > { %5850 = vmatprep.mubr.msk.bf16.mxu0 %vm875_vm1, %v5954_v51  ;;  %5862 = vmatprep.mubr.msk.bf16.mxu1 %vm875_vm1, %v5956_v52  ;;  %v1339_v51 = vunpack.c.0.s8 %v1338_v33  ;;  %v6011_v52 = vpop.eup %6010 }
 0x132   : > { %v3835_v47 = vadd.f32 1.0, %v6011_v52 }
 0x133   : > { %v6699_v48 = vsub.s32 %v1339_v51, %v6442_v6 }
 0x138   : > { %5851 = vmatmul.mubr.msk.bf16.gmra.mxu0 %vm875_vm1, %v5955_v53  ;;  %5863 = vmatmul.mubr.msk.bf16.gmra.mxu1 %vm875_vm1, %v5957_v55  ;;  %v4869_v53 = vadd.f32 1.0, %v6009_v37 }
 0x139   : > { %5866 = vmatprep.mubr.msk.bf16.mxu1 %vm875_vm1, %v5958_v56 }
 0x140   : > { %5867 = vmatmul.mubr.msk.bf16.gmra.mxu1 %vm875_vm1, %v5959_v58 }
 0x141   : > { %5870 = vmatprep.mubr.msk.bf16.mxu1 %vm875_vm1, %v5960_v59 }
 0x148   : > { %5871 = vmatmul.mubr.msk.bf16.gmra.mxu1 %vm875_vm1, %v5961_v60  ;;  %v6013_v60 = vpop.eup %6012 }
 0x149   : > { %5874 = vmatprep.mubr.msk.bf16.mxu1 %vm875_vm1, %v5962_v44  ;;  %v5386_v12 = vadd.f32 1.0, %v6013_v60  ;;  %v6015_v15 = vpop.eup %6014 }
 0x150   : > { %5875 = vmatmul.mubr.msk.bf16.gmra.mxu1 %vm875_vm1, %v5963_v61 }
 0x151   : > { %5878 = vmatprep.mubr.msk.bf16.mxu1 %vm875_vm1, %v5964_v62 }
 0x158   : > { %5879 = vmatmul.mubr.msk.bf16.gmra.mxu1 %vm875_vm1, %v5965_v49 }
 0x1e8   : > { %v5844_v19 = vpop.f32.mrf.mxu0  ;;  %v5856_v59 = vpop.f32.mrf.mxu1 }
 0x1e9   : > { %v6682_v21 = vadd.f32 %v5844_v19, %v1248_v17  ;;  %v2892_v3 = vcombine.high %v5856_v59, %v5856_v59  ;;  %v2899_v50 = vrot.slane %v5856_v59, %v6699_v48 }
 0x1ea   : > { %v970_v26 = vpop.f32.mrf.mxu0 }
 0x1eb   : > { %v2293_v29 = vand.u32 2147483647, %v6682_v21  ;;  %v6685_v30 = vadd.f32 %v1248_v17, %v970_v26  ;;  %v2906_v6 = vrot.slane %v2892_v3, %v6699_v48  ;;  %v1018_v3 = vpop.f32.mrf.mxu1  ;;  %vm2291_vm5 = vcmp.ne.f32.partialorder %v6682_v21, %v6682_v21 }
 0x1ec   : > { %v5845_v35 = vpop.f32.mrf.mxu0 }
 0x1ed   : > { %v2294_v39 = vsub.f32 0.0, %v2293_v29  ;;  %v1254_v40 = vand.u32 2147483647, %v6685_v30  ;;  %v6688_v41 = vadd.f32 %v5845_v35, %v1248_v17  ;;  %v6017_v29 = vpop.eup %6016  ;;  %v4352_v35 = vadd.f32 1.0, %v6015_v15 }
 0x1ee   : > { %v973_v42 = vpop.f32.mrf.mxu0  ;;  %v6019_v33 = vpop.eup %6018  ;;  %v2908_v51 = vcombine.high %v2906_v6, %v2906_v6  ;;  %vm1252_vm9 = vcmp.ne.f32.partialorder %v6685_v30, %v6685_v30 }
 0x1ef   : > { %v2295_v43 = vmul.f32 1.442695, %v2294_v39  ;;  %v1255_v45 = vsub.f32 0.0, %v1254_v40  ;;  %v6690_v46 = vadd.f32 %v1248_v17, %v973_v42  ;;  %v2810_v55 = vand.u32 2147483647, %v6688_v41  ;;  %v6021_v42 = vpop.eup %6020 }
 0x1f0   : > { %v5848_v56 = vpop.f32.mrf.mxu0  ;;  %v2907_v40 = vcombine.high %v2899_v50, %v2899_v50  ;;  %v6023_v52 = vpop.eup %6022  ;;  %v6721_v59 = vmul.f32 %v6021_v42, %v6662_v0  ;;  %vm2808_vm6 = vcmp.ne.f32.partialorder %v6688_v41, %v6688_v41 }
 0x1f1   : > { %6024 = vpow2.f32 %v2295_v43  ;;  %v1256_v58 = vmul.f32 1.442695, %v1255_v45  ;;  %v2811_v44 = vsub.f32 0.0, %v2810_v55  ;;  %v1776_v61 = vand.u32 2147483647, %v6690_v46 }
 0x1f2   : > { %v6694_v62 = vadd.f32 %v5848_v56, %v1248_v17  ;;  %v986_v49 = vpop.f32.mrf.mxu0  ;;  %v6715_v56 = vrot.slane %v2899_v50, %v6699_v48  ;;  %9299 = vst [vmem:[#allocation16_spill] sm:$0xff] %v6721_v59  ;;  %v6724_v60 = vrot.slane %v2907_v40, %v6699_v48  ;;  %vm1774_vm7 = vcmp.ne.f32.partialorder %v6690_v46, %v6690_v46 }
 0x1f3   : > { %6026 = vpow2.f32 %v1256_v58  ;;  %v6696_v57 = vadd.f32 %v1248_v17, %v986_v49  ;;  %v2812_v7 = vmul.f32 1.442695, %v2811_v44  ;;  %v1777_v9 = vsub.f32 0.0, %v1776_v61 }
 0x1f4   : > { %6028 = vrcp.f32 %v4869_v53  ;;  %v5849_v10 = vpop.f32.mrf.mxu0  ;;  %v4361_v14 = vand.u32 2147483647, %v6694_v62  ;;  %v6712_v53 = vmul.f32 %v6017_v29, %v6658_v54  ;;  %v6718_v58 = vmul.f32 %v6019_v33, %v6660_v63 }
 0x1f5   : > { %v3327_v28 = vand.u32 2147483647, %v6696_v57  ;;  %6030 = vpow2.f32 %v2812_v7  ;;  %v1778_v16 = vmul.f32 1.442695, %v1777_v9  ;;  %v6704_v18 = vadd.f32 %v5849_v10, %v1248_v17 }
 0x1f6   : > { %v989_v19 = vpop.f32.mrf.mxu0  ;;  %6032 = vrcp.f32 %v3835_v47  ;;  %v4362_v20 = vsub.f32 0.0, %v4361_v14  ;;  %9297 = vst [vmem:[#allocation14_spill] sm:$0xff] %v6712_v53  ;;  %9298 = vst [vmem:[#allocation15_spill] sm:$0xff] %v6718_v58  ;;  %v6729_v61 = vrot.slane %v2906_v6, %v6699_v48  ;;  %v6732_v49 = vrot.slane %v2908_v51, %v6699_v48 }
 0x1f7   : > { %v3328_v22 = vsub.f32 0.0, %v3327_v28  ;;  %v6707_v26 = vadd.f32 %v1248_v17, %v989_v19  ;;  %6034 = vpow2.f32 %v1778_v16  ;;  %v4878_v31 = vand.u32 2147483647, %v6704_v18 }
 0x1f8   : > { %v4363_v37 = vmul.f32 1.442695, %v4362_v20  ;;  %6036 = vrcp.f32 %v5386_v12  ;;  %v6735_v63 = vmul.f32 %v6023_v52, %v6664_v2  ;;  %v2375_v7 = vcombine.high %v1018_v3, %v1018_v3 }
 0x1f9   : > { %v3329_v39 = vmul.f32 1.442695, %v3328_v22  ;;  %v4879_v43 = vsub.f32 0.0, %v4878_v31  ;;  %v3844_v45 = vand.u32 2147483647, %v6707_v26  ;;  %v2937_v14 = vcombine.high %v6715_v56, %v6715_v56 }
 0x1fa   : > { %6038 = vpow2.f32 %v4363_v37  ;;  %9300 = vst [vmem:[#allocation17_spill] sm:$0xff] %v6735_v63  ;;  %v2939_v15 = vcombine.high %v6724_v60, %v6724_v60  ;;  %v2938_v19 = vcombine.high %v6729_v61, %v6729_v61  ;;  %v2940_v6 = vcombine.high %v6732_v49, %v6732_v49 }
 0x1fb   : > { %6040 = vpow2.f32 %v3329_v39  ;;  %v4880_v17 = vmul.f32 1.442695, %v4879_v43  ;;  %v3845_v55 = vsub.f32 0.0, %v3844_v45  ;;  %v2382_v20 = vrot.slane %v1018_v3, %v6699_v48  ;;  %v6771_v45 = vpop.f32.mrf.mxu1 }
 0x1fc   : > { %6042 = vrcp.f32 %v4352_v35  ;;  %v2389_v35 = vrot.slane %v2375_v7, %v6699_v48  ;;  %v6776_v52 = vrot.slane %v2937_v14, %v6445_v13  ;;  %v6790_v14 = vrot.slane %v2938_v19, %v6445_v13 }
 0x1fd   : > { %6044 = vpow2.f32 %v4880_v17  ;;  %v3846_v54 = vmul.f32 1.442695, %v3845_v55  ;;  %v6779_v17 = vrot.slane %v2939_v15, %v6445_v13  ;;  %v6793_v15 = vrot.slane %v2940_v6, %v6445_v13  ;;  %v6800_v31 = vpop.f32.mrf.mxu1 }
 0x1fe   : > { %v6726_v44 = vpop.eup %6024  ;;  %9304 = vst [vmem:[#allocation21_spill] sm:$0xff] %v6790_v14  ;;  %v2391_v1 = vcombine.high %v2389_v35, %v2389_v35  ;;  %v6806_v42 = vrot.slane %v2382_v20, %v6699_v48  ;;  %v6810_v6 = vrot.slane %v6771_v45, %v6699_v48  ;;  %v6819_v3 = vrot.slane %v2389_v35, %v6699_v48 }
 0x1ff   : > { %v2297_v47 = vadd.f32 1.0, %v6726_v44  ;;  %6046 = vpow2.f32 %v3846_v54  ;;  %v2300_v39 = vmul.f32 -0.5, %v6726_v44  ;;  %9305 = vst [vmem:[#allocation22_spill] sm:$0xff] %v6793_v15  ;;  %v6835_v12 = vrot.slane %v6800_v31, %v6699_v48 }
 0x200   : > { %v6739_v9 = vpop.eup %6026  ;;  %v9317_v15 = vmax.f32 %v6682_v21, 0.0  ;;  %vm3325_vm12 = vcmp.ne.f32.partialorder %v6696_v57, %v6696_v57  ;;  %vm4359_vm14 = vcmp.ne.f32.partialorder %v6694_v62, %v6694_v62  ;;  %vm3842_vm0 = vcmp.ne.f32.partialorder %v6707_v26, %v6707_v26 }
 0x201   : > { %v6745_v28 = vpop.eup %6028  ;;  %6048 = vlog2.f32 %v2297_v47  ;;  %v1258_v2 = vadd.f32 1.0, %v6739_v9  ;;  %v2390_v47 = vcombine.high %v2382_v20, %v2382_v20  ;;  %v1261_v55 = vmul.f32 -0.5, %v6739_v9  ;;  %9309 = vst [vmem:[#allocation24_spill] sm:$0xff] %v6835_v12 }
 0x202   : > { %9301 = vst [vmem:[#allocation18_spill] sm:$0xff] %v6745_v28  ;;  %v6757_v22 = vpop.eup %6030 }
 0x203   : > { %v6765_v37 = vpop.eup %6032  ;;  %v2814_v40 = vadd.f32 1.0, %v6757_v22  ;;  %6050 = vlog2.f32 %v1258_v2  ;;  %v2303_v2 = vand.u32 2147483647, %v6726_v44  ;;  %v2817_v16 = vmul.f32 -0.5, %v6757_v22 }
 0x204   : > { %9302 = vst [vmem:[#allocation19_spill] sm:$0xff] %v6765_v37  ;;  %v6773_v51 = vpop.eup %6034  ;;  %v6822_v10 = vrot.slane %v2390_v47, %v6699_v48  ;;  %v1262_v0 = vadd.f32 1.0, %v1261_v55  ;;  %v1264_v47 = vand.u32 2147483647, %v6739_v9 }
 0x205   : > { %6052 = vlog2.f32 %v2814_v40  ;;  %v1780_v54 = vadd.f32 1.0, %v6773_v51  ;;  %v6786_v7 = vpop.eup %6036  ;;  %v2301_v40 = vadd.f32 1.0, %v2300_v39  ;;  %vm6826_vm2 = vcmp.lt.f32.partialorder %v2303_v2, 0.0004427343 }
 0x206   : > { %9303 = vst [vmem:[#allocation20_spill] sm:$0xff] %v6786_v7  ;;  %v6831_v39 = vrot.slane %v2391_v1, %v6699_v48  ;;  %v2820_v2 = vand.u32 2147483647, %v6757_v22  ;;  %v1783_v5 = vmul.f32 -0.5, %v6773_v51  ;;  %v2420_v1 = vcombine.high %v6806_v42, %v6806_v42 }
 0x207   : > { %v6795_v33 = vpop.eup %6038  ;;  %6054 = vlog2.f32 %v1780_v54  ;;  %v2302_v35 = vmul.f32 %v6726_v44, %v2301_v40  ;;  %v2818_v11 = vadd.f32 1.0, %v2817_v16  ;;  %v6857_v16 = vmul.f32 %v6739_v9, %v1262_v0 }
 0x208   : > { %v6802_v43 = vpop.eup %6040  ;;  %v4365_v19 = vadd.f32 1.0, %v6795_v33  ;;  %v4368_v55 = vmul.f32 -0.5, %v6795_v33  ;;  %vm6859_vm3 = vcmp.lt.f32.partialorder %v1264_v47, 0.0004427343  ;;  %vm6864_vm4 = vcmp.lt.f32.partialorder %v2820_v2, 0.0004427343 }
 0x209   : > { %v6814_v54 = vpop.eup %6042  ;;  %v3331_v29 = vadd.f32 1.0, %v6802_v43  ;;  %v3334_v44 = vmul.f32 -0.5, %v6802_v43  ;;  %v1786_v40 = vand.u32 2147483647, %v6773_v51  ;;  %v2819_v0 = vmul.f32 %v6757_v22, %v2818_v11 }
 0x20a   : > { %9306 = vst [vmem:[#allocation23_spill] sm:$0xff] %v6814_v54  ;;  %v6824_v20 = vpop.eup %6044  ;;  %6056 = vlog2.f32 %v4365_v19  ;;  %v4369_v2 = vadd.f32 1.0, %v4368_v55  ;;  %v4371_v53 = vand.u32 2147483647, %v6795_v33 }
 0x20b   : > { %6058 = vlog2.f32 %v3331_v29  ;;  %v4882_v19 = vadd.f32 1.0, %v6824_v20  ;;  %v2422_v29 = vcombine.high %v6822_v10, %v6822_v10  ;;  %v4885_v9 = vmul.f32 -0.5, %v6824_v20 }
 0x20c   : > { %v6839_v37 = vpop.eup %6046  ;;  %v3335_v22 = vadd.f32 1.0, %v3334_v44  ;;  %vm6892_vm8 = vcmp.lt.f32.partialorder %v1786_v40, 0.0004427343  ;;  %vm6907_vm10 = vcmp.lt.f32.partialorder %v4371_v53, 0.0004427343 }
 0x20d   : > { %v3848_v7 = vadd.f32 1.0, %v6839_v37  ;;  %6060 = vlog2.f32 %v4882_v19  ;;  %v1784_v19 = vadd.f32 1.0, %v1783_v5  ;;  %v6879_v47 = vrot.slane %v2422_v29, %v6445_v13 }
 0x20e   : > { %v6049_v54 = vpop.eup %6048  ;;  %v3851_v63 = vmul.f32 -0.5, %v6839_v37  ;;  %v4886_v44 = vadd.f32 1.0, %v4885_v9  ;;  %v4370_v9 = vmul.f32 %v6795_v33, %v4369_v2 }
 0x20f   : > { %v2299_v28 = vmul.f32 0.6931472, %v6049_v54  ;;  %6062 = vlog2.f32 %v3848_v7  ;;  %v6876_v7 = vrot.slane %v2420_v1, %v6445_v13  ;;  %9314 = vst [vmem:[#allocation25_spill] sm:$0xff] %v6879_v47  ;;  %v3337_v54 = vand.u32 2147483647, %v6802_v43 }
 0x210   : > { %v6051_v8 = vpop.eup %6050  ;;  %v4888_v1 = vand.u32 2147483647, %v6824_v20  ;;  %v1785_v55 = vmul.f32 %v6773_v51, %v1784_v19  ;;  %v3852_v40 = vadd.f32 1.0, %v3851_v63  ;;  %v9332_v51 = vcombine.high %v6771_v45, %v6771_v45 }
 0x211   : > { %v2305_v58 = vsel %vm6826_vm2, %v2302_v35, %v2299_v28  ;;  %v1260_v12 = vmul.f32 0.6931472, %v6051_v8  ;;  %v3854_v28 = vand.u32 2147483647, %v6839_v37  ;;  %vm6911_vm11 = vcmp.lt.f32.partialorder %v3337_v54, 0.0004427343 }
 0x212   : > { %v6053_v5 = vpop.eup %6052  ;;  %v2306_v14 = vadd.f32 %v2305_v58, %v9317_v15  ;;  %v3336_v58 = vmul.f32 %v6802_v43, %v3335_v22  ;;  %vm6921_vm13 = vcmp.lt.f32.partialorder %v4888_v1, 0.0004427343  ;;  %v9324_v54 = vmax.f32 %v6688_v41, 0.0 }
 0x213   : > { %v2816_v11 = vmul.f32 0.6931472, %v6053_v5  ;;  %v6899_v5 = vpop.permute.xlu0 %1143  ;;  %v1266_v63 = vsel %vm6859_vm3, %v6857_v16, %v1260_v12  ;;  %vm6932_vm15 = vcmp.lt.f32.partialorder %v3854_v28, 0.0004427343  ;;  %v9327_v43 = vmax.f32 %v6690_v46, 0.0 }
 0x214   : > { %v6055_v29 = vpop.eup %6054  ;;  %v4887_v1 = vmul.f32 %v6824_v20, %v4886_v44  ;;  %v6945_v12 = vsel %vm2291_vm5, %v6682_v21, %v2306_v14  ;;  %v9329_v20 = vcombine.high %v6819_v3, %v6819_v3  ;;  %vm4876_vm2 = vcmp.ne.f32.partialorder %v6704_v18, %v6704_v18 }
 0x215   : > { %v2822_v50 = vsel %vm6864_vm4, %v2819_v0, %v2816_v11  ;;  %v1782_v35 = vmul.f32 0.6931472, %v6055_v29  ;;  %9328 = vst [vmem:[#allocation26_spill] sm:$0xff] %v6945_v12  ;;  %v3853_v29 = vmul.f32 %v6839_v37, %v3852_v40  ;;  %v9331_v37 = vcombine.high %v6831_v39, %v6831_v39 }
 0x216   : > { %v2823_v47 = vadd.f32 %v2822_v50, %v9324_v54  ;;  %v9330_v50 = vmax.f32 %v6685_v30, 0.0  ;;  %v6976_v40 = vrot.slane %v9332_v51, %v6699_v48  ;;  %v9354_v8 = vrot.slane %v6724_v60, %v6445_v13 }
 0x217   : > { %v6057_v19 = vpop.eup %6056  ;;  %v1788_v0 = vsel %vm6892_vm8, %v1785_v55, %v1782_v35  ;;  %v6956_v55 = vrot.slane %v9329_v20, %v6445_v13  ;;  %v6964_v14 = vpop.permute.xlu0 %1157  ;;  %v6970_v44 = vrot.slane %v9331_v37, %v6445_v13  ;;  %v9358_v60 = vrot.slane %v6729_v61, %v6445_v13 }
 0x218   : > { %v6059_v15 = vpop.eup %6058  ;;  %v4367_v33 = vmul.f32 0.6931472, %v6057_v19  ;;  %v1789_v11 = vadd.f32 %v1788_v0, %v9327_v43  ;;  %v1267_v35 = vadd.f32 %v1266_v63, %v9330_v50  ;;  %v6982_v59 = vsel %vm2808_vm6, %v6688_v41, %v2823_v47 }
 0x219   : > { %v3333_v22 = vmul.f32 0.6931472, %v6059_v15  ;;  %v9333_v0 = vmax.f32 %v6696_v57, 0.0  ;;  %v2956_v15 = vcombine.high %v6810_v6, %v6810_v6  ;;  %v9335_v63 = vmax.f32 %v6694_v62, 0.0 }
 0x21a   : > { %v4373_v16 = vsel %vm6907_vm10, %v4370_v9, %v4367_v33  ;;  %v6061_v28 = vpop.eup %6060  ;;  %v6992_v45 = vsel %vm1774_vm7, %v6690_v46, %v1789_v11  ;;  %v2309_v41 = vmul.f32 %v6945_v12, %v6899_v5  ;;  %v2311_v43 = vmul.f32 %v6945_v12, %v6964_v14 }
 0x21b   : > { %v3339_v21 = vsel %vm6911_vm11, %v3336_v58, %v3333_v22  ;;  %v4884_v58 = vmul.f32 0.6931472, %v6061_v28  ;;  %9334 = vst [vmem:[#allocation27_spill] sm:$0xff] %v6992_v45  ;;  %v4374_v54 = vadd.f32 %v4373_v16, %v9335_v63  ;;  %v7004_v22 = vrot.slane %v6810_v6, %v6699_v48  ;;  %v7048_v51 = vpop.permute.xlu0 %1171 }
 0x21c   : > { %v6063_v19 = vpop.eup %6062  ;;  %v3340_v9 = vadd.f32 %v3339_v21, %v9333_v0  ;;  %v9336_v46 = vcombine.high %v6800_v31, %v6800_v31  ;;  %v7016_v16 = vsel %vm1252_vm9, %v6685_v30, %v1267_v35  ;;  %v9339_v28 = vmax.f32 %v6704_v18, 0.0 }
 0x21d   : > { %v3850_v33 = vmul.f32 0.6931472, %v6063_v19  ;;  %v4890_v47 = vsel %vm6921_vm13, %v4887_v1, %v4884_v58  ;;  %9337 = vst [vmem:[#allocation28_spill] sm:$0xff] %v7016_v16  ;;  %v2826_v1 = vmul.f32 %v6982_v59, %v6899_v5  ;;  %v9340_v30 = vmax.f32 %v6707_v26, 0.0 }
 0x21e   : > { %v7010_v11 = vrot.slane %v9336_v46, %v6699_v48  ;;  %v7028_v31 = vsel %vm3325_vm12, %v6696_v57, %v3340_v9  ;;  %v4891_v50 = vadd.f32 %v4890_v47, %v9339_v28  ;;  %v1792_v2 = vmul.f32 %v6992_v45, %v6899_v5 }
 0x21f   : > { %v3856_v53 = vsel %vm6932_vm15, %v3853_v29, %v3850_v33  ;;  %9338 = vst [vmem:[#allocation29_spill] sm:$0xff] %v7028_v31  ;;  %v7038_v29 = vmul.f32 %v6945_v12, %v6574_v34  ;;  %v7044_v21 = vsel %vm4359_vm14, %v6694_v62, %v4374_v54  ;;  %v2326_v57 = vmul.f32 1.442695, %v2309_v41 }
 0x220   : > { %v3857_v35 = vadd.f32 %v3856_v53, %v9340_v30  ;;  %9341 = vst [vmem:[#allocation30_spill] sm:$0xff] %v7044_v21  ;;  %v2828_v37 = vmul.f32 %v6982_v59, %v6964_v14  ;;  %v1794_v19 = vmul.f32 %v6992_v45, %v6964_v14  ;;  %v2330_v0 = vmul.f32 1.442695, %v2311_v43 }
 0x221   : > { %v2313_v9 = vmul.f32 %v6945_v12, %v7048_v51  ;;  %v7056_v58 = vrot.slane %v6976_v40, %v6699_v48  ;;  %v7060_v62 = vmul.f32 %v7016_v16, %v6582_v38  ;;  %v2843_v54 = vmul.f32 1.442695, %v2826_v1  ;;  %v9376_v38 = vld [vmem:[#allocation24_spill] sm:$0xff] }
 0x222   : > { %v7066_v63 = vsel %vm3842_vm0, %v6707_v26, %v3857_v35  ;;  %v3343_v33 = vmul.f32 %v7028_v31, %v6899_v5  ;;  %v7074_v41 = vsel %vm4876_vm2, %v6704_v18, %v4891_v50  ;;  %v1809_v47 = vmul.f32 1.442695, %v1792_v2 }
 0x223   : > { %9342 = vst [vmem:[#allocation31_spill] sm:$0xff] %v7066_v63  ;;  %9343 = vst [vmem:[#allocation32_spill] sm:$0xff] %v7074_v41  ;;  %v4377_v43 = vmul.f32 %v7044_v21, %v6899_v5  ;;  %v7080_v46 = vmul.f32 %v7016_v16, %v6964_v14  ;;  %6064 = vpow2.f32 %v2326_v57  ;;  %v2847_v26 = vmul.f32 1.442695, %v2828_v37 }
 0x224   : > { %v3345_v53 = vmul.f32 %v7028_v31, %v6964_v14  ;;  %v9344_v1 = vrot.slane %v6806_v42, %v6445_v13  ;;  %v3860_v18 = vmul.f32 %v7066_v63, %v6899_v5  ;;  %v1813_v50 = vmul.f32 1.442695, %v1794_v19 }
 0x225   : > { %6066 = vpow2.f32 %v2330_v0  ;;  %v9346_v30 = vrot.slane %v6822_v10, %v6445_v13  ;;  %v7100_v2 = vmul.f32 %v6982_v59, %v6571_v32  ;;  %v3360_v57 = vmul.f32 1.442695, %v3343_v33 }
 0x226   : > { %v7088_v28 = vmul.f32 %v9344_v1, %v7038_v29  ;;  %6068 = vpow2.f32 %v2843_v54  ;;  %v4894_v42 = vmul.f32 %v7074_v41, %v6899_v5  ;;  %v4394_v37 = vmul.f32 1.442695, %v4377_v43 }
 0x227   : > { %v7096_v35 = vmul.f32 %v9346_v30, %v7038_v29  ;;  %6070 = vpow2.f32 %v1809_v47  ;;  %v3862_v19 = vmul.f32 %v7066_v63, %v6964_v14  ;;  %v4379_v0 = vmul.f32 %v7044_v21, %v6964_v14 }
 0x228   : > { %9345 = vst [vmem:[#allocation33_spill] sm:$0xff] %v7088_v28  ;;  %v7110_v10 = vmul.f32 %v6992_v45, %v6577_v36  ;;  %6072 = vpow2.f32 %v2847_v26  ;;  %v3364_v1 = vmul.f32 1.442695, %v3345_v53  ;;  %v7114_v54 = vmul.f32 %v6876_v7, %v7038_v29 }
 0x229   : > { %v7118_v33 = vmul.f32 %v7044_v21, %v6559_v24  ;;  %v3877_v47 = vmul.f32 1.442695, %v3860_v18  ;;  %6074 = vpow2.f32 %v1813_v50  ;;  %v4896_v43 = vmul.f32 %v7074_v41, %v6964_v14 }
 0x22a   : > { %9347 = vst [vmem:[#allocation34_spill] sm:$0xff] %v7110_v10  ;;  %9348 = vst [vmem:[#allocation35_spill] sm:$0xff] %v7114_v54  ;;  %v7124_v30 = vmul.f32 %v7028_v31, %v6564_v27  ;;  %v7128_v26 = vmul.f32 %v7074_v41, %v6561_v25  ;;  %6076 = vpow2.f32 %v3360_v57  ;;  %v4911_v7 = vmul.f32 1.442695, %v4894_v42 }
 0x22b   : > { %9349 = vst [vmem:[#allocation36_spill] sm:$0xff] %v7118_v33  ;;  %v7132_v53 = vmul.f32 %v7066_v63, %v6557_v23  ;;  %6078 = vpow2.f32 %v4394_v37  ;;  %v3881_v18 = vmul.f32 1.442695, %v3862_v19  ;;  %v4398_v50 = vmul.f32 1.442695, %v4379_v0 }
 0x22c   : > { %9350 = vst [vmem:[#allocation37_spill] sm:$0xff] %v7128_v26  ;;  %6080 = vpow2.f32 %v3364_v1  ;;  %v9352_v14 = vrot.slane %v6715_v56, %v6445_v13  ;;  %v7144_v57 = vmul.f32 %v9354_v8, %v7100_v2  ;;  %v1796_v42 = vmul.f32 %v6992_v45, %v7048_v51 }
 0x22d   : > { %9351 = vst [vmem:[#allocation38_spill] sm:$0xff] %v7132_v53  ;;  %6082 = vpow2.f32 %v3877_v47  ;;  %v4915_v37 = vmul.f32 1.442695, %v4896_v43  ;;  %v7150_v19 = vmul.f32 %v6776_v52, %v7100_v2  ;;  %v2830_v56 = vmul.f32 %v6982_v59, %v7048_v51  ;;  %v9362_v43 = vld [vmem:[#allocation21_spill] sm:$0xff] }
 0x22e   : > { %v7138_v4 = vmul.f32 %v9352_v14, %v7100_v2  ;;  %9355 = vst [vmem:[#allocation40_spill] sm:$0xff] %v7144_v57  ;;  %6084 = vpow2.f32 %v4911_v7  ;;  %v7156_v0 = vmul.f32 %v6779_v17, %v7100_v2  ;;  %v7162_v8 = vmul.f32 %v9358_v60, %v7100_v2  ;;  %v9364_v14 = vld [vmem:[#allocation22_spill] sm:$0xff] }
 0x22f   : > { %9356 = vst [vmem:[#allocation41_spill] sm:$0xff] %v7150_v19  ;;  %v3347_v1 = vmul.f32 %v7028_v31, %v7048_v51  ;;  %6086 = vpow2.f32 %v3881_v18  ;;  %v9360_v52 = vrot.slane %v6732_v49, %v6445_v13  ;;  %v7174_v17 = vmul.f32 %v9362_v43, %v7100_v2 }
 0x230   : > { %9353 = vst [vmem:[#allocation39_spill] sm:$0xff] %v7138_v4  ;;  %9357 = vst [vmem:[#allocation42_spill] sm:$0xff] %v7156_v0  ;;  %v2334_v7 = vmul.f32 1.442695, %v2313_v9  ;;  %v7178_v61 = vmul.f32 %v9364_v14, %v7100_v2  ;;  %v1817_v60 = vmul.f32 1.442695, %v1796_v42  ;;  %v3864_v20 = vmul.f32 %v7066_v63, %v7048_v51  ;;  %v7186_v18 = vpop.eup %6064 }
 0x231   : > { %9359 = vst [vmem:[#allocation43_spill] sm:$0xff] %v7162_v8  ;;  %v7170_v47 = vmul.f32 %v9360_v52, %v7100_v2  ;;  %9363 = vst [vmem:[#allocation21_spill] sm:$0xff] %v7174_v17  ;;  %v2978_v49 = vrot.slane %v2956_v15, %v6699_v48  ;;  %6088 = vpow2.f32 %v4398_v50  ;;  %v9366_v52 = vld [vmem:[#allocation25_spill] sm:$0xff]  ;;  %v2851_v9 = vmul.f32 1.442695, %v2830_v56 }
 0x232   : > { %9365 = vst [vmem:[#allocation22_spill] sm:$0xff] %v7178_v61  ;;  %v7190_v43 = vmul.f32 %v9366_v52, %v7038_v29  ;;  %v4381_v14 = vmul.f32 %v7044_v21, %v7048_v51  ;;  %v7194_v42 = vpop.eup %6066  ;;  %6090 = vpow2.f32 %v4915_v37  ;;  %v3368_v27 = vmul.f32 1.442695, %v3347_v1 }
 0x233   : > { %9361 = vst [vmem:[#allocation44_spill] sm:$0xff] %v7170_v47  ;;  %v4898_v25 = vmul.f32 %v7074_v41, %v7048_v51  ;;  %v9367_v6 = vcombine.high %v6976_v40, %v6976_v40  ;;  %v7202_v50 = vpop.eup %6068  ;;  %v9369_v56 = vrot.slane %v6819_v3, %v6445_v13  ;;  %v9371_v37 = vrot.slane %v6831_v39, %v6445_v13 }
 0x234   : > { %9368 = vst [vmem:[#allocation25_spill] sm:$0xff] %v7202_v50  ;;  %v7218_v23 = vmul.f32 %v6956_v55, %v7038_v29  ;;  %6092 = vpow2.f32 %v2334_v7  ;;  %v7220_v40 = vpop.eup %6070  ;;  %v2986_v3 = vcombine.high %v7004_v22, %v7004_v22  ;;  %v7228_v39 = vmul.f32 %v6970_v44, %v7038_v29 }
 0x235   : > { %v2985_v15 = vrot.slane %v9367_v6, %v6699_v48  ;;  %v7208_v52 = vmul.f32 %v9369_v56, %v7038_v29  ;;  %v7214_v1 = vmul.f32 %v9371_v37, %v7038_v29  ;;  %6094 = vpow2.f32 %v1817_v60  ;;  %v7224_v24 = vpop.eup %6072 }
 0x236   : > { %9373 = vst [vmem:[#allocation47_spill] sm:$0xff] %v7218_v23  ;;  %v3885_v6 = vmul.f32 1.442695, %v3864_v20  ;;  %v2988_v56 = vcombine.high %v2978_v49, %v2978_v49  ;;  %9374 = vst [vmem:[#allocation48_spill] sm:$0xff] %v7224_v24  ;;  %v7232_v37 = vmul.f32 %v7016_v16, %v7048_v51  ;;  %6096 = vpow2.f32 %v2851_v9  ;;  %v7234_v7 = vpop.eup %6074 }
 0x237   : > { %9370 = vst [vmem:[#allocation45_spill] sm:$0xff] %v7208_v52  ;;  %9372 = vst [vmem:[#allocation46_spill] sm:$0xff] %v7214_v1  ;;  %v4402_v55 = vmul.f32 1.442695, %v4381_v14  ;;  %6098 = vpow2.f32 %v3368_v27  ;;  %v4919_v20 = vmul.f32 1.442695, %v4898_v25  ;;  %v2987_v60 = vcombine.high %v7056_v58, %v7056_v58  ;;  %v7238_v36 = vpop.eup %6076 }
 0x238   : > { %v2989_v32 = vcombine.high %v2985_v15, %v2985_v15  ;;  %9375 = vst [vmem:[#allocation49_spill] sm:$0xff] %v7238_v36  ;;  %v3025_v44 = vrot.slane %v7004_v22, %v6445_v13  ;;  %v3029_v34 = vrot.slane %v2978_v49, %v6445_v13  ;;  %v2439_v51 = vcombine.high %v9376_v38, %v9376_v38  ;;  %v7247_v14 = vpop.eup %6078 }
 0x239   : > { %v2440_v9 = vcombine.high %v7010_v11, %v7010_v11  ;;  %9377 = vst [vmem:[#allocation24_spill] sm:$0xff] %v7247_v14  ;;  %6100 = vpow2.f32 %v3885_v6  ;;  %v3033_v25 = vrot.slane %v2986_v3, %v6445_v13  ;;  %v3037_v27 = vrot.slane %v2988_v56, %v6445_v13  ;;  %v7253_v17 = vpop.eup %6080 }
 0x23a   : > { %v3041_v33 = vrot.slane %v7056_v58, %v6445_v13  ;;  %9378 = vst [vmem:[#allocation50_spill] sm:$0xff] %v7253_v17  ;;  %6102 = vpow2.f32 %v4402_v55  ;;  %v3045_v22 = vrot.slane %v2985_v15, %v6445_v13  ;;  %v2447_v49 = vrot.slane %v9376_v38, %v6699_v48  ;;  %v7260_v14 = vpop.eup %6082 }
 0x23b   : > { %v2454_v8 = vrot.slane %v7010_v11, %v6699_v48  ;;  %9379 = vst [vmem:[#allocation51_spill] sm:$0xff] %v7260_v14  ;;  %6104 = vpow2.f32 %v4919_v20  ;;  %v3049_v6 = vrot.slane %v2987_v60, %v6445_v13  ;;  %v3053_v3 = vrot.slane %v2989_v32, %v6445_v13  ;;  %v7267_v56 = vpop.eup %6084  ;;  %v1186_v20 = vpop.permute.xlu0 %1185 }
 0x23c   : > { %v7265_v58 = vmul.f32 %v3025_v44, %v7100_v2  ;;  %9381 = vst [vmem:[#allocation53_spill] sm:$0xff] %v7267_v56  ;;  %v7270_v15 = vmul.f32 %v3029_v34, %v7100_v2  ;;  %v7273_v38 = vmul.f32 %v3033_v25, %v7100_v2  ;;  %v2461_v11 = vrot.slane %v2439_v51, %v6699_v48  ;;  %v7277_v14 = vpop.eup %6086 }
 0x23d   : > { %v2468_v55 = vrot.slane %v2440_v9, %v6699_v48  ;;  %9384 = vst [vmem:[#allocation56_spill] sm:$0xff] %v7277_v14  ;;  %v7280_v32 = vmul.f32 %v3037_v27, %v7100_v2  ;;  %v7283_v60 = vmul.f32 %v3041_v33, %v7100_v2  ;;  %v1276_v44 = vmul.f32 %v7016_v16, %v1186_v20 }
 0x23e   : > { %9380 = vst [vmem:[#allocation52_spill] sm:$0xff] %v7265_v58  ;;  %9382 = vst [vmem:[#allocation54_spill] sm:$0xff] %v7270_v15  ;;  %v1798_v34 = vmul.f32 %v6992_v45, %v1186_v20  ;;  %v7288_v25 = vmul.f32 %v3045_v22, %v7100_v2  ;;  %v7291_v51 = vmul.f32 %v3049_v6, %v7100_v2  ;;  %v5860_v15 = vpop.f32.mrf.mxu1  ;;  %v1291_v1 = vmul.f32 1.442695, %v7080_v46 }
 0x23f   : > { %9383 = vst [vmem:[#allocation55_spill] sm:$0xff] %v7273_v38  ;;  %9385 = vst [vmem:[#allocation57_spill] sm:$0xff] %v7280_v32  ;;  %v2469_v9 = vcombine.high %v2447_v49, %v2447_v49  ;;  %v2470_v56 = vcombine.high %v2454_v8, %v2454_v8  ;;  %v7293_v38 = vpop.eup %6088  ;;  %v7296_v27 = vmul.f32 %v3053_v3, %v7100_v2  ;;  %v1299_v3 = vmul.f32 1.442695, %v1276_v44 }
 0x240   : > { %9386 = vst [vmem:[#allocation58_spill] sm:$0xff] %v7283_v60  ;;  %9387 = vst [vmem:[#allocation59_spill] sm:$0xff] %v7288_v25  ;;  %v2524_v33 = vrot.slane %v2454_v8, %v6445_v13  ;;  %v2315_v60 = vmul.f32 %v6945_v12, %v1186_v20  ;;  %v2832_v32 = vmul.f32 %v6982_v59, %v1186_v20  ;;  %v7301_v58 = vpop.eup %6090  ;;  %v1821_v8 = vmul.f32 1.442695, %v1798_v34 }
 0x241   : > { %9388 = vst [vmem:[#allocation60_spill] sm:$0xff] %v7291_v51  ;;  %9389 = vst [vmem:[#allocation61_spill] sm:$0xff] %v7293_v38  ;;  %v2471_v22 = vcombine.high %v2461_v11, %v2461_v11  ;;  %v2472_v25 = vcombine.high %v2468_v55, %v2468_v55  ;;  %v3926_v6 = vcombine.high %v5860_v15, %v5860_v15  ;;  %v7304_v14 = vpop.eup %6092  ;;  %6106 = vpow2.f32 %v1299_v3 }
 0x242   : > { %9390 = vst [vmem:[#allocation62_spill] sm:$0xff] %v7296_v27  ;;  %9391 = vst [vmem:[#allocation63_spill] sm:$0xff] %v7301_v58  ;;  %v3933_v51 = vrot.slane %v5860_v15, %v6699_v48  ;;  %v2508_v38 = vrot.slane %v2447_v49, %v6445_v13  ;;  %v2512_v2 = vrot.slane %v2461_v11, %v6445_v13  ;;  %v5852_v27 = vpop.f32.mrf.mxu0  ;;  %v7308_v19 = vpop.eup %6094  ;;  %6108 = vpow2.f32 %v1821_v8 }
 0x243   : > { %v2516_v17 = vrot.slane %v2469_v9, %v6445_v13  ;;  %v2528_v58 = vrot.slane %v2468_v55, %v6445_v13  ;;  %v2532_v36 = vrot.slane %v2470_v56, %v6445_v13  ;;  %v1858_v61 = vcombine.high %v5852_v27, %v5852_v27  ;;  %v7313_v47 = vpop.eup %6096 }
 0x244   : > { %9392 = vst [vmem:[#allocation64_spill] sm:$0xff] %v7313_v47  ;;  %v7316_v15 = vmul.f32 %v2508_v38, %v7038_v29  ;;  %v7319_v49 = vmul.f32 %v2524_v33, %v7038_v29  ;;  %v3349_v11 = vmul.f32 %v7028_v31, %v1186_v20  ;;  %v3940_v44 = vrot.slane %v3926_v6, %v6699_v48  ;;  %v7323_v34 = vpop.eup %6098  ;;  %v1002_v24 = vpop.f32.mrf.mxu0 }
 0x245   : > { %9395 = vst [vmem:[#allocation67_spill] sm:$0xff] %v7323_v34  ;;  %v2520_v9 = vrot.slane %v2471_v22, %v6445_v13  ;;  %v2536_v55 = vrot.slane %v2472_v25, %v6445_v13  ;;  %v3866_v56 = vmul.f32 %v7066_v63, %v1186_v20  ;;  %v3941_v0 = vcombine.high %v3933_v51, %v3933_v51 }
 0x246   : > { %9393 = vst [vmem:[#allocation65_spill] sm:$0xff] %v7316_v15  ;;  %9394 = vst [vmem:[#allocation66_spill] sm:$0xff] %v7319_v49  ;;  %v7329_v57 = vmul.f32 %v2512_v2, %v7038_v29  ;;  %v2338_v38 = vmul.f32 1.442695, %v2315_v60  ;;  %v4383_v33 = vmul.f32 %v7044_v21, %v1186_v20  ;;  %v1865_v49 = vrot.slane %v5852_v27, %v6699_v48  ;;  %v7333_v26 = vpop.eup %6100 }
 0x247   : > { %9397 = vst [vmem:[#allocation69_spill] sm:$0xff] %v7333_v26  ;;  %v7336_v6 = vmul.f32 %v2516_v17, %v7038_v29  ;;  %v2855_v34 = vmul.f32 1.442695, %v2832_v32  ;;  %v4900_v22 = vmul.f32 %v7074_v41, %v1186_v20  ;;  %v1872_v25 = vrot.slane %v1858_v61, %v6699_v48  ;;  %v7340_v15 = vpop.eup %6102 }
 0x248   : > { %9396 = vst [vmem:[#allocation68_spill] sm:$0xff] %v7329_v57  ;;  %9399 = vst [vmem:[#allocation71_spill] sm:$0xff] %v7340_v15  ;;  %v3372_v2 = vmul.f32 1.442695, %v3349_v11  ;;  %v3942_v4 = vcombine.high %v3940_v44, %v3940_v44  ;;  %v3949_v60 = vrot.slane %v3933_v51, %v6699_v48  ;;  %v7343_v57 = vpop.eup %6104  ;;  %v7346_v27 = vmul.f32 %v2528_v58, %v7038_v29 }
 0x249   : > { %9398 = vst [vmem:[#allocation70_spill] sm:$0xff] %v7336_v6  ;;  %9400 = vst [vmem:[#allocation72_spill] sm:$0xff] %v7343_v57  ;;  %v3889_v17 = vmul.f32 1.442695, %v3866_v56  ;;  %v3963_v32 = vrot.slane %v3941_v0, %v6699_v48  ;;  %6110 = vpow2.f32 %v2338_v38  ;;  %v4406_v20 = vmul.f32 1.442695, %v4383_v33  ;;  %v7357_v56 = vpop.permute.xlu1 %1136  ;;  %v1034_v38 = vpop.f32.mrf.mxu1 }
 0x24a   : > { %9401 = vst [vmem:[#allocation73_spill] sm:$0xff] %v7346_v27  ;;  %v3956_v61 = vrot.slane %v3940_v44, %v6699_v48  ;;  %v1873_v26 = vcombine.high %v1865_v49, %v1865_v49  ;;  %v7351_v3 = vmul.f32 %v2532_v36, %v7038_v29  ;;  %6112 = vpow2.f32 %v2855_v34  ;;  %9404 = vst [vmem:[#allocation76_spill] sm:$0xff] %v7357_v56 }
 0x24b   : > { %v4923_v11 = vmul.f32 1.442695, %v4900_v22  ;;  %v1874_v51 = vcombine.high %v1872_v25, %v1872_v25  ;;  %v7354_v57 = vmul.f32 %v2520_v9, %v7038_v29  ;;  %6114 = vpow2.f32 %v3372_v2 }
 0x24c   : > { %9402 = vst [vmem:[#allocation74_spill] sm:$0xff] %v7351_v3  ;;  %v3970_v58 = vrot.slane %v3942_v4, %v6699_v48  ;;  %v3971_v8 = vcombine.high %v3949_v60, %v3949_v60  ;;  %v7360_v0 = vmul.f32 %v2536_v55, %v7038_v29  ;;  %6116 = vpow2.f32 %v3889_v17 }
 0x24d   : > { %9403 = vst [vmem:[#allocation75_spill] sm:$0xff] %v7354_v57  ;;  %v3973_v44 = vcombine.high %v3963_v32, %v3963_v32  ;;  %v1881_v36 = vrot.slane %v1865_v49, %v6699_v48  ;;  %6118 = vpow2.f32 %v4406_v20  ;;  %v3972_v34 = vcombine.high %v3956_v61, %v3956_v61 }
 0x24e   : > { %9405 = vst [vmem:[#allocation77_spill] sm:$0xff] %v7360_v0  ;;  %v1895_v33 = vrot.slane %v1873_v26, %v6699_v48  ;;  %v3409_v9 = vcombine.high %v1034_v38, %v1034_v38  ;;  %6120 = vpow2.f32 %v4923_v11  ;;  %v4027_v22 = vrot.slane %v3949_v60, %v6445_v13  ;;  %v7380_v0 = vpop.permute.xlu1 %1150 }
 0x24f   : > { %v1888_v4 = vrot.slane %v1872_v25, %v6699_v48  ;;  %v1902_v2 = vrot.slane %v1874_v51, %v6699_v48  ;;  %v3974_v27 = vcombine.high %v3970_v58, %v3970_v58  ;;  %v4031_v29 = vrot.slane %v3963_v32, %v6445_v13  ;;  %9408 = vst [vmem:[#allocation80_spill] sm:$0xff] %v7380_v0 }
 0x250   : > { %v4035_v55 = vrot.slane %v3971_v8, %v6445_v13  ;;  %v4043_v49 = vrot.slane %v3956_v61, %v6445_v13  ;;  %v4039_v17 = vrot.slane %v3973_v44, %v6445_v13  ;;  %v4047_v20 = vrot.slane %v3970_v58, %v6445_v13 }
 0x251   : > { %v7373_v26 = vmul.f32 %v4027_v22, %v7132_v53  ;;  %v1903_v11 = vcombine.high %v1881_v36, %v1881_v36  ;;  %v4051_v60 = vrot.slane %v3972_v34, %v6445_v13  ;;  %v7377_v25 = vmul.f32 %v4031_v29, %v7132_v53 }
 0x252   : > { %v1905_v51 = vcombine.high %v1895_v33, %v1895_v33  ;;  %v3416_v32 = vrot.slane %v1034_v38, %v6699_v48  ;;  %v7383_v61 = vmul.f32 %v4035_v55, %v7132_v53  ;;  %v1904_v8 = vcombine.high %v1888_v4, %v1888_v4  ;;  %v7394_v38 = vpop.eup %6106 }
 0x253   : > { %9406 = vst [vmem:[#allocation78_spill] sm:$0xff] %v7373_v26  ;;  %9407 = vst [vmem:[#allocation79_spill] sm:$0xff] %v7377_v25  ;;  %v1906_v44 = vcombine.high %v1902_v2, %v1902_v2  ;;  %v3423_v58 = vrot.slane %v3409_v9, %v6699_v48  ;;  %v4055_v22 = vrot.slane %v3974_v27, %v6445_v13  ;;  %v7400_v25 = vpop.permute.xlu0 %1199  ;;  %v7402_v27 = vpop.eup %6108  ;;  %vm5501_vm4 = vcmask 15360  }
 0x254   : > { %9409 = vst [vmem:[#allocation81_spill] sm:$0xff] %v7383_v61  ;;  %v7388_v26 = vmul.f32 %v4039_v17, %v7132_v53  ;;  %v7391_v34 = vmul.f32 %v4043_v49, %v7132_v53  ;;  %v1959_v29 = vrot.slane %v1881_v36, %v6445_v13  ;;  %v1963_v15 = vrot.slane %v1895_v33, %v6445_v13 }
 0x255   : > { %v1967_v55 = vrot.slane %v1903_v11, %v6445_v13  ;;  %v1975_v61 = vrot.slane %v1888_v4, %v6445_v13  ;;  %v1979_v9 = vrot.slane %v1902_v2, %v6445_v13  ;;  %9412 = vst [vmem:[#allocation84_spill] sm:$0xff] %v7400_v25  ;;  %v7405_v17 = vmul.f32 %v4047_v20, %v7132_v53 }
 0x256   : > { %9410 = vst [vmem:[#allocation82_spill] sm:$0xff] %v7388_v26  ;;  %9411 = vst [vmem:[#allocation83_spill] sm:$0xff] %v7391_v34  ;;  %v1971_v49 = vrot.slane %v1905_v51, %v6445_v13  ;;  %v3424_v36 = vcombine.high %v3416_v32, %v3416_v32  ;;  %v1800_v34 = vmul.f32 %v6992_v45, %v7400_v25  ;;  %v7410_v33 = vpop.eup %6110 }
 0x257   : > { %9413 = vst [vmem:[#allocation85_spill] sm:$0xff] %v7405_v17  ;;  %v7413_v11 = vmul.f32 %v4051_v60, %v7132_v53  ;;  %v1983_v4 = vrot.slane %v1904_v8, %v6445_v13  ;;  %v1987_v2 = vrot.slane %v1906_v44, %v6445_v13  ;;  %v3425_v26 = vcombine.high %v3423_v58, %v3423_v58  ;;  %v7417_v3 = vpop.eup %6112  ;;  %v7429_v60 = vpop.permute.xlu1 %1164 }
 0x258   : > { %9415 = vst [vmem:[#allocation87_spill] sm:$0xff] %v7417_v3  ;;  %v7420_v20 = vmul.f32 %v4055_v22, %v7132_v53  ;;  %v7423_v51 = vmul.f32 %v1959_v29, %v7110_v10  ;;  %v3432_v17 = vrot.slane %v3416_v32, %v6699_v48  ;;  %v3439_v6 = vrot.slane %v3423_v58, %v6699_v48  ;;  %v7427_v57 = vpop.eup %6114 }
 0x259   : > { %9414 = vst [vmem:[#allocation86_spill] sm:$0xff] %v7413_v11  ;;  %9417 = vst [vmem:[#allocation89_spill] sm:$0xff] %v7427_v57  ;;  %v7432_v8 = vmul.f32 %v1963_v15, %v7110_v10  ;;  %v7435_v44 = vmul.f32 %v1967_v55, %v7110_v10  ;;  %v7438_v22 = vmul.f32 %v1975_v61, %v7110_v10  ;;  %v7443_v11 = vpop.eup %6116 }
 0x25a   : > { %9416 = vst [vmem:[#allocation88_spill] sm:$0xff] %v7420_v20  ;;  %9418 = vst [vmem:[#allocation90_spill] sm:$0xff] %v7429_v60  ;;  %v7441_v29 = vmul.f32 %v1979_v9, %v7110_v10  ;;  %v7446_v32 = vmul.f32 %v1971_v49, %v7110_v10  ;;  %v3446_v58 = vrot.slane %v3424_v36, %v6699_v48  ;;  %v1825_v20 = vmul.f32 1.442695, %v1800_v34  ;;  %v7451_v57 = vpop.eup %6118 }
 0x25b   : > { %9419 = vst [vmem:[#allocation91_spill] sm:$0xff] %v7443_v11  ;;  %v2317_v15 = vmul.f32 %v6945_v12, %v7400_v25  ;;  %9420 = vst [vmem:[#allocation92_spill] sm:$0xff] %v7451_v57  ;;  %v7454_v55 = vmul.f32 %v1983_v4, %v7110_v10  ;;  %v7457_v61 = vmul.f32 %v1987_v2, %v7110_v10  ;;  %v7462_v11 = vpop.eup %6120 }
 0x25c   : > { %v3453_v9 = vrot.slane %v3425_v26, %v6699_v48  ;;  %v2834_v49 = vmul.f32 %v6982_v59, %v7400_v25  ;;  %9422 = vst [vmem:[#allocation94_spill] sm:$0xff] %v7462_v11  ;;  %v3454_v36 = vcombine.high %v3432_v17, %v3432_v17  ;;  %v3455_v34 = vcombine.high %v3439_v6, %v3439_v6 }
 0x25d   : > { %9421 = vst [vmem:[#allocation93_spill] sm:$0xff] %v7454_v55  ;;  %v3351_v53 = vmul.f32 %v7028_v31, %v7400_v25  ;;  %v1269_v57 = vmul.f32 %v7016_v16, %v7357_v56  ;;  %v3510_v4 = vrot.slane %v3432_v17, %v6445_v13  ;;  %v3526_v2 = vrot.slane %v3439_v6, %v6445_v13  ;;  %v7476_v31 = vpop.permute.xlu1 %1178 }
 0x25e   : > { %v1270_v26 = vmul.f32 %v7016_v16, %v6899_v5  ;;  %v1271_v10 = vmul.f32 %v7016_v16, %v7380_v0  ;;  %v3456_v23 = vcombine.high %v3446_v58, %v3446_v58  ;;  %6122 = vpow2.f32 %v1825_v20  ;;  %9423 = vst [vmem:[#allocation95_spill] sm:$0xff] %v7476_v31 }
 0x25f   : > { %v2342_v11 = vmul.f32 1.442695, %v2317_v15  ;;  %v1273_v52 = vmul.f32 %v7016_v16, %v7429_v60  ;;  %v3457_v47 = vcombine.high %v3453_v9, %v3453_v9  ;;  %v3514_v54 = vrot.slane %v3446_v58, %v6445_v13 }
 0x260   : > { %v1285_v17 = vmul.f32 1.442695, %v1269_v57  ;;  %v1287_v28 = vmul.f32 1.442695, %v1270_v26  ;;  %v3518_v6 = vrot.slane %v3454_v36, %v6445_v13  ;;  %v3530_v5 = vrot.slane %v3453_v9, %v6445_v13 }
 0x261   : > { %v1275_v50 = vmul.f32 %v7016_v16, %v7476_v31  ;;  %v1289_v20 = vmul.f32 1.442695, %v1271_v10  ;;  %v3534_v15 = vrot.slane %v3455_v34, %v6445_v13  ;;  %v7485_v3 = vmul.f32 %v3510_v4, %v7124_v30 }
 0x262   : > { %v1336_v55 = vcombine.high %v1002_v24, %v1002_v24  ;;  %v7489_v57 = vmul.f32 %v3526_v2, %v7124_v30  ;;  %6124 = vpow2.f32 %v1285_v17  ;;  %v1293_v58 = vmul.f32 1.442695, %v1273_v52 }
 0x263   : > { %9424 = vst [vmem:[#allocation96_spill] sm:$0xff] %v7485_v3  ;;  %v1343_v9 = vrot.slane %v1002_v24, %v6699_v48  ;;  %v3522_v36 = vrot.slane %v3456_v23, %v6445_v13  ;;  %6126 = vpow2.f32 %v1287_v28  ;;  %v1295_v10 = vmul.f32 1.442695, %v7232_v37 }
 0x264   : > { %9425 = vst [vmem:[#allocation97_spill] sm:$0xff] %v7489_v57  ;;  %v1350_v34 = vrot.slane %v1336_v55, %v6699_v48  ;;  %6128 = vpow2.f32 %v1289_v20  ;;  %v1297_v4 = vmul.f32 1.442695, %v1275_v50  ;;  %v1791_v46 = vmul.f32 %v6992_v45, %v7357_v56 }
 0x265   : > { %v1351_v26 = vcombine.high %v1343_v9, %v1343_v9  ;;  %v7498_v2 = vrot.slane %v3457_v47, %v6445_v13  ;;  %6130 = vpow2.f32 %v1291_v1  ;;  %v1793_v24 = vmul.f32 %v6992_v45, %v7380_v0 }
 0x266   : > { %v1352_v52 = vcombine.high %v1350_v34, %v1350_v34  ;;  %v7503_v23 = vmul.f32 %v3514_v54, %v7124_v30  ;;  %v7506_v28 = vmul.f32 %v3518_v6, %v7124_v30  ;;  %v2859_v37 = vmul.f32 1.442695, %v2834_v49 }
 0x267   : > { %6132 = vpow2.f32 %v1293_v58  ;;  %v1359_v50 = vrot.slane %v1343_v9, %v6699_v48  ;;  %v1373_v55 = vrot.slane %v1351_v26, %v6699_v48  ;;  %v1795_v1 = vmul.f32 %v6992_v45, %v7429_v60 }
 0x268   : > { %9426 = vst [vmem:[#allocation98_spill] sm:$0xff] %v7503_v23  ;;  %9427 = vst [vmem:[#allocation99_spill] sm:$0xff] %v7506_v28  ;;  %6134 = vpow2.f32 %v1295_v10  ;;  %v1380_v47 = vrot.slane %v1352_v52, %v6699_v48  ;;  %v1797_v54 = vmul.f32 %v6992_v45, %v7476_v31  ;;  %v1807_v17 = vmul.f32 1.442695, %v1791_v46 }
 0x269   : > { %6136 = vpow2.f32 %v1297_v4  ;;  %v7516_v6 = vmul.f32 %v3530_v5, %v7124_v30  ;;  %v7519_v49 = vmul.f32 %v3534_v15, %v7124_v30  ;;  %v1811_v58 = vmul.f32 1.442695, %v1793_v24 }
 0x26a   : > { %v1384_v20 = vcombine.high %v1380_v47, %v1380_v47  ;;  %v7522_v9 = vmul.f32 %v3522_v36, %v7124_v30  ;;  %6138 = vpow2.f32 %v2342_v11  ;;  %v7524_v10 = vmul.f32 1.442695, %v3351_v53 }
 0x26b   : > { %9428 = vst [vmem:[#allocation100_spill] sm:$0xff] %v7516_v6  ;;  %9429 = vst [vmem:[#allocation101_spill] sm:$0xff] %v7519_v49  ;;  %v7527_v4 = vrot.slane %v1350_v34, %v6699_v48  ;;  %v7529_v26 = vpop.eup %6122  ;;  %6140 = vpow2.f32 %v2859_v37  ;;  %v7533_v5 = vmul.f32 %v7066_v63, %v7400_v25  ;;  %v1381_v15 = vcombine.high %v1359_v50, %v1359_v50 }
 0x26c   : > { %9430 = vst [vmem:[#allocation102_spill] sm:$0xff] %v7522_v9  ;;  %9431 = vst [vmem:[#allocation103_spill] sm:$0xff] %v7529_v26  ;;  %v1383_v46 = vcombine.high %v1373_v55, %v1373_v55  ;;  %v1465_v52 = vrot.slane %v1384_v20, %v6445_v13  ;;  %6142 = vpow2.f32 %v1807_v17  ;;  %v1815_v36 = vmul.f32 1.442695, %v1795_v1 }
 0x26d   : > { %v1819_v24 = vmul.f32 1.442695, %v1797_v54  ;;  %v7538_v53 = vmul.f32 %v7044_v21, %v7400_v25  ;;  %v1441_v11 = vrot.slane %v1373_v55, %v6445_v13  ;;  %6144 = vpow2.f32 %v1811_v58 }
 0x26e   : > { %v2308_v34 = vmul.f32 %v6945_v12, %v7357_v56  ;;  %v7545_v37 = vmul.f32 %v7074_v41, %v7400_v25  ;;  %v1324_v49 = vmul.f32 0.0, %v7394_v38  ;;  %v1382_v1 = vcombine.high %v7527_v4, %v7527_v4 }
 0x26f   : > { %v2310_v54 = vmul.f32 %v6945_v12, %v7380_v0  ;;  %v6125_v17 = vpop.eup %6124  ;;  %v1437_v20 = vrot.slane %v1359_v50, %v6445_v13  ;;  %v1445_v55 = vrot.slane %v1381_v15, %v6445_v13  ;;  %v1449_v58 = vrot.slane %v1383_v46, %v6445_v13 }
 0x270   : > { %6146 = vpow2.f32 %v1815_v36  ;;  %v6127_v57 = vpop.eup %6126  ;;  %v1457_v28 = vrot.slane %v1380_v47, %v6445_v13  ;;  %v1521_v3 = vmul.f32 %v1465_v52, %v7060_v62  ;;  %v2312_v38 = vmul.f32 %v6945_v12, %v7429_v60 }
 0x271   : > { %6148 = vpow2.f32 %v1819_v24  ;;  %v6129_v6 = vpop.eup %6128  ;;  %v1318_v9 = vmul.f32 0.0, %v6127_v57  ;;  %v1453_v23 = vrot.slane %v7527_v4, %v6445_v13  ;;  %v1515_v50 = vmul.f32 %v1441_v11, %v7060_v62 }
 0x272   : > { %v2324_v15 = vmul.f32 1.442695, %v2308_v34  ;;  %v6131_v26 = vpop.eup %6130  ;;  %v1461_v46 = vrot.slane %v1382_v1, %v6445_v13  ;;  %v7563_v36 = vadd.f32 %v1521_v3, %v1324_v49  ;;  %v2314_v47 = vmul.f32 %v6945_v12, %v7476_v31 }
 0x273   : > { %v2328_v52 = vmul.f32 1.442695, %v2310_v54  ;;  %v1320_v41 = vmul.f32 0.0, %v6131_v26  ;;  %v1514_v21 = vmul.f32 %v1437_v20, %v7060_v62  ;;  %v1517_v57 = vmul.f32 %v1449_v58, %v7060_v62 }
 0x274   : > { %9432 = vst [vmem:[#allocation104_spill] sm:$0xff] %v7563_v36  ;;  %v6133_v24 = vpop.eup %6132  ;;  %v7569_v63 = vadd.f32 %v1515_v50, %v1318_v9  ;;  %v1317_v11 = vmul.f32 0.0, %v6125_v17  ;;  %v1516_v34 = vmul.f32 %v1445_v55, %v7060_v62  ;;  %v1519_v1 = vmul.f32 %v1457_v28, %v7060_v62 }
 0x275   : > { %v6135_v4 = vpop.eup %6134  ;;  %v2332_v3 = vmul.f32 1.442695, %v2312_v38  ;;  %v1319_v25 = vmul.f32 0.0, %v6129_v6  ;;  %v7573_v12 = vadd.f32 %v1517_v57, %v1320_v41  ;;  %6150 = vpow2.f32 %v2324_v15 }
 0x276   : > { %9433 = vst [vmem:[#allocation105_spill] sm:$0xff] %v7569_v63  ;;  %v6137_v49 = vpop.eup %6136  ;;  %v1322_v16 = vmul.f32 0.0, %v6135_v4  ;;  %v1846_v26 = vmul.f32 %v7402_v27, %v7563_v36  ;;  %6152 = vpow2.f32 %v2328_v52  ;;  %v2336_v54 = vmul.f32 1.442695, %v2314_v47 }
 0x277   : > { %9434 = vst [vmem:[#allocation106_spill] sm:$0xff] %v7573_v12  ;;  %v2825_v9 = vmul.f32 %v6982_v59, %v7357_v56  ;;  %v7579_v17 = vpop.eup %6138  ;;  %v1321_v20 = vmul.f32 0.0, %v6133_v24  ;;  %v1840_v28 = vmul.f32 %v7220_v40, %v7569_v63  ;;  %v1842_v41 = vmul.f32 %v7234_v7, %v7573_v12 }
 0x278   : > { %v7581_v55 = vadd.f32 %v1519_v1, %v1322_v16  ;;  %v7587_v6 = vpop.eup %6140  ;;  %6154 = vpow2.f32 %v7524_v10  ;;  %v1323_v27 = vmul.f32 0.0, %v6137_v49  ;;  %v1518_v58 = vmul.f32 %v1453_v23, %v7060_v62 }
 0x279   : > { %v7591_v38 = vadd.f32 %v1514_v21, %v1317_v11  ;;  %v6143_v50 = vpop.eup %6142  ;;  %v7593_v15 = vadd.f32 %v1516_v34, %v1319_v25  ;;  %6156 = vpow2.f32 %v2332_v3  ;;  %v2827_v40 = vmul.f32 %v6982_v59, %v7380_v0  ;;  %v5861_v21 = vpop.f32.mrf.mxu1 }
 0x27a   : > { %9435 = vst [vmem:[#allocation107_spill] sm:$0xff] %v7581_v55  ;;  %v1844_v16 = vmul.f32 %v7308_v19, %v7581_v55  ;;  %v6145_v7 = vpop.eup %6144  ;;  %v1520_v47 = vmul.f32 %v1461_v46, %v7060_v62  ;;  %v7601_v10 = vadd.f32 %v7457_v61, %v1846_v26  ;;  %6158 = vpow2.f32 %v2336_v54 }
 0x27b   : > { %9436 = vst [vmem:[#allocation108_spill] sm:$0xff] %v7591_v38  ;;  %9437 = vst [vmem:[#allocation109_spill] sm:$0xff] %v7593_v15  ;;  %v2841_v23 = vmul.f32 1.442695, %v2825_v9  ;;  %v7603_v52 = vadd.f32 %v1518_v58, %v1321_v20  ;;  %v7606_v25 = vadd.f32 %v7432_v8, %v1840_v28  ;;  %v7609_v19 = vadd.f32 %v7446_v32, %v1842_v41 }
 0x27c   : > { %9438 = vst [vmem:[#allocation110_spill] sm:$0xff] %v7601_v10  ;;  %v3975_v24 = vcombine.high %v5861_v21, %v5861_v21  ;;  %v3893_v4 = vmul.f32 1.442695, %v7533_v5  ;;  %v4410_v46 = vmul.f32 1.442695, %v7538_v53  ;;  %v7613_v11 = vadd.f32 %v1520_v47, %v1323_v27 }
 0x27d   : > { %9439 = vst [vmem:[#allocation111_spill] sm:$0xff] %v7603_v52  ;;  %9440 = vst [vmem:[#allocation112_spill] sm:$0xff] %v7606_v25  ;;  %v6147_v57 = vpop.eup %6146  ;;  %v1839_v61 = vmul.f32 %v6143_v50, %v7591_v38  ;;  %v1841_v1 = vmul.f32 %v6145_v7, %v7593_v15  ;;  %v7618_v3 = vadd.f32 %v7441_v29, %v1844_v16  ;;  %v2845_v32 = vmul.f32 1.442695, %v2827_v40 }
 0x27e   : > { %9441 = vst [vmem:[#allocation113_spill] sm:$0xff] %v7609_v19  ;;  %9442 = vst [vmem:[#allocation114_spill] sm:$0xff] %v7613_v11  ;;  %v6149_v34 = vpop.eup %6148  ;;  %v2829_v8 = vmul.f32 %v6982_v59, %v7429_v60  ;;  %v2363_v49 = vmul.f32 %v7410_v33, %v7601_v10  ;;  %v2831_v5 = vmul.f32 %v6982_v59, %v7476_v31  ;;  %6160 = vpow2.f32 %v2841_v23 }
 0x27f   : > { %9443 = vst [vmem:[#allocation115_spill] sm:$0xff] %v7618_v3  ;;  %v3982_v53 = vrot.slane %v5861_v21, %v6699_v48  ;;  %v1843_v26 = vmul.f32 %v6147_v57, %v7603_v52  ;;  %v2357_v54 = vmul.f32 %v7186_v18, %v7606_v25  ;;  %v2359_v29 = vmul.f32 %v7194_v42, %v7609_v19  ;;  %v9489_v25 = vld [vmem:[#allocation84_spill] sm:$0xff] }
 0x280   : > { %v3989_v9 = vrot.slane %v3975_v24, %v6699_v48  ;;  %6162 = vpow2.f32 %v3893_v4  ;;  %v4927_v20 = vmul.f32 1.442695, %v7545_v37  ;;  %v1845_v33 = vmul.f32 %v6149_v34, %v7613_v11 }
 0x281   : > { %v7636_v28 = vadd.f32 %v7423_v51, %v1839_v61  ;;  %v7639_v41 = vadd.f32 %v7435_v44, %v1841_v1  ;;  %v2361_v27 = vmul.f32 %v7304_v14, %v7618_v3  ;;  %6164 = vpow2.f32 %v2845_v32 }
 0x282   : > { %v2849_v18 = vmul.f32 1.442695, %v2829_v8  ;;  %v6151_v58 = vpop.eup %6150  ;;  %6166 = vpow2.f32 %v4410_v46  ;;  %v7644_v42 = vadd.f32 %v7228_v39, %v2363_v49  ;;  %v2853_v50 = vmul.f32 1.442695, %v2831_v5  ;;  %v9451_v39 = vld [vmem:[#allocation93_spill] sm:$0xff]  ;;  %v9458_v49 = vld [vmem:[#allocation48_spill] sm:$0xff] }
 0x283   : > { %9444 = vst [vmem:[#allocation116_spill] sm:$0xff] %v7636_v28  ;;  %9445 = vst [vmem:[#allocation117_spill] sm:$0xff] %v7639_v41  ;;  %v3990_v37 = vcombine.high %v3982_v53, %v3982_v53  ;;  %v6153_v16 = vpop.eup %6152  ;;  %v7647_v40 = vadd.f32 %v7438_v22, %v1843_v26  ;;  %v7650_v51 = vadd.f32 %v7096_v35, %v2357_v54  ;;  %6168 = vpow2.f32 %v4927_v20  ;;  %v9454_v35 = vld [vmem:[#allocation46_spill] sm:$0xff]  ;;  %v9457_v8 = vld [vmem:[#allocation25_spill] sm:$0xff]  ;;  %v5853_v26 = vpop.f32.mrf.mxu0 }
 0x284   : > { %9446 = vst [vmem:[#allocation118_spill] sm:$0xff] %v7644_v42  ;;  %v7653_v44 = vadd.f32 %v7190_v43, %v2359_v29  ;;  %v3991_v14 = vcombine.high %v3989_v9, %v3989_v9  ;;  %v7657_v7 = vmul.f32 %v7498_v2, %v7124_v30  ;;  %v7660_v47 = vadd.f32 %v9451_v39, %v1845_v33  ;;  %v9456_v2 = vld [vmem:[#allocation87_spill] sm:$0xff]  ;;  %v9459_v29 = vld [vmem:[#allocation33_spill] sm:$0xff] }
 0x285   : > { %9447 = vst [vmem:[#allocation119_spill] sm:$0xff] %v7647_v40  ;;  %9448 = vst [vmem:[#allocation120_spill] sm:$0xff] %v7650_v51  ;;  %v2356_v23 = vmul.f32 %v6151_v58, %v7636_v28  ;;  %v7663_v21 = vpop.eup %6154  ;;  %v2358_v22 = vmul.f32 %v6153_v16, %v7639_v41  ;;  %v7667_v24 = vadd.f32 %v9454_v35, %v2361_v27  ;;  %6170 = vpow2.f32 %v2849_v18  ;;  %v1037_v27 = vpop.f32.mrf.mxu1  ;;  %v9461_v18 = vld [vmem:[#allocation35_spill] sm:$0xff] }
 0x286   : > { %9449 = vst [vmem:[#allocation121_spill] sm:$0xff] %v7653_v44  ;;  %9450 = vst [vmem:[#allocation122_spill] sm:$0xff] %v7657_v7  ;;  %v3998_v43 = vrot.slane %v3982_v53, %v6699_v48  ;;  %v6157_v57 = vpop.eup %6156  ;;  %6172 = vpow2.f32 %v2853_v50  ;;  %v7672_v4 = vmul.f32 %v9456_v2, %v7644_v42  ;;  %v4005_v46 = vrot.slane %v3989_v9, %v6699_v48  ;;  %v9463_v50 = vld [vmem:[#allocation64_spill] sm:$0xff] }
 0x287   : > { %9452 = vst [vmem:[#allocation93_spill] sm:$0xff] %v7660_v47  ;;  %9453 = vst [vmem:[#allocation123_spill] sm:$0xff] %v7663_v21  ;;  %v4012_v61 = vrot.slane %v3990_v37, %v6699_v48  ;;  %v6159_v34 = vpop.eup %6158  ;;  %v2360_v1 = vmul.f32 %v6157_v57, %v7647_v40  ;;  %v7679_v32 = vmul.f32 %v9457_v8, %v7650_v51 }
 0x288   : > { %9455 = vst [vmem:[#allocation46_spill] sm:$0xff] %v7667_v24  ;;  %v7683_v5 = vmul.f32 %v9458_v49, %v7653_v44  ;;  %v4019_v53 = vrot.slane %v3991_v14, %v6699_v48  ;;  %v2362_v54 = vmul.f32 %v6159_v34, %v7660_v47  ;;  %v7688_v9 = vadd.f32 %v9459_v29, %v2356_v23  ;;  %v9464_v34 = vld [vmem:[#allocation45_spill] sm:$0xff]  ;;  %v7704_v29 = vpop.permute.xlu1 %1192 }
 0x289   : > { %v1907_v20 = vcombine.high %v5853_v26, %v5853_v26  ;;  %v1914_v33 = vrot.slane %v5853_v26, %v6699_v48  ;;  %v7692_v58 = vadd.f32 %v9461_v18, %v2358_v22  ;;  %v7696_v37 = vmul.f32 %v9463_v50, %v7667_v24  ;;  %9466 = vst [vmem:[#allocation33_spill] sm:$0xff] %v7704_v29  ;;  %v9467_v18 = vld [vmem:[#allocation47_spill] sm:$0xff] }
 0x28a   : > { %9460 = vst [vmem:[#allocation87_spill] sm:$0xff] %v7688_v9  ;;  %v4020_v16 = vcombine.high %v3998_v43, %v3998_v43  ;;  %v3458_v39 = vcombine.high %v1037_v27, %v1037_v27  ;;  %v4021_v14 = vcombine.high %v4005_v46, %v4005_v46  ;;  %v4022_v35 = vcombine.high %v4012_v61, %v4012_v61 }
 0x28b   : > { %9462 = vst [vmem:[#allocation25_spill] sm:$0xff] %v7692_v58  ;;  %v1921_v57 = vrot.slane %v1907_v20, %v6699_v48  ;;  %v1922_v2 = vcombine.high %v1914_v33, %v1914_v33  ;;  %v6161_v23 = vpop.eup %6160  ;;  %v7700_v8 = vadd.f32 %v9464_v34, %v2360_v1  ;;  %v4023_v49 = vcombine.high %v4019_v53, %v4019_v53 }
 0x28c   : > { %v4059_v26 = vrot.slane %v3998_v43, %v6445_v13  ;;  %v4063_v22 = vrot.slane %v4012_v61, %v6445_v13  ;;  %v7707_v50 = vadd.f32 %v9467_v18, %v2362_v54  ;;  %v1930_v24 = vrot.slane %v1914_v33, %v6699_v48 }
 0x28d   : > { %9465 = vst [vmem:[#allocation48_spill] sm:$0xff] %v7700_v8  ;;  %v1923_v42 = vcombine.high %v1921_v57, %v1921_v57  ;;  %v3465_v20 = vrot.slane %v1037_v27, %v6699_v48  ;;  %v7711_v44 = vpop.eup %6162  ;;  %v7714_v1 = vmul.f32 %v6161_v23, %v7688_v9  ;;  %v4067_v34 = vrot.slane %v4020_v16, %v6445_v13  ;;  %v9471_v9 = vld [vmem:[#allocation38_spill] sm:$0xff] }
 0x28e   : > { %9468 = vst [vmem:[#allocation35_spill] sm:$0xff] %v7707_v50  ;;  %9469 = vst [vmem:[#allocation64_spill] sm:$0xff] %v7711_v44  ;;  %v1944_v43 = vrot.slane %v1922_v2, %v6699_v48  ;;  %v3472_v61 = vrot.slane %v3458_v39, %v6699_v48  ;;  %v6165_v51 = vpop.eup %6164  ;;  %v4071_v54 = vrot.slane %v4022_v35, %v6445_v13 }
 0x28f   : > { %v4075_v18 = vrot.slane %v4005_v46, %v6445_v13  ;;  %v4079_v33 = vrot.slane %v4019_v53, %v6445_v13  ;;  %v1937_v27 = vrot.slane %v1921_v57, %v6699_v48  ;;  %v7723_v36 = vpop.eup %6166  ;;  %v7726_v23 = vmul.f32 %v6165_v51, %v7692_v58 }
 0x290   : > { %9470 = vst [vmem:[#allocation45_spill] sm:$0xff] %v7723_v36  ;;  %v4083_v16 = vrot.slane %v4021_v14, %v6445_v13  ;;  %v4087_v2 = vrot.slane %v4023_v49, %v6445_v13  ;;  %v1951_v39 = vrot.slane %v1923_v42, %v6699_v48  ;;  %v7732_v11 = vmul.f32 %v4059_v26, %v9471_v9  ;;  %v7737_v57 = vpop.eup %6168  ;;  %v7745_v42 = vpop.permute.xlu1 %1206 }
 0x291   : > { %v7735_v46 = vmul.f32 %v4063_v22, %v9471_v9  ;;  %v1952_v53 = vcombine.high %v1930_v24, %v1930_v24  ;;  %v3473_v35 = vcombine.high %v3465_v20, %v3465_v20  ;;  %9474 = vst [vmem:[#allocation124_spill] sm:$0xff] %v7737_v57  ;;  %v7740_v55 = vmul.f32 %v4067_v34, %v9471_v9  ;;  %v7756_v34 = vpop.permute.xlu0 %1213 }
 0x292   : > { %9472 = vst [vmem:[#allocation47_spill] sm:$0xff] %v7732_v11  ;;  %v7743_v51 = vmul.f32 %v4071_v54, %v9471_v9  ;;  %v1954_v14 = vcombine.high %v1944_v43, %v1944_v43  ;;  %v3474_v49 = vcombine.high %v3472_v61, %v3472_v61  ;;  %v6171_v58 = vpop.eup %6170  ;;  %9477 = vst [vmem:[#allocation127_spill] sm:$0xff] %v7745_v42 }
 0x293   : > { %9473 = vst [vmem:[#allocation38_spill] sm:$0xff] %v7735_v46  ;;  %9475 = vst [vmem:[#allocation125_spill] sm:$0xff] %v7740_v55  ;;  %v7748_v26 = vmul.f32 %v4075_v18, %v9471_v9  ;;  %v7751_v22 = vmul.f32 %v4079_v33, %v9471_v9  ;;  %v7754_v10 = vmul.f32 %v4083_v16, %v9471_v9  ;;  %v6173_v52 = vpop.eup %6172 }
 0x294   : > { %9476 = vst [vmem:[#allocation126_spill] sm:$0xff] %v7743_v51  ;;  %v1953_v57 = vcombine.high %v1937_v27, %v1937_v27  ;;  %v7759_v54 = vmul.f32 %v6171_v58, %v7700_v8  ;;  %v1955_v12 = vcombine.high %v1951_v39, %v1951_v39  ;;  %v3481_v47 = vrot.slane %v3465_v20, %v6699_v48 }
 0x295   : > { %9478 = vst [vmem:[#allocation128_spill] sm:$0xff] %v7748_v26  ;;  %9479 = vst [vmem:[#allocation129_spill] sm:$0xff] %v7751_v22  ;;  %v1802_v18 = vmul.f32 %v6992_v45, %v7756_v34  ;;  %v1991_v15 = vrot.slane %v1930_v24, %v6445_v13  ;;  %v1995_v33 = vrot.slane %v1944_v43, %v6445_v13  ;;  %v9483_v43 = vld [vmem:[#allocation28_spill] sm:$0xff] }
 0x296   : > { %9480 = vst [vmem:[#allocation130_spill] sm:$0xff] %v7754_v10  ;;  %9481 = vst [vmem:[#allocation131_spill] sm:$0xff] %v7759_v54  ;;  %v1999_v16 = vrot.slane %v1952_v53, %v6445_v13  ;;  %v3495_v3 = vrot.slane %v3473_v35, %v6699_v48  ;;  %v2003_v63 = vrot.slane %v1954_v14, %v6445_v13 }
 0x297   : > { %v2007_v38 = vrot.slane %v1937_v27, %v6445_v13  ;;  %v3488_v58 = vrot.slane %v3472_v61, %v6699_v48  ;;  %v3502_v8 = vrot.slane %v3474_v49, %v6699_v48  ;;  %v7773_v20 = vmul.f32 %v4087_v2, %v9471_v9  ;;  %v7783_v61 = vpop.permute.xlu1 %1220  ;;  %v9486_v49 = vld [vmem:[#allocation34_spill] sm:$0xff] }
 0x298   : > { %v2011_v40 = vrot.slane %v1951_v39, %v6445_v13  ;;  %v2015_v24 = vrot.slane %v1953_v57, %v6445_v13  ;;  %v1280_v53 = vmul.f32 %v9483_v43, %v7756_v34  ;;  %v7780_v35 = vmul.f32 %v6173_v52, %v7707_v50  ;;  %9485 = vst [vmem:[#allocation134_spill] sm:$0xff] %v7783_v61 }
 0x299   : > { %9482 = vst [vmem:[#allocation132_spill] sm:$0xff] %v7773_v20  ;;  %v2019_v14 = vrot.slane %v1955_v12, %v6445_v13  ;;  %v3503_v27 = vcombine.high %v3481_v47, %v3481_v47  ;;  %v1829_v19 = vmul.f32 1.442695, %v1802_v18  ;;  %v7786_v41 = vmul.f32 %v1991_v15, %v9486_v49 }
 0x29a   : > { %9484 = vst [vmem:[#allocation133_spill] sm:$0xff] %v7780_v35  ;;  %v7789_v9 = vmul.f32 %v1995_v33, %v9486_v49  ;;  %v7792_v2 = vmul.f32 %v1999_v16, %v9486_v49  ;;  %v3505_v39 = vcombine.high %v3495_v3, %v3495_v3  ;;  %v7795_v57 = vmul.f32 %v2003_v63, %v9486_v49 }
 0x29b   : > { %v7798_v52 = vmul.f32 %v2007_v38, %v9486_v49  ;;  %v3504_v12 = vcombine.high %v3488_v58, %v3488_v58  ;;  %v3506_v18 = vcombine.high %v3502_v8, %v3502_v8  ;;  %v7801_v20 = vmul.f32 %v2011_v40, %v9486_v49 }
 0x29c   : > { %v7804_v15 = vmul.f32 %v2015_v24, %v9486_v49  ;;  %v3542_v33 = vrot.slane %v3481_v47, %v6445_v13  ;;  %v1277_v16 = vmul.f32 %v9483_v43, %v7704_v29  ;;  %v7810_v50 = vmul.f32 %v2019_v14, %v9486_v49  ;;  %v1005_v47 = vpop.f32.mrf.mxu0 }
 0x29d   : > { %9487 = vst [vmem:[#allocation34_spill] sm:$0xff] %v7801_v20  ;;  %v3546_v63 = vrot.slane %v3495_v3, %v6445_v13  ;;  %v3550_v38 = vrot.slane %v3503_v27, %v6445_v13  ;;  %v1278_v28 = vmul.f32 %v9483_v43, %v9489_v25  ;;  %v3554_v40 = vrot.slane %v3505_v39, %v6445_v13  ;;  %v7829_v25 = vpop.permute.xlu1 %1234 }
 0x29e   : > { %9488 = vst [vmem:[#allocation135_spill] sm:$0xff] %v7810_v50  ;;  %v3558_v24 = vrot.slane %v3488_v58, %v6445_v13  ;;  %v3562_v10 = vrot.slane %v3502_v8, %v6445_v13  ;;  %v1279_v26 = vmul.f32 %v9483_v43, %v7745_v42  ;;  %v3566_v14 = vrot.slane %v3504_v12, %v6445_v13 }
 0x29f   : > { %v3570_v49 = vrot.slane %v3506_v18, %v6445_v13  ;;  %v7824_v3 = vmul.f32 %v3542_v33, %v7124_v30  ;;  %v7827_v27 = vmul.f32 %v3546_v63, %v7124_v30  ;;  %9492 = vst [vmem:[#allocation137_spill] sm:$0xff] %v7829_v25  ;;  %v7832_v58 = vmul.f32 %v3550_v38, %v7124_v30 }
 0x2a0   : > { %v7835_v8 = vmul.f32 %v3558_v24, %v7124_v30  ;;  %v1281_v39 = vmul.f32 %v9483_v43, %v7783_v61  ;;  %v1301_v12 = vmul.f32 1.442695, %v1277_v16  ;;  %v1283_v18 = vmul.f32 %v9483_v43, %v7829_v25  ;;  %v9497_v24 = vld [vmem:[#allocation26_spill] sm:$0xff] }
 0x2a1   : > { %9490 = vst [vmem:[#allocation84_spill] sm:$0xff] %v7824_v3  ;;  %9491 = vst [vmem:[#allocation136_spill] sm:$0xff] %v7827_v27  ;;  %v1303_v33 = vmul.f32 1.442695, %v1278_v28  ;;  %v1385_v50 = vcombine.high %v1005_v47, %v1005_v47  ;;  %v1392_v63 = vrot.slane %v1005_v47, %v6699_v48  ;;  %v7843_v55 = vmul.f32 %v3554_v40, %v7124_v30 }
 0x2a2   : > { %9493 = vst [vmem:[#allocation138_spill] sm:$0xff] %v7832_v58  ;;  %9494 = vst [vmem:[#allocation139_spill] sm:$0xff] %v7835_v8  ;;  %v7846_v38 = vmul.f32 %v3562_v10, %v7124_v30  ;;  %v2319_v11 = vmul.f32 %v9497_v24, %v7756_v34  ;;  %v1305_v22 = vmul.f32 1.442695, %v1279_v26  ;;  %v7851_v36 = vmul.f32 %v3566_v14, %v7124_v30 }
 0x2a3   : > { %9495 = vst [vmem:[#allocation140_spill] sm:$0xff] %v7843_v55  ;;  %6174 = vpow2.f32 %v1829_v19  ;;  %v2836_v28 = vmul.f32 %v6982_v59, %v7756_v34  ;;  %v1307_v16 = vmul.f32 1.442695, %v1280_v53  ;;  %v1309_v47 = vmul.f32 1.442695, %v1281_v39  ;;  %v9499_v19 = vld [vmem:[#allocation29_spill] sm:$0xff] }
 0x2a4   : > { %9496 = vst [vmem:[#allocation141_spill] sm:$0xff] %v7846_v38  ;;  %9498 = vst [vmem:[#allocation142_spill] sm:$0xff] %v7851_v36  ;;  %6176 = vpow2.f32 %v1301_v12  ;;  %v1400_v8 = vcombine.high %v1392_v63, %v1392_v63  ;;  %v1799_v40 = vmul.f32 %v6992_v45, %v7704_v29  ;;  %v1313_v10 = vmul.f32 1.442695, %v1283_v18  ;;  %v9500_v39 = vld [vmem:[#allocation31_spill] sm:$0xff] }
 0x2a5   : > { %6178 = vpow2.f32 %v1303_v33  ;;  %v1399_v58 = vrot.slane %v1385_v50, %v6699_v48  ;;  %v1801_v26 = vmul.f32 %v6992_v45, %v7745_v42  ;;  %v2346_v14 = vmul.f32 1.442695, %v2319_v11 }
 0x2a6   : > { %v3353_v36 = vmul.f32 %v9499_v19, %v7756_v34  ;;  %6180 = vpow2.f32 %v1305_v22  ;;  %v1408_v53 = vrot.slane %v1392_v63, %v6699_v48  ;;  %v2863_v12 = vmul.f32 1.442695, %v2836_v28 }
 0x2a7   : > { %v3870_v51 = vmul.f32 %v9500_v39, %v7756_v34  ;;  %6182 = vpow2.f32 %v1307_v16  ;;  %v1803_v18 = vmul.f32 %v6992_v45, %v7783_v61  ;;  %v1422_v50 = vrot.slane %v1400_v8, %v6699_v48  ;;  %v9502_v16 = vld [vmem:[#allocation30_spill] sm:$0xff]  ;;  %v9503_v8 = vld [vmem:[#allocation32_spill] sm:$0xff] }
 0x2a8   : > { %6184 = vpow2.f32 %v1309_v47  ;;  %v1805_v11 = vmul.f32 %v6992_v45, %v7829_v25  ;;  %v1823_v33 = vmul.f32 1.442695, %v1799_v40  ;;  %v1401_v46 = vcombine.high %v1399_v58, %v1399_v58 }
 0x2a9   : > { %6186 = vpow2.f32 %v1313_v10  ;;  %v1415_v22 = vrot.slane %v1399_v58, %v6699_v48  ;;  %v1827_v63 = vmul.f32 1.442695, %v1801_v26  ;;  %v7872_v28 = vmul.f32 %v3570_v49, %v7124_v30 }
 0x2aa   : > { %6188 = vpow2.f32 %v2346_v14  ;;  %v4387_v3 = vmul.f32 %v9502_v16, %v7756_v34  ;;  %v1430_v38 = vcombine.high %v1408_v53, %v1408_v53  ;;  %v3380_v47 = vmul.f32 1.442695, %v3353_v36 }
 0x2ab   : > { %9501 = vst [vmem:[#allocation29_spill] sm:$0xff] %v7872_v28  ;;  %6190 = vpow2.f32 %v2863_v12  ;;  %v4904_v44 = vmul.f32 %v9503_v8, %v7756_v34  ;;  %v1831_v55 = vmul.f32 1.442695, %v1803_v18  ;;  %v3897_v40 = vmul.f32 1.442695, %v3870_v51 }
 0x2ac   : > { %v1432_v10 = vcombine.high %v1422_v50, %v1422_v50  ;;  %6192 = vpow2.f32 %v1823_v33  ;;  %v1835_v27 = vmul.f32 1.442695, %v1805_v11  ;;  %v7879_v58 = vrot.slane %v1401_v46, %v6699_v48 }
 0x2ad   : > { %v1431_v30 = vcombine.high %v1415_v22, %v1415_v22  ;;  %v1469_v49 = vrot.slane %v1408_v53, %v6445_v13  ;;  %6194 = vpow2.f32 %v1827_v63  ;;  %v1473_v26 = vrot.slane %v1422_v50, %v6445_v13 }
 0x2ae   : > { %v1477_v14 = vrot.slane %v1430_v38, %v6445_v13  ;;  %6196 = vpow2.f32 %v1831_v55  ;;  %v2316_v36 = vmul.f32 %v9497_v24, %v7704_v29  ;;  %v4414_v51 = vmul.f32 1.442695, %v4387_v3 }
 0x2af   : > { %6198 = vpow2.f32 %v3380_v47  ;;  %v1485_v34 = vrot.slane %v1415_v22, %v6445_v13  ;;  %v2318_v46 = vmul.f32 %v9497_v24, %v7745_v42  ;;  %v7889_v18 = vmul.f32 1.442695, %v4904_v44  ;;  %v5864_v47 = vpop.f32.mrf.mxu1 }
 0x2b0   : > { %v6175_v12 = vpop.eup %6174  ;;  %v1481_v53 = vrot.slane %v1432_v10, %v6445_v13  ;;  %6200 = vpow2.f32 %v1835_v27  ;;  %v2320_v38 = vmul.f32 %v9497_v24, %v7783_v61  ;;  %v1433_v50 = vcombine.high %v7879_v58, %v7879_v58 }
 0x2b1   : > { %v6177_v55 = vpop.eup %6176  ;;  %6202 = vpow2.f32 %v3897_v40  ;;  %v1493_v3 = vrot.slane %v1431_v30, %v6445_v13  ;;  %v1522_v11 = vmul.f32 %v1469_v49, %v7060_v62  ;;  %v1523_v22 = vmul.f32 %v1473_v26, %v7060_v62 }
 0x2b2   : > { %v6179_v33 = vpop.eup %6178  ;;  %v1524_v44 = vmul.f32 %v1477_v14, %v7060_v62  ;;  %v2322_v27 = vmul.f32 %v9497_v24, %v7829_v25  ;;  %v2340_v63 = vmul.f32 1.442695, %v2316_v36  ;;  %v1526_v40 = vmul.f32 %v1485_v34, %v7060_v62 }
 0x2b3   : > { %v6181_v10 = vpop.eup %6180  ;;  %v1326_v28 = vmul.f32 0.0, %v6179_v33  ;;  %v2344_v21 = vmul.f32 1.442695, %v2318_v46  ;;  %v4960_v20 = vcombine.high %v5864_v47, %v5864_v47  ;;  %v1325_v30 = vmul.f32 0.0, %v6177_v55 }
 0x2b4   : > { %v6183_v8 = vpop.eup %6182  ;;  %v1525_v49 = vmul.f32 %v1481_v53, %v7060_v62  ;;  %v2348_v45 = vmul.f32 1.442695, %v2320_v38  ;;  %v2833_v26 = vmul.f32 %v6982_v59, %v7704_v29  ;;  %v1327_v35 = vmul.f32 0.0, %v6181_v10  ;;  %v9506_v53 = vld [vmem:[#allocation103_spill] sm:$0xff] }
 0x2b5   : > { %v6185_v14 = vpop.eup %6184  ;;  %v1328_v7 = vmul.f32 0.0, %v6183_v8  ;;  %v7906_v24 = vadd.f32 %v1523_v22, %v1326_v28  ;;  %v4967_v36 = vrot.slane %v5864_v47, %v6699_v48  ;;  %v1528_v34 = vmul.f32 %v1493_v3, %v7060_v62 }
 0x2b6   : > { %v6187_v33 = vpop.eup %6186  ;;  %v1329_v54 = vmul.f32 0.0, %v6185_v14  ;;  %6204 = vpow2.f32 %v2340_v63  ;;  %v2352_v46 = vmul.f32 1.442695, %v2322_v27  ;;  %v4974_v10 = vrot.slane %v4960_v20, %v6699_v48 }
 0x2b7   : > { %9504 = vst [vmem:[#allocation31_spill] sm:$0xff] %v7906_v24  ;;  %v6189_v55 = vpop.eup %6188  ;;  %v7910_v43 = vadd.f32 %v1525_v49, %v1328_v7  ;;  %v1848_v38 = vmul.f32 %v9506_v53, %v7906_v24  ;;  %6206 = vpow2.f32 %v2344_v21  ;;  %v1331_v28 = vmul.f32 0.0, %v6187_v33 }
 0x2b8   : > { %v7915_v8 = vpop.eup %6190  ;;  %v7917_v22 = vadd.f32 %v1522_v11, %v1325_v30  ;;  %6208 = vpow2.f32 %v2348_v45  ;;  %v2835_v3 = vmul.f32 %v6982_v59, %v7745_v42  ;;  %v7921_v27 = vadd.f32 %v1524_v44, %v1327_v35 }
 0x2b9   : > { %9505 = vst [vmem:[#allocation30_spill] sm:$0xff] %v7910_v43  ;;  %v6193_v63 = vpop.eup %6192  ;;  %v2837_v7 = vmul.f32 %v6982_v59, %v7783_v61  ;;  %v2857_v47 = vmul.f32 1.442695, %v2833_v26  ;;  %v4975_v49 = vcombine.high %v4967_v36, %v4967_v36  ;;  %v7925_v14 = vadd.f32 %v1526_v40, %v1329_v54 }
 0x2ba   : > { %9507 = vst [vmem:[#allocation103_spill] sm:$0xff] %v7917_v22  ;;  %9508 = vst [vmem:[#allocation143_spill] sm:$0xff] %v7921_v27  ;;  %v6195_v21 = vpop.eup %6194  ;;  %v1850_v20 = vmul.f32 %v6175_v12, %v7910_v43  ;;  %v7929_v11 = vadd.f32 %v7789_v9, %v1848_v38  ;;  %6210 = vpow2.f32 %v2352_v46  ;;  %v1489_v35 = vrot.slane %v7879_v58, %v6445_v13 }
 0x2bb   : > { %9509 = vst [vmem:[#allocation144_spill] sm:$0xff] %v7925_v14  ;;  %v6197_v45 = vpop.eup %6196  ;;  %6212 = vpow2.f32 %v4414_v51  ;;  %v2839_v44 = vmul.f32 %v6982_v59, %v7829_v25  ;;  %v4976_v30 = vcombine.high %v4974_v10, %v4974_v10  ;;  %v1497_v54 = vrot.slane %v1433_v50, %v6445_v13 }
 0x2bc   : > { %9510 = vst [vmem:[#allocation145_spill] sm:$0xff] %v7929_v11  ;;  %v7935_v26 = vpop.eup %6198  ;;  %v7938_v40 = vadd.f32 %v1528_v34, %v1331_v28  ;;  %v1847_v12 = vmul.f32 %v6193_v63, %v7917_v22  ;;  %v2861_v9 = vmul.f32 1.442695, %v2835_v3  ;;  %v1849_v46 = vmul.f32 %v6195_v21, %v7921_v27  ;;  %v9597_v22 = vld [vmem:[#allocation81_spill] sm:$0xff] }
 0x2bd   : > { %v6201_v33 = vpop.eup %6200  ;;  %v2865_v51 = vmul.f32 1.442695, %v2837_v7  ;;  %v4983_v53 = vrot.slane %v4967_v36, %v6699_v48  ;;  %v7944_v58 = vrot.slane %v4975_v49, %v6699_v48  ;;  %v1851_v43 = vmul.f32 %v6197_v45, %v7925_v14 }
 0x2be   : > { %9511 = vst [vmem:[#allocation146_spill] sm:$0xff] %v7938_v40  ;;  %v7946_v38 = vpop.eup %6202  ;;  %v7950_v50 = vadd.f32 %v7795_v57, %v1850_v20  ;;  %v2365_v34 = vmul.f32 %v7579_v17, %v7929_v11  ;;  %6214 = vpow2.f32 %v2857_v47  ;;  %v2869_v28 = vmul.f32 1.442695, %v2839_v44 }
 0x2bf   : > { %6216 = vpow2.f32 %v7889_v18  ;;  %v7956_v3 = vrot.slane %v4974_v10, %v6699_v48  ;;  %v7959_v36 = vrot.slane %v4976_v30, %v6699_v48  ;;  %v7962_v63 = vmul.f32 %v1489_v35, %v7060_v62  ;;  %v9517_v35 = vld [vmem:[#allocation39_spill] sm:$0xff] }
 0x2c0   : > { %9512 = vst [vmem:[#allocation147_spill] sm:$0xff] %v7950_v50  ;;  %v7965_v7 = vmul.f32 %v1497_v54, %v7060_v62  ;;  %v1853_v57 = vmul.f32 %v6201_v33, %v7938_v40  ;;  %v7969_v17 = vadd.f32 %v7786_v41, %v1847_v12  ;;  %v7972_v18 = vadd.f32 %v7792_v2, %v1849_v46  ;;  %v9515_v62 = vld [vmem:[#allocation68_spill] sm:$0xff]  ;;  %v9524_v40 = vld [vmem:[#allocation70_spill] sm:$0xff] }
 0x2c1   : > { %6218 = vpow2.f32 %v2861_v9  ;;  %v5005_v10 = vcombine.high %v4983_v53, %v4983_v53  ;;  %v5007_v47 = vcombine.high %v7944_v58, %v7944_v58  ;;  %v7977_v49 = vadd.f32 %v7798_v52, %v1851_v43 }
 0x2c2   : > { %9513 = vst [vmem:[#allocation148_spill] sm:$0xff] %v7972_v18  ;;  %v2367_v21 = vmul.f32 %v6189_v55, %v7950_v50  ;;  %v7981_v20 = vadd.f32 %v9515_v62, %v2365_v34  ;;  %6220 = vpow2.f32 %v2865_v51  ;;  %v5006_v41 = vcombine.high %v7956_v3, %v7956_v3  ;;  %v9520_v51 = vld [vmem:[#allocation75_spill] sm:$0xff]  ;;  %v9522_v62 = vld [vmem:[#allocation65_spill] sm:$0xff] }
 0x2c3   : > { %9514 = vst [vmem:[#allocation149_spill] sm:$0xff] %v7977_v49  ;;  %v6205_v45 = vpop.eup %6204  ;;  %6222 = vpow2.f32 %v2869_v28  ;;  %v5008_v2 = vcombine.high %v7959_v36, %v7959_v36  ;;  %v7989_v44 = vadd.f32 %v9517_v35, %v7714_v1  ;;  %v7992_v52 = vadd.f32 %v7804_v15, %v1853_v57 }
 0x2c4   : > { %9516 = vst [vmem:[#allocation68_spill] sm:$0xff] %v7981_v20  ;;  %v6207_v43 = vpop.eup %6206  ;;  %v2364_v55 = vmul.f32 %v6205_v45, %v7969_v17  ;;  %v5061_v30 = vrot.slane %v4983_v53, %v6445_v13  ;;  %v5065_v54 = vrot.slane %v7944_v58, %v6445_v13  ;;  %v5069_v33 = vrot.slane %v5005_v10, %v6445_v13 }
 0x2c5   : > { %9518 = vst [vmem:[#allocation39_spill] sm:$0xff] %v7989_v44  ;;  %9519 = vst [vmem:[#allocation150_spill] sm:$0xff] %v7992_v52  ;;  %v6209_v12 = vpop.eup %6208  ;;  %v2366_v9 = vmul.f32 %v6207_v43, %v7972_v18  ;;  %v5073_v46 = vrot.slane %v5007_v47, %v6445_v13  ;;  %v5077_v1 = vrot.slane %v7956_v3, %v6445_v13 }
 0x2c6   : > { %v2368_v15 = vmul.f32 %v6209_v12, %v7977_v49  ;;  %v8005_v34 = vadd.f32 %v9520_v51, %v2367_v21  ;;  %v8009_v53 = vmul.f32 %v7587_v6, %v7981_v20  ;;  %v5081_v58 = vrot.slane %v7959_v36, %v6445_v13 }
 0x2c7   : > { %v6211_v28 = vpop.eup %6210  ;;  %v3342_v57 = vmul.f32 %v9499_v19, %v7357_v56  ;;  %v3344_v10 = vmul.f32 %v9499_v19, %v7380_v0  ;;  %v3346_v3 = vmul.f32 %v9499_v19, %v7429_v60  ;;  %v3348_v47 = vmul.f32 %v9499_v19, %v7476_v31 }
 0x2c8   : > { %9521 = vst [vmem:[#allocation75_spill] sm:$0xff] %v8005_v34  ;;  %v8021_v21 = vpop.eup %6212  ;;  %v2370_v6 = vmul.f32 %v6211_v28, %v7992_v52  ;;  %v8025_v45 = vadd.f32 %v9522_v62, %v2364_v55  ;;  %v5085_v36 = vrot.slane %v5006_v41, %v6445_v13  ;;  %v8029_v35 = vrot.slane %v5008_v2, %v6445_v13  ;;  %v9526_v55 = vld [vmem:[#allocation37_spill] sm:$0xff]  ;;  %v9528_v2 = vld [vmem:[#allocation66_spill] sm:$0xff] }
 0x2c9   : > { %v3358_v43 = vmul.f32 1.442695, %v3342_v57  ;;  %v3362_v12 = vmul.f32 1.442695, %v3344_v10  ;;  %v3366_v51 = vmul.f32 1.442695, %v3346_v3  ;;  %v3859_v20 = vmul.f32 %v9500_v39, %v7357_v56 }
 0x2ca   : > { %9523 = vst [vmem:[#allocation65_spill] sm:$0xff] %v8025_v45  ;;  %v8034_v14 = vadd.f32 %v9524_v40, %v2366_v9  ;;  %v8038_v28 = vmul.f32 %v7915_v8, %v8005_v34  ;;  %v8041_v62 = vmul.f32 %v5061_v30, %v9526_v55  ;;  %v3370_v41 = vmul.f32 1.442695, %v3348_v47  ;;  %v9530_v57 = vld [vmem:[#allocation40_spill] sm:$0xff]  ;;  %v9533_v30 = vld [vmem:[#allocation42_spill] sm:$0xff]  ;;  %v8128_v34 = vpop.permute.xlu0 %1227 }
 0x2cb   : > { %v6215_v27 = vpop.eup %6214  ;;  %v8044_v24 = vadd.f32 %v9528_v2, %v2368_v15  ;;  %v8048_v10 = vadd.f32 %v9530_v57, %v7679_v32  ;;  %6224 = vpow2.f32 %v3358_v43  ;;  %v3861_v40 = vmul.f32 %v9500_v39, %v7380_v0  ;;  %v9535_v15 = vld [vmem:[#allocation44_spill] sm:$0xff] }
 0x2cc   : > { %9525 = vst [vmem:[#allocation70_spill] sm:$0xff] %v8034_v14  ;;  %9527 = vst [vmem:[#allocation151_spill] sm:$0xff] %v8041_v62  ;;  %v8052_v9 = vpop.eup %6216  ;;  %v8055_v8 = vmul.f32 %v6215_v27, %v8025_v45  ;;  %v8059_v3 = vadd.f32 %v9533_v30, %v7683_v5  ;;  %v8063_v47 = vadd.f32 %v9535_v15, %v7696_v37  ;;  %6226 = vpow2.f32 %v3362_v12  ;;  %v9538_v27 = vld [vmem:[#allocation74_spill] sm:$0xff]  ;;  %v9547_v62 = vld [vmem:[#allocation67_spill] sm:$0xff] }
 0x2cd   : > { %9529 = vst [vmem:[#allocation66_spill] sm:$0xff] %v8044_v24  ;;  %9531 = vst [vmem:[#allocation40_spill] sm:$0xff] %v8048_v10  ;;  %v8066_v32 = vmul.f32 %v5065_v54, %v9526_v55  ;;  %6228 = vpow2.f32 %v3366_v51  ;;  %v3863_v43 = vmul.f32 %v9500_v39, %v7429_v60  ;;  %v3875_v2 = vmul.f32 1.442695, %v3859_v20  ;;  %v9541_v51 = vld [vmem:[#allocation22_spill] sm:$0xff]  ;;  %v9543_v20 = vld [vmem:[#allocation49_spill] sm:$0xff] }
 0x2ce   : > { %9532 = vst [vmem:[#allocation152_spill] sm:$0xff] %v8052_v9  ;;  %9534 = vst [vmem:[#allocation42_spill] sm:$0xff] %v8059_v3  ;;  %v6219_v57 = vpop.eup %6218  ;;  %v8071_v9 = vadd.f32 %v9538_v27, %v2370_v6  ;;  %v8074_v5 = vmul.f32 %v5069_v33, %v9526_v55  ;;  %6230 = vpow2.f32 %v3370_v41  ;;  %v3865_v37 = vmul.f32 %v9500_v39, %v7476_v31 }
 0x2cf   : > { %9536 = vst [vmem:[#allocation44_spill] sm:$0xff] %v8063_v47  ;;  %9537 = vst [vmem:[#allocation153_spill] sm:$0xff] %v8066_v32  ;;  %v6221_v12 = vpop.eup %6220  ;;  %v8079_v54 = vmul.f32 %v6219_v57, %v8034_v14  ;;  %v8083_v30 = vadd.f32 %v9541_v51, %v7672_v4  ;;  %v3391_v15 = vmul.f32 %v9543_v20, %v8048_v10  ;;  %v3879_v6 = vmul.f32 1.442695, %v3861_v40  ;;  %v9567_v14 = vld [vmem:[#allocation21_spill] sm:$0xff]  ;;  %v9596_v10 = vld [vmem:[#allocation92_spill] sm:$0xff] }
 0x2d0   : > { %9539 = vst [vmem:[#allocation74_spill] sm:$0xff] %v8071_v9  ;;  %9540 = vst [vmem:[#allocation154_spill] sm:$0xff] %v8074_v5  ;;  %v8087_v27 = vpop.eup %6222  ;;  %v8090_v33 = vmul.f32 %v5073_v46, %v9526_v55  ;;  %v8093_v41 = vmul.f32 %v5077_v1, %v9526_v55  ;;  %v9546_v5 = vld [vmem:[#allocation50_spill] sm:$0xff]  ;;  %v3395_v32 = vmul.f32 %v9547_v62, %v8063_v47  ;;  %6232 = vpow2.f32 %v3875_v2  ;;  %v9550_v62 = vld [vmem:[#allocation41_spill] sm:$0xff] }
 0x2d1   : > { %9542 = vst [vmem:[#allocation22_spill] sm:$0xff] %v8083_v30  ;;  %v3393_v57 = vmul.f32 %v9546_v5, %v8059_v3  ;;  %v8100_v4 = vmul.f32 %v6221_v12, %v8044_v24  ;;  %v3883_v51 = vmul.f32 1.442695, %v3863_v43  ;;  %v4376_v40 = vmul.f32 %v9502_v16, %v7357_v56  ;;  %v9552_v43 = vld [vmem:[#allocation89_spill] sm:$0xff] }
 0x2d2   : > { %9544 = vst [vmem:[#allocation49_spill] sm:$0xff] %v8090_v33  ;;  %9545 = vst [vmem:[#allocation155_spill] sm:$0xff] %v8093_v41  ;;  %v8105_v46 = vmul.f32 %v5081_v58, %v9526_v55  ;;  %v8108_v1 = vmul.f32 %v5085_v36, %v9526_v55  ;;  %v3887_v20 = vmul.f32 1.442695, %v3865_v37  ;;  %v4378_v5 = vmul.f32 %v9502_v16, %v7380_v0  ;;  %v1050_v41 = vpop.f32.mrf.mxu1  ;;  %v9553_v33 = vld [vmem:[#allocation98_spill] sm:$0xff]  ;;  %v9557_v36 = vld [vmem:[#allocation100_spill] sm:$0xff] }
 0x2d3   : > { %v8114_v12 = vadd.f32 %v9550_v62, %v7726_v23  ;;  %v3397_v2 = vmul.f32 %v9552_v43, %v8083_v30  ;;  %v8119_v56 = vadd.f32 %v9553_v33, %v3391_v15  ;;  %6234 = vpow2.f32 %v3879_v6  ;;  %v9555_v58 = vld [vmem:[#allocation102_spill] sm:$0xff]  ;;  %v9559_v15 = vld [vmem:[#allocation28_spill] sm:$0xff]  ;;  %v9561_v43 = vld [vmem:[#allocation131_spill] sm:$0xff] }
 0x2d4   : > { %9548 = vst [vmem:[#allocation50_spill] sm:$0xff] %v8105_v46  ;;  %9549 = vst [vmem:[#allocation67_spill] sm:$0xff] %v8108_v1  ;;  %v8122_v46 = vadd.f32 %v9555_v58, %v3393_v57  ;;  %v8125_v37 = vadd.f32 %v9557_v36, %v3395_v32  ;;  %v4443_v1 = vcombine.high %v1050_v41, %v1050_v41  ;;  %6236 = vpow2.f32 %v3883_v51  ;;  %v9562_v51 = vld [vmem:[#allocation43_spill] sm:$0xff]  ;;  %v9564_v36 = vld [vmem:[#allocation122_spill] sm:$0xff] }
 0x2d5   : > { %9551 = vst [vmem:[#allocation41_spill] sm:$0xff] %v8114_v12  ;;  %9554 = vst [vmem:[#allocation89_spill] sm:$0xff] %v8119_v56  ;;  %v4450_v0 = vrot.slane %v1050_v41, %v6699_v48  ;;  %v4380_v23 = vmul.f32 %v9502_v16, %v7429_v60  ;;  %v4392_v62 = vmul.f32 1.442695, %v4376_v40  ;;  %v1282_v33 = vmul.f32 %v9559_v15, %v8128_v34 }
 0x2d6   : > { %9556 = vst [vmem:[#allocation98_spill] sm:$0xff] %v8122_v46  ;;  %9558 = vst [vmem:[#allocation102_spill] sm:$0xff] %v8125_v37  ;;  %6238 = vpow2.f32 %v3887_v20  ;;  %v4382_v6 = vmul.f32 %v9502_v16, %v7476_v31  ;;  %v4396_v57 = vmul.f32 1.442695, %v4378_v5  ;;  %v4457_v32 = vrot.slane %v4443_v1, %v6699_v48  ;;  %v9566_v20 = vld [vmem:[#allocation133_spill] sm:$0xff]  ;;  %v9569_v5 = vld [vmem:[#allocation51_spill] sm:$0xff] }
 0x2d7   : > { %v8139_v41 = vmul.f32 %v8029_v35, %v9526_v55  ;;  %v8143_v58 = vadd.f32 %v9562_v51, %v9561_v43  ;;  %v8146_v40 = vadd.f32 %v9564_v36, %v3397_v2  ;;  %v1311_v60 = vmul.f32 1.442695, %v1282_v33  ;;  %v9570_v31 = vld [vmem:[#allocation56_spill] sm:$0xff]  ;;  %v9571_v51 = vld [vmem:[#allocation69_spill] sm:$0xff] }
 0x2d8   : > { %v6225_v24 = vpop.eup %6224  ;;  %v8150_v45 = vadd.f32 %v9567_v14, %v9566_v20  ;;  %v3908_v1 = vmul.f32 %v9569_v5, %v8119_v56  ;;  %v3910_v35 = vmul.f32 %v9570_v31, %v8122_v46  ;;  %v3912_v2 = vmul.f32 %v9571_v51, %v8125_v37  ;;  %v9572_v56 = vld [vmem:[#allocation96_spill] sm:$0xff]  ;;  %v9574_v46 = vld [vmem:[#allocation91_spill] sm:$0xff] }
 0x2d9   : > { %9560 = vst [vmem:[#allocation100_spill] sm:$0xff] %v8139_v41  ;;  %9563 = vst [vmem:[#allocation28_spill] sm:$0xff] %v8143_v58  ;;  %v4458_v41 = vcombine.high %v4450_v0, %v4450_v0  ;;  %v6227_v30 = vpop.eup %6226  ;;  %v3390_v43 = vmul.f32 %v6225_v24, %v7989_v44  ;;  %6240 = vpow2.f32 %v4392_v62  ;;  %v4400_v33 = vmul.f32 1.442695, %v4380_v23  ;;  %v9575_v62 = vld [vmem:[#allocation79_spill] sm:$0xff] }
 0x2da   : > { %9565 = vst [vmem:[#allocation131_spill] sm:$0xff] %v8146_v40  ;;  %9568 = vst [vmem:[#allocation43_spill] sm:$0xff] %v8150_v45  ;;  %v6229_v36 = vpop.eup %6228  ;;  %v3392_v47 = vmul.f32 %v6227_v30, %v8114_v12  ;;  %6242 = vpow2.f32 %v4396_v57  ;;  %v4404_v14 = vmul.f32 1.442695, %v4382_v6  ;;  %v4459_v20 = vcombine.high %v4457_v32, %v4457_v32  ;;  %v9577_v57 = vld [vmem:[#allocation99_spill] sm:$0xff] }
 0x2db   : > { %v6231_v3 = vpop.eup %6230  ;;  %v3394_v5 = vmul.f32 %v6229_v36, %v8143_v58  ;;  %v8162_v31 = vadd.f32 %v9572_v56, %v3390_v43  ;;  %v3914_v24 = vmul.f32 %v9574_v46, %v8146_v40  ;;  %6244 = vpow2.f32 %v1311_v60  ;;  %v9579_v36 = vld [vmem:[#allocation82_spill] sm:$0xff]  ;;  %v9581_v56 = vld [vmem:[#allocation27_spill] sm:$0xff]  ;;  %v9582_v43 = vld [vmem:[#allocation85_spill] sm:$0xff] }
 0x2dc   : > { %v3396_v51 = vmul.f32 %v6231_v3, %v8150_v45  ;;  %v8168_v23 = vadd.f32 %v9575_v62, %v3908_v1  ;;  %v4466_v30 = vrot.slane %v4450_v0, %v6699_v48  ;;  %v4480_v6 = vrot.slane %v4458_v41, %v6699_v48  ;;  %v9584_v41 = vld [vmem:[#allocation97_spill] sm:$0xff]  ;;  %v9586_v62 = vld [vmem:[#allocation88_spill] sm:$0xff] }
 0x2dd   : > { %9573 = vst [vmem:[#allocation122_spill] sm:$0xff] %v8162_v31  ;;  %v8173_v37 = vadd.f32 %v9577_v57, %v3392_v47  ;;  %v8176_v58 = vadd.f32 %v9579_v36, %v3910_v35  ;;  %6246 = vpow2.f32 %v4400_v33  ;;  %v1804_v46 = vmul.f32 %v9581_v56, %v8128_v34  ;;  %v6233_v60 = vpop.eup %6232 }
 0x2de   : > { %9576 = vst [vmem:[#allocation133_spill] sm:$0xff] %v8168_v23  ;;  %v8181_v3 = vadd.f32 %v9582_v43, %v3912_v2  ;;  %6248 = vpow2.f32 %v4404_v14  ;;  %v4473_v1 = vrot.slane %v4457_v32, %v6699_v48  ;;  %v4487_v0 = vrot.slane %v4459_v20, %v6699_v48  ;;  %v9588_v2 = vld [vmem:[#allocation101_spill] sm:$0xff]  ;;  %v9590_v32 = vld [vmem:[#allocation24_spill] sm:$0xff] }
 0x2df   : > { %9578 = vst [vmem:[#allocation21_spill] sm:$0xff] %v8173_v37  ;;  %9580 = vst [vmem:[#allocation51_spill] sm:$0xff] %v8176_v58  ;;  %v8187_v47 = vmul.f32 %v8087_v27, %v8071_v9  ;;  %v8190_v35 = vadd.f32 %v9584_v41, %v3394_v5  ;;  %v3907_v33 = vmul.f32 %v6233_v60, %v8162_v31  ;;  %v9591_v9 = vld [vmem:[#allocation61_spill] sm:$0xff]  ;;  %v1833_v41 = vmul.f32 1.442695, %v1804_v46  ;;  %v9592_v60 = vld [vmem:[#allocation26_spill] sm:$0xff] }
 0x2e0   : > { %9583 = vst [vmem:[#allocation56_spill] sm:$0xff] %v8181_v3  ;;  %v8194_v57 = vadd.f32 %v9586_v62, %v3914_v24  ;;  %v6235_v36 = vpop.eup %6234  ;;  %v8197_v43 = vadd.f32 %v9588_v2, %v3396_v51  ;;  %v4425_v14 = vmul.f32 %v9590_v32, %v8168_v23  ;;  %v4488_v20 = vcombine.high %v4466_v30, %v4466_v30  ;;  %v9593_v62 = vld [vmem:[#allocation71_spill] sm:$0xff] }
 0x2e1   : > { %9585 = vst [vmem:[#allocation69_spill] sm:$0xff] %v8190_v35  ;;  %v4490_v40 = vcombine.high %v4480_v6, %v4480_v6  ;;  %v3909_v27 = vmul.f32 %v6235_v36, %v8173_v37  ;;  %v4427_v5 = vmul.f32 %v9591_v9, %v8176_v58  ;;  %v2321_v31 = vmul.f32 %v9592_v60, %v8128_v34  ;;  %v6237_v24 = vpop.eup %6236  ;;  %v9594_v36 = vld [vmem:[#allocation78_spill] sm:$0xff] }
 0x2e2   : > { %9587 = vst [vmem:[#allocation96_spill] sm:$0xff] %v8194_v57  ;;  %9589 = vst [vmem:[#allocation91_spill] sm:$0xff] %v8197_v43  ;;  %v4429_v45 = vmul.f32 %v9593_v62, %v8181_v3  ;;  %v4489_v51 = vcombine.high %v4473_v1, %v4473_v1  ;;  %v4491_v2 = vcombine.high %v4487_v0, %v4487_v0  ;;  %6250 = vpow2.f32 %v1833_v41 }
 0x2e3   : > { %v2838_v32 = vmul.f32 %v6982_v59, %v8128_v34  ;;  %v6239_v23 = vpop.eup %6238  ;;  %v3911_v12 = vmul.f32 %v6237_v24, %v8190_v35  ;;  %v8212_v37 = vadd.f32 %v9594_v36, %v3907_v33  ;;  %v4544_v9 = vrot.slane %v4466_v30, %v6445_v13 }
 0x2e4   : > { %v4548_v46 = vrot.slane %v4480_v6, %v6445_v13  ;;  %v3913_v58 = vmul.f32 %v6239_v23, %v8197_v43  ;;  %v4431_v62 = vmul.f32 %v9596_v10, %v8194_v57  ;;  %v4552_v3 = vrot.slane %v4488_v20, %v6445_v13  ;;  %v9599_v57 = vld [vmem:[#allocation83_spill] sm:$0xff] }
 0x2e5   : > { %9595 = vst [vmem:[#allocation79_spill] sm:$0xff] %v8212_v37  ;;  %v4556_v44 = vrot.slane %v4490_v40, %v6445_v13  ;;  %v8222_v52 = vadd.f32 %v9597_v22, %v3909_v27  ;;  %v4560_v24 = vrot.slane %v4473_v1, %v6445_v13  ;;  %v2350_v33 = vmul.f32 1.442695, %v2321_v31  ;;  %v9600_v22 = vld [vmem:[#allocation36_spill] sm:$0xff]  ;;  %v9601_v31 = vld [vmem:[#allocation86_spill] sm:$0xff] }
 0x2e6   : > { %v6241_v36 = vpop.eup %6240  ;;  %v4564_v30 = vrot.slane %v4487_v0, %v6445_v13  ;;  %v4568_v6 = vrot.slane %v4489_v51, %v6445_v13  ;;  %v4572_v23 = vrot.slane %v4491_v2, %v6445_v13  ;;  %v2867_v43 = vmul.f32 1.442695, %v2838_v32 }
 0x2e7   : > { %9598 = vst [vmem:[#allocation99_spill] sm:$0xff] %v8222_v52  ;;  %v6243_v10 = vpop.eup %6242  ;;  %v8229_v20 = vadd.f32 %v9599_v57, %v3911_v12  ;;  %v4424_v40 = vmul.f32 %v6241_v36, %v8212_v37  ;;  %v4621_v27 = vmul.f32 %v4544_v9, %v9600_v22  ;;  %v4622_v1 = vmul.f32 %v4548_v46, %v9600_v22 }
 0x2e8   : > { %v6245_v41 = vpop.eup %6244  ;;  %v8235_v35 = vadd.f32 %v9601_v31, %v3913_v58  ;;  %v4623_v0 = vmul.f32 %v4552_v3, %v9600_v22  ;;  %v4624_v51 = vmul.f32 %v4556_v44, %v9600_v22  ;;  %v3355_v2 = vmul.f32 %v9499_v19, %v8128_v34 }
 0x2e9   : > { %v4426_v12 = vmul.f32 %v6243_v10, %v8222_v52  ;;  %v4625_v57 = vmul.f32 %v4560_v24, %v9600_v22  ;;  %6252 = vpow2.f32 %v2350_v33  ;;  %v3872_v32 = vmul.f32 %v9500_v39, %v8128_v34  ;;  %v5865_v52 = vpop.f32.mrf.mxu1 }
 0x2ea   : > { %v6247_v9 = vpop.eup %6246  ;;  %v4626_v46 = vmul.f32 %v4564_v30, %v9600_v22  ;;  %v4627_v58 = vmul.f32 %v4568_v6, %v9600_v22  ;;  %v4628_v3 = vmul.f32 %v4572_v23, %v9600_v22  ;;  %v4389_v44 = vmul.f32 %v9502_v16, %v8128_v34  ;;  %v9604_v30 = vld [vmem:[#allocation32_spill] sm:$0xff] }
 0x2eb   : > { %v6249_v36 = vpop.eup %6248  ;;  %v4428_v31 = vmul.f32 %v6247_v9, %v8229_v20  ;;  %v8251_v10 = vadd.f32 %v4621_v27, %v4424_v40  ;;  %v8253_v24 = vadd.f32 %v4622_v1, %v4425_v14  ;;  %v1330_v33 = vmul.f32 0.0, %v6245_v41 }
 0x2ec   : > { %v4430_v37 = vmul.f32 %v6249_v36, %v8235_v35  ;;  %v3384_v50 = vmul.f32 1.442695, %v3355_v2  ;;  %v4906_v6 = vmul.f32 %v9604_v30, %v8128_v34  ;;  %v5009_v49 = vcombine.high %v5865_v52, %v5865_v52  ;;  %v9615_v36 = vld [vmem:[#allocation34_spill] sm:$0xff] }
 0x2ed   : > { %9602 = vst [vmem:[#allocation82_spill] sm:$0xff] %v8251_v10  ;;  %9603 = vst [vmem:[#allocation27_spill] sm:$0xff] %v8253_v24  ;;  %v8258_v23 = vadd.f32 %v4623_v0, %v4426_v12  ;;  %v8260_v18 = vadd.f32 %v4624_v51, %v4427_v5  ;;  %6254 = vpow2.f32 %v2867_v43  ;;  %v3901_v11 = vmul.f32 1.442695, %v3872_v32 }
 0x2ee   : > { %v8262_v9 = vadd.f32 %v4626_v46, %v4429_v45  ;;  %v8264_v40 = vadd.f32 %v4628_v3, %v4431_v62  ;;  %v4418_v14 = vmul.f32 1.442695, %v4389_v44  ;;  %v5016_v27 = vrot.slane %v5865_v52, %v6699_v48  ;;  %v9611_v52 = vld [vmem:[#allocation52_spill] sm:$0xff] }
 0x2ef   : > { %9605 = vst [vmem:[#allocation85_spill] sm:$0xff] %v8258_v23  ;;  %9606 = vst [vmem:[#allocation97_spill] sm:$0xff] %v8260_v18  ;;  %v8267_v1 = vadd.f32 %v4625_v57, %v4428_v31  ;;  %v8270_v41 = vadd.f32 %v7962_v63, %v1330_v33  ;;  %v3350_v34 = vmul.f32 %v9499_v19, %v7704_v29  ;;  %6256 = vpow2.f32 %v3384_v50  ;;  %v9612_v63 = vld [vmem:[#allocation54_spill] sm:$0xff]  ;;  %v6251_v12 = vpop.eup %6250  ;;  %v9613_v57 = vld [vmem:[#allocation55_spill] sm:$0xff] }
 0x2f0   : > { %9607 = vst [vmem:[#allocation88_spill] sm:$0xff] %v8262_v9  ;;  %9608 = vst [vmem:[#allocation101_spill] sm:$0xff] %v8264_v40  ;;  %v3352_v5 = vmul.f32 %v9499_v19, %v7745_v42  ;;  %v8276_v43 = vadd.f32 %v4627_v58, %v4430_v37  ;;  %v4935_v45 = vmul.f32 1.442695, %v4906_v6  ;;  %v5023_v62 = vrot.slane %v5009_v49, %v6699_v48  ;;  %v9614_v58 = vld [vmem:[#allocation57_spill] sm:$0xff] }
 0x2f1   : > { %9609 = vst [vmem:[#allocation24_spill] sm:$0xff] %v8267_v1  ;;  %6258 = vpow2.f32 %v3901_v11  ;;  %v8281_v0 = vadd.f32 %v9611_v52, %v8055_v8  ;;  %v8285_v51 = vadd.f32 %v9612_v63, %v8009_v53  ;;  %v3354_v2 = vmul.f32 %v9499_v19, %v7783_v61 }
 0x2f2   : > { %9610 = vst [vmem:[#allocation61_spill] sm:$0xff] %v8276_v43  ;;  %6260 = vpow2.f32 %v4418_v14  ;;  %v5024_v37 = vcombine.high %v5016_v27, %v5016_v27  ;;  %v5032_v50 = vrot.slane %v5016_v27, %v6699_v48  ;;  %v8292_v49 = vadd.f32 %v9613_v57, %v8079_v54 }
 0x2f3   : > { %v1852_v11 = vmul.f32 %v6251_v12, %v8270_v41  ;;  %v3356_v8 = vmul.f32 %v9499_v19, %v7829_v25  ;;  %v3374_v32 = vmul.f32 1.442695, %v3350_v34  ;;  %v3378_v53 = vmul.f32 1.442695, %v3352_v5  ;;  %v9616_v5 = vld [vmem:[#allocation58_spill] sm:$0xff] }
 0x2f4   : > { %6262 = vpow2.f32 %v4935_v45  ;;  %v5025_v46 = vcombine.high %v5023_v62, %v5023_v62  ;;  %v8299_v3 = vadd.f32 %v9614_v58, %v8038_v28  ;;  %v3382_v44 = vmul.f32 1.442695, %v3354_v2  ;;  %v9617_v2 = vld [vmem:[#allocation60_spill] sm:$0xff] }
 0x2f5   : > { %v8302_v31 = vadd.f32 %v9615_v36, %v1852_v11  ;;  %v8305_v54 = vrot.slane %v5023_v62, %v6699_v48  ;;  %6264 = vpow2.f32 %v3374_v32  ;;  %v3867_v33 = vmul.f32 %v9500_v39, %v7704_v29  ;;  %v1053_v36 = vpop.f32.mrf.mxu1 }
 0x2f6   : > { %v6253_v6 = vpop.eup %6252  ;;  %v5046_v14 = vrot.slane %v5024_v37, %v6699_v48  ;;  %6266 = vpow2.f32 %v3378_v53  ;;  %v3386_v27 = vmul.f32 1.442695, %v3356_v8  ;;  %v3869_v28 = vmul.f32 %v9500_v39, %v7745_v42 }
 0x2f7   : > { %v2369_v34 = vmul.f32 %v6253_v6, %v8302_v31  ;;  %v8315_v45 = vadd.f32 %v9616_v5, %v8100_v4  ;;  %6268 = vpow2.f32 %v3382_v44  ;;  %v3871_v62 = vmul.f32 %v9500_v39, %v7783_v61  ;;  %v9618_v4 = vld [vmem:[#allocation73_spill] sm:$0xff] }
 0x2f8   : > { %v5054_v52 = vcombine.high %v5032_v50, %v5032_v50  ;;  %v5093_v63 = vrot.slane %v5032_v50, %v6445_v13  ;;  %v8322_v12 = vadd.f32 %v9617_v2, %v8187_v47  ;;  %v3891_v37 = vmul.f32 1.442695, %v3867_v33  ;;  %v9619_v33 = vld [vmem:[#allocation123_spill] sm:$0xff] }
 0x2f9   : > { %v8325_v57 = vrot.slane %v5025_v46, %v6699_v48  ;;  %v5055_v11 = vcombine.high %v8305_v54, %v8305_v54  ;;  %v8330_v8 = vadd.f32 %v9618_v4, %v2369_v34  ;;  %v3895_v32 = vmul.f32 1.442695, %v3869_v28  ;;  %v9621_v2 = vld [vmem:[#allocation59_spill] sm:$0xff] }
 0x2fa   : > { %v6255_v53 = vpop.eup %6254  ;;  %v5056_v58 = vcombine.high %v5046_v14, %v5046_v14  ;;  %6270 = vpow2.f32 %v3386_v27  ;;  %v3873_v50 = vmul.f32 %v9500_v39, %v7829_v25  ;;  %v3899_v44 = vmul.f32 1.442695, %v3871_v62 }
 0x2fb   : > { %v5097_v47 = vrot.slane %v5046_v14, %v6445_v13  ;;  %v2886_v46 = vmul.f32 %v6255_v53, %v8330_v8  ;;  %v3399_v6 = vmul.f32 %v9619_v33, %v8285_v51  ;;  %v3401_v34 = vmul.f32 %v7935_v26, %v8299_v3 }
 0x2fc   : > { %v5101_v28 = vrot.slane %v5054_v52, %v6445_v13  ;;  %v5109_v27 = vrot.slane %v8305_v54, %v6445_v13  ;;  %6272 = vpow2.f32 %v3891_v37  ;;  %v4384_v5 = vmul.f32 %v9502_v16, %v7704_v29  ;;  %v6257_v62 = vpop.eup %6256  ;;  %v9646_v29 = vld [vmem:[#allocation47_spill] sm:$0xff] }
 0x2fd   : > { %v8346_v14 = vmul.f32 %v5093_v63, %v9526_v55  ;;  %v8349_v4 = vadd.f32 %v9621_v2, %v2886_v46  ;;  %6274 = vpow2.f32 %v3895_v32  ;;  %v4386_v26 = vmul.f32 %v9502_v16, %v7745_v42  ;;  %v9623_v46 = vld [vmem:[#allocation140_spill] sm:$0xff] }
 0x2fe   : > { %v6259_v53 = vpop.eup %6258  ;;  %6276 = vpow2.f32 %v3899_v44  ;;  %v3903_v52 = vmul.f32 1.442695, %v3873_v50  ;;  %v4388_v54 = vmul.f32 %v9502_v16, %v7783_v61  ;;  %v4492_v37 = vcombine.high %v1053_v36, %v1053_v36 }
 0x2ff   : > { %9620 = vst [vmem:[#allocation26_spill] sm:$0xff] %v8346_v14  ;;  %v8355_v33 = vpop.eup %6260  ;;  %v5057_v63 = vcombine.high %v8325_v57, %v8325_v57  ;;  %v9622_v14 = vld [vmem:[#allocation136_spill] sm:$0xff]  ;;  %v8363_v32 = vadd.f32 %v9623_v46, %v3401_v34  ;;  %v4499_v2 = vrot.slane %v1053_v36, %v6699_v48  ;;  %v5105_v44 = vrot.slane %v5056_v58, %v6445_v13 }
 0x300   : > { %v8360_v40 = vadd.f32 %v9622_v14, %v3399_v6  ;;  %v5113_v50 = vrot.slane %v8325_v57, %v6445_v13  ;;  %v4390_v43 = vmul.f32 %v9502_v16, %v7829_v25  ;;  %v4408_v61 = vmul.f32 1.442695, %v4384_v5 }
 0x301   : > { %9624 = vst [vmem:[#allocation71_spill] sm:$0xff] %v8363_v32  ;;  %v8371_v42 = vpop.eup %6262  ;;  %v5117_v1 = vrot.slane %v5055_v11, %v6445_v13  ;;  %v3403_v6 = vmul.f32 %v6257_v62, %v8349_v4  ;;  %v4412_v14 = vmul.f32 1.442695, %v4386_v26  ;;  %v4506_v34 = vrot.slane %v4492_v37, %v6699_v48  ;;  %v9628_v11 = vld [vmem:[#allocation64_spill] sm:$0xff] }
 0x302   : > { %9625 = vst [vmem:[#allocation78_spill] sm:$0xff] %v8371_v42  ;;  %v6265_v46 = vpop.eup %6264  ;;  %v8377_v36 = vmul.f32 %v5097_v47, %v9526_v55  ;;  %6278 = vpow2.f32 %v3903_v52  ;;  %v4416_v58 = vmul.f32 1.442695, %v4388_v54  ;;  %v4507_v57 = vcombine.high %v4499_v2, %v4499_v2 }
 0x303   : > { %v6267_v23 = vpop.eup %6266  ;;  %v8380_v25 = vmul.f32 %v5101_v28, %v9526_v55  ;;  %v3398_v5 = vmul.f32 %v6265_v46, %v8281_v0  ;;  %v3916_v42 = vmul.f32 %v9628_v11, %v8360_v40  ;;  %v3918_v62 = vmul.f32 %v7946_v38, %v8363_v32  ;;  %v9630_v28 = vld [vmem:[#allocation141_spill] sm:$0xff] }
 0x304   : > { %9626 = vst [vmem:[#allocation92_spill] sm:$0xff] %v8377_v36  ;;  %v6269_v26 = vpop.eup %6268  ;;  %v8388_v37 = vmul.f32 %v5109_v27, %v9526_v55  ;;  %v3400_v47 = vmul.f32 %v6267_v23, %v8292_v49  ;;  %6280 = vpow2.f32 %v4408_v61  ;;  %v4420_v52 = vmul.f32 1.442695, %v4390_v43  ;;  %v9632_v36 = vld [vmem:[#allocation84_spill] sm:$0xff]  ;;  %v9634_v61 = vld [vmem:[#allocation38_spill] sm:$0xff] }
 0x305   : > { %9627 = vst [vmem:[#allocation81_spill] sm:$0xff] %v8380_v25  ;;  %v3402_v54 = vmul.f32 %v6269_v26, %v8315_v45  ;;  %v8393_v25 = vadd.f32 %v9630_v28, %v3403_v6  ;;  %6282 = vpow2.f32 %v4412_v14  ;;  %v4508_v46 = vcombine.high %v4506_v34, %v4506_v34  ;;  %v9635_v26 = vld [vmem:[#allocation126_spill] sm:$0xff] }
 0x306   : > { %9629 = vst [vmem:[#allocation83_spill] sm:$0xff] %v8388_v37  ;;  %v8396_v11 = vadd.f32 %v9632_v36, %v3398_v5  ;;  %6284 = vpow2.f32 %v4416_v58  ;;  %v4515_v38 = vrot.slane %v4499_v2, %v6699_v48  ;;  %v4529_v27 = vrot.slane %v4507_v57, %v6699_v48  ;;  %v9637_v2 = vld [vmem:[#allocation138_spill] sm:$0xff]  ;;  %v9638_v57 = vld [vmem:[#allocation139_spill] sm:$0xff] }
 0x307   : > { %9631 = vst [vmem:[#allocation36_spill] sm:$0xff] %v8393_v25  ;;  %v6271_v37 = vpop.eup %6270  ;;  %v8401_v23 = vrot.slane %v5057_v63, %v6445_v13  ;;  %v8404_v43 = vadd.f32 %v9634_v61, %v3916_v42  ;;  %v8407_v6 = vadd.f32 %v9635_v26, %v3918_v62  ;;  %v4522_v14 = vrot.slane %v4506_v34, %v6699_v48 }
 0x308   : > { %v8411_v36 = vmul.f32 %v5105_v44, %v9526_v55  ;;  %v3404_v58 = vmul.f32 %v6271_v37, %v8322_v12  ;;  %v8415_v5 = vadd.f32 %v9637_v2, %v3400_v47  ;;  %v8418_v28 = vadd.f32 %v9638_v57, %v3402_v54  ;;  %v8429_v2 = vpop.permute.xlu0 %1241  ;;  %v9642_v57 = vld [vmem:[#allocation45_spill] sm:$0xff] }
 0x309   : > { %9633 = vst [vmem:[#allocation86_spill] sm:$0xff] %v8401_v23  ;;  %v6273_v63 = vpop.eup %6272  ;;  %v8421_v42 = vmul.f32 %v5113_v50, %v9526_v55  ;;  %v8424_v62 = vmul.f32 %v5117_v1, %v9526_v55  ;;  %v3920_v34 = vmul.f32 %v6259_v53, %v8393_v25  ;;  %v4536_v44 = vrot.slane %v4508_v46, %v6699_v48  ;;  %v9643_v46 = vld [vmem:[#allocation142_spill] sm:$0xff]  ;;  %v9647_v25 = vld [vmem:[#allocation125_spill] sm:$0xff] }
 0x30a   : > { %9636 = vst [vmem:[#allocation32_spill] sm:$0xff] %v8411_v36  ;;  %9639 = vst [vmem:[#allocation52_spill] sm:$0xff] %v8418_v28  ;;  %v6275_v61 = vpop.eup %6274  ;;  %v3915_v37 = vmul.f32 %v6273_v63, %v8396_v11  ;;  %6286 = vpow2.f32 %v4420_v52  ;;  %v4537_v47 = vcombine.high %v4515_v38, %v4515_v38  ;;  %v4539_v26 = vcombine.high %v4529_v27, %v4529_v27 }
 0x30b   : > { %9640 = vst [vmem:[#allocation54_spill] sm:$0xff] %v8421_v42  ;;  %9641 = vst [vmem:[#allocation55_spill] sm:$0xff] %v8424_v62  ;;  %v6277_v54 = vpop.eup %6276  ;;  %v4433_v50 = vmul.f32 %v9642_v57, %v8404_v43  ;;  %v4435_v1 = vmul.f32 %v8021_v21, %v8407_v6  ;;  %v4538_v23 = vcombine.high %v4522_v14, %v4522_v14  ;;  %v9645_v42 = vld [vmem:[#allocation129_spill] sm:$0xff] }
 0x30c   : > { %v1284_v53 = vmul.f32 %v9559_v15, %v8429_v2  ;;  %v8438_v55 = vadd.f32 %v9643_v46, %v3404_v58  ;;  %v3917_v52 = vmul.f32 %v6275_v61, %v8415_v5  ;;  %v3919_v63 = vmul.f32 %v6277_v54, %v8418_v28 }
 0x30d   : > { %v1806_v62 = vmul.f32 %v9581_v56, %v8429_v2  ;;  %v8445_v36 = vadd.f32 %v9645_v42, %v3920_v34  ;;  %v4540_v57 = vcombine.high %v4536_v44, %v4536_v44  ;;  %v4576_v21 = vrot.slane %v4515_v38, %v6445_v13 }
 0x30e   : > { %9644 = vst [vmem:[#allocation57_spill] sm:$0xff] %v8438_v55  ;;  %v4580_v10 = vrot.slane %v4529_v27, %v6445_v13  ;;  %v8450_v15 = vadd.f32 %v9646_v29, %v3915_v37  ;;  %v4584_v58 = vrot.slane %v4537_v47, %v6445_v13  ;;  %v4588_v61 = vrot.slane %v4539_v26, %v6445_v13  ;;  %v9648_v37 = vld [vmem:[#allocation128_spill] sm:$0xff] }
 0x30f   : > { %v2323_v54 = vmul.f32 %v9592_v60, %v8429_v2  ;;  %v6279_v46 = vpop.eup %6278  ;;  %v4592_v56 = vrot.slane %v4522_v14, %v6445_v13  ;;  %v4596_v42 = vrot.slane %v4536_v44, %v6445_v13  ;;  %v4600_v34 = vrot.slane %v4538_v23, %v6445_v13 }
 0x310   : > { %v1315_v38 = vmul.f32 1.442695, %v1284_v53  ;;  %v3921_v27 = vmul.f32 %v6279_v46, %v8438_v55  ;;  %v8461_v29 = vadd.f32 %v9647_v25, %v3917_v52  ;;  %v8464_v47 = vadd.f32 %v9648_v37, %v3919_v63  ;;  %v5868_v53 = vpop.f32.mrf.mxu1 }
 0x311   : > { %v1837_v26 = vmul.f32 1.442695, %v1806_v62  ;;  %v6281_v28 = vpop.eup %6280  ;;  %v4437_v60 = vmul.f32 %v8355_v33, %v8445_v36  ;;  %v4604_v14 = vrot.slane %v4540_v57, %v6445_v13  ;;  %v4629_v44 = vmul.f32 %v4576_v21, %v9600_v22 }
 0x312   : > { %v4630_v23 = vmul.f32 %v4580_v10, %v9600_v22  ;;  %v6283_v9 = vpop.eup %6282  ;;  %v4432_v46 = vmul.f32 %v6281_v28, %v8450_v15  ;;  %v4631_v25 = vmul.f32 %v4584_v58, %v9600_v22  ;;  %v4632_v52 = vmul.f32 %v4588_v61, %v9600_v22  ;;  %v9649_v10 = vld [vmem:[#allocation130_spill] sm:$0xff] }
 0x313   : > { %v2070_v63 = vcombine.high %v5868_v53, %v5868_v53  ;;  %v6285_v62 = vpop.eup %6284  ;;  %v4633_v37 = vmul.f32 %v4592_v56, %v9600_v22  ;;  %v4634_v33 = vmul.f32 %v4596_v42, %v9600_v22  ;;  %v8477_v57 = vmul.f32 %v4600_v34, %v9600_v22  ;;  %v1066_v34 = vpop.f32.mrf.mxu1 }
 0x314   : > { %v2077_v21 = vrot.slane %v5868_v53, %v6699_v48  ;;  %v8481_v55 = vadd.f32 %v9649_v10, %v3921_v27  ;;  %v4434_v28 = vmul.f32 %v6283_v9, %v8461_v29  ;;  %v4436_v58 = vmul.f32 %v6285_v62, %v8464_v47 }
 0x315   : > { %6288 = vpow2.f32 %v1315_v38  ;;  %v8486_v61 = vmul.f32 %v4604_v14, %v9600_v22  ;;  %v2084_v56 = vrot.slane %v2070_v63, %v6699_v48  ;;  %v8490_v24 = vadd.f32 %v4629_v44, %v4432_v46 }
 0x316   : > { %9650 = vst [vmem:[#allocation34_spill] sm:$0xff] %v8481_v55  ;;  %v2085_v18 = vcombine.high %v2077_v21, %v2077_v21  ;;  %v2093_v42 = vrot.slane %v2077_v21, %v6699_v48  ;;  %v8492_v53 = vadd.f32 %v4630_v23, %v4433_v50  ;;  %v8494_v27 = vadd.f32 %v4632_v52, %v4435_v1  ;;  %v9658_v52 = vld [vmem:[#allocation116_spill] sm:$0xff] }
 0x317   : > { %9651 = vst [vmem:[#allocation58_spill] sm:$0xff] %v8486_v61  ;;  %9652 = vst [vmem:[#allocation60_spill] sm:$0xff] %v8490_v24  ;;  %v1555_v9 = vrot.slane %v1066_v34, %v6699_v48  ;;  %v6287_v10 = vpop.eup %6286  ;;  %v8497_v62 = vadd.f32 %v4634_v33, %v4437_v60  ;;  %v8504_v21 = vadd.f32 %v4631_v25, %v4434_v28  ;;  %v2354_v50 = vmul.f32 1.442695, %v2323_v54  ;;  %v9659_v28 = vld [vmem:[#allocation112_spill] sm:$0xff] }
 0x318   : > { %9653 = vst [vmem:[#allocation73_spill] sm:$0xff] %v8492_v53  ;;  %9654 = vst [vmem:[#allocation123_spill] sm:$0xff] %v8494_v27  ;;  %v2107_v22 = vrot.slane %v2085_v18, %v6699_v48  ;;  %v2115_v38 = vcombine.high %v2093_v42, %v2093_v42  ;;  %v2171_v14 = vrot.slane %v2093_v42, %v6445_v13  ;;  %6290 = vpow2.f32 %v1837_v26 }
 0x319   : > { %9655 = vst [vmem:[#allocation59_spill] sm:$0xff] %v8497_v62  ;;  %v8502_v63 = vmul.f32 %v6287_v10, %v8481_v55  ;;  %9656 = vst [vmem:[#allocation136_spill] sm:$0xff] %v8504_v21  ;;  %v8506_v44 = vadd.f32 %v4633_v37, %v4436_v58  ;;  %v2086_v1 = vcombine.high %v2084_v56, %v2084_v56  ;;  %6292 = vpow2.f32 %v2354_v50  ;;  %v9663_v62 = vld [vmem:[#allocation108_spill] sm:$0xff] }
 0x31a   : > { %v2117_v23 = vcombine.high %v2107_v22, %v2107_v22  ;;  %v2175_v46 = vrot.slane %v2107_v22, %v6445_v13  ;;  %v2248_v60 = vmul.f32 %v2171_v14, %v9658_v52  ;;  %v2840_v18 = vmul.f32 %v6982_v59, %v8429_v2  ;;  %v9660_v14 = vld [vmem:[#allocation117_spill] sm:$0xff] }
 0x31b   : > { %9657 = vst [vmem:[#allocation140_spill] sm:$0xff] %v8506_v44  ;;  %v2100_v33 = vrot.slane %v2084_v56, %v6699_v48  ;;  %v1563_v42 = vcombine.high %v1555_v9, %v1555_v9  ;;  %v3357_v25 = vmul.f32 %v9499_v19, %v8429_v2  ;;  %v2179_v37 = vrot.slane %v2115_v38, %v6445_v13 }
 0x31c   : > { %v2183_v54 = vrot.slane %v2117_v23, %v6445_v13  ;;  %v2249_v58 = vmul.f32 %v2175_v46, %v9659_v28  ;;  %v3874_v10 = vmul.f32 %v9500_v39, %v8429_v2  ;;  %v1548_v26 = vcombine.high %v1066_v34, %v1066_v34  ;;  %v9661_v34 = vld [vmem:[#allocation113_spill] sm:$0xff] }
 0x31d   : > { %v1571_v22 = vrot.slane %v1555_v9, %v6699_v48  ;;  %v4391_v59 = vmul.f32 %v9502_v16, %v8429_v2  ;;  %v2114_v56 = vrot.slane %v2086_v1, %v6699_v48  ;;  %v2250_v19 = vmul.f32 %v2179_v37, %v9660_v14  ;;  %v9662_v14 = vld [vmem:[#allocation119_spill] sm:$0xff] }
 0x31e   : > { %v2264_v52 = vadd.f32 %v2249_v58, %v2248_v60  ;;  %v2116_v38 = vcombine.high %v2100_v33, %v2100_v33  ;;  %v1585_v23 = vrot.slane %v1563_v42, %v6699_v48  ;;  %v2187_v46 = vrot.slane %v2100_v33, %v6445_v13 }
 0x31f   : > { %v1593_v61 = vcombine.high %v1571_v22, %v1571_v22  ;;  %v1649_v50 = vrot.slane %v1571_v22, %v6445_v13  ;;  %v2191_v39 = vrot.slane %v2114_v56, %v6445_v13  ;;  %v2251_v9 = vmul.f32 %v2183_v54, %v9661_v34  ;;  %v9664_v54 = vld [vmem:[#allocation105_spill] sm:$0xff] }
 0x320   : > { %v2265_v28 = vadd.f32 %v2264_v52, %v2250_v19  ;;  %v1562_v16 = vrot.slane %v1548_v26, %v6699_v48  ;;  %v1595_v44 = vcombine.high %v1585_v23, %v1585_v23  ;;  %v1653_v1 = vrot.slane %v1585_v23, %v6445_v13  ;;  %v9665_v26 = vld [vmem:[#allocation115_spill] sm:$0xff] }
 0x321   : > { %v1657_v60 = vrot.slane %v1593_v61, %v6445_v13  ;;  %v2871_v58 = vmul.f32 1.442695, %v2840_v18  ;;  %v3388_v42 = vmul.f32 1.442695, %v3357_v25  ;;  %v2252_v21 = vmul.f32 %v2187_v46, %v9662_v14  ;;  %v5869_v61 = vpop.f32.mrf.mxu1  ;;  %v9666_v25 = vld [vmem:[#allocation109_spill] sm:$0xff] }
 0x322   : > { %v6289_v37 = vpop.eup %6288  ;;  %v2266_v22 = vadd.f32 %v2265_v28, %v2251_v9  ;;  %v2118_v24 = vcombine.high %v2114_v56, %v2114_v56  ;;  %v2195_v33 = vrot.slane %v2116_v38, %v6445_v13  ;;  %v1726_v27 = vmul.f32 %v1649_v50, %v9663_v62  ;;  %v9667_v50 = vld [vmem:[#allocation93_spill] sm:$0xff] }
 0x323   : > { %v1727_v19 = vmul.f32 %v1653_v1, %v9664_v54  ;;  %v3905_v52 = vmul.f32 1.442695, %v3874_v10  ;;  %v2253_v34 = vmul.f32 %v2191_v39, %v9665_v26  ;;  %v1661_v23 = vrot.slane %v1595_v44, %v6445_v13  ;;  %v9668_v1 = vld [vmem:[#allocation106_spill] sm:$0xff] }
 0x324   : > { %v2267_v53 = vadd.f32 %v2266_v22, %v2252_v21  ;;  %v1332_v32 = vmul.f32 0.0, %v6289_v37  ;;  %v1564_v18 = vcombine.high %v1562_v16, %v1562_v16  ;;  %v1728_v55 = vmul.f32 %v1657_v60, %v9666_v25 }
 0x325   : > { %v1742_v46 = vadd.f32 %v1727_v19, %v1726_v27  ;;  %v1578_v56 = vrot.slane %v1562_v16, %v6699_v48  ;;  %v2119_v38 = vcombine.high %v5869_v61, %v5869_v61  ;;  %v2126_v62 = vrot.slane %v5869_v61, %v6699_v48  ;;  %v6291_v28 = vpop.eup %6290  ;;  %v9671_v61 = vld [vmem:[#allocation110_spill] sm:$0xff] }
 0x326   : > { %v2268_v9 = vadd.f32 %v2267_v53, %v2253_v34  ;;  %6294 = vpow2.f32 %v2871_v58  ;;  %v2199_v10 = vrot.slane %v2118_v24, %v6445_v13  ;;  %v2254_v39 = vmul.f32 %v2195_v33, %v9667_v50  ;;  %v1069_v53 = vpop.f32.mrf.mxu1  ;;  %v8550_v24 = vpop.eup %6292 }
 0x327   : > { %v1743_v21 = vadd.f32 %v1742_v46, %v1728_v55  ;;  %v1665_v44 = vrot.slane %v1578_v56, %v6445_v13  ;;  %v1729_v37 = vmul.f32 %v1661_v23, %v9668_v1  ;;  %v2133_v60 = vrot.slane %v2119_v38, %v6699_v48 }
 0x328   : > { %v2134_v27 = vcombine.high %v2126_v62, %v2126_v62  ;;  %6296 = vpow2.f32 %v3388_v42  ;;  %v4422_v16 = vmul.f32 1.442695, %v4391_v59  ;;  %v4908_v14 = vmul.f32 %v9604_v30, %v8429_v2  ;;  %v9670_v42 = vld [vmem:[#allocation111_spill] sm:$0xff] }
 0x329   : > { %v1592_v58 = vrot.slane %v1564_v18, %v6699_v48  ;;  %v8553_v55 = vadd.f32 %v7965_v7, %v1332_v32  ;;  %v1744_v22 = vadd.f32 %v1743_v21, %v1729_v37  ;;  %v2142_v33 = vrot.slane %v2126_v62, %v6699_v48 }
 0x32a   : > { %v2269_v54 = vadd.f32 %v2268_v9, %v2254_v39  ;;  %6298 = vpow2.f32 %v3905_v52  ;;  %v1594_v19 = vcombine.high %v1578_v56, %v1578_v56  ;;  %v2135_v26 = vcombine.high %v2133_v60, %v2133_v60 }
 0x32b   : > { %9669 = vst [vmem:[#allocation64_spill] sm:$0xff] %v8553_v55  ;;  %v1597_v34 = vcombine.high %v1069_v53, %v1069_v53  ;;  %v1669_v59 = vrot.slane %v1592_v58, %v6445_v13  ;;  %v1730_v23 = vmul.f32 %v1665_v44, %v9670_v42  ;;  %v2156_v2 = vrot.slane %v2134_v27, %v6699_v48  ;;  %v9677_v42 = vld [vmem:[#allocation145_spill] sm:$0xff] }
 0x32c   : > { %v2255_v18 = vmul.f32 %v2199_v10, %v9671_v61  ;;  %6300 = vpow2.f32 %v4422_v16  ;;  %v4939_v25 = vmul.f32 1.442695, %v4908_v14  ;;  %v1596_v7 = vcombine.high %v1592_v58, %v1592_v58  ;;  %v9672_v10 = vld [vmem:[#allocation107_spill] sm:$0xff] }
 0x32d   : > { %v2149_v32 = vrot.slane %v2133_v60, %v6699_v48  ;;  %v1854_v46 = vmul.f32 %v6291_v28, %v8553_v55  ;;  %v1745_v9 = vadd.f32 %v1744_v22, %v1730_v23  ;;  %v2203_v52 = vrot.slane %v2142_v33, %v6445_v13  ;;  %v9674_v16 = vld [vmem:[#allocation135_spill] sm:$0xff] }
 0x32e   : > { %v2270_v56 = vadd.f32 %v2269_v54, %v2255_v18  ;;  %v1673_v38 = vrot.slane %v1594_v19, %v6445_v13  ;;  %v2163_v62 = vrot.slane %v2135_v26, %v6699_v48  ;;  %v1604_v50 = vrot.slane %v1069_v53, %v6699_v48  ;;  %v9675_v54 = vld [vmem:[#allocation114_spill] sm:$0xff] }
 0x32f   : > { %v1611_v39 = vrot.slane %v1597_v34, %v6699_v48  ;;  %v1731_v21 = vmul.f32 %v1669_v59, %v9672_v10  ;;  %v2164_v44 = vcombine.high %v2142_v33, %v2142_v33  ;;  %v2166_v1 = vcombine.high %v2156_v2, %v2156_v2 }
 0x330   : > { %v2256_v37 = vmul.f32 %v2203_v52, %v7969_v17  ;;  %v8571_v28 = vadd.f32 %v8477_v57, %v8502_v63  ;;  %6302 = vpow2.f32 %v4939_v25  ;;  %v1677_v60 = vrot.slane %v1596_v7, %v6445_v13  ;;  %v9678_v25 = vld [vmem:[#allocation104_spill] sm:$0xff] }
 0x331   : > { %v2165_v27 = vcombine.high %v2149_v32, %v2149_v32  ;;  %v8575_v14 = vadd.f32 %v9674_v16, %v1854_v46  ;;  %v1746_v53 = vadd.f32 %v1745_v9, %v1731_v21  ;;  %v2207_v58 = vrot.slane %v2156_v2, %v6445_v13  ;;  %v9680_v9 = vld [vmem:[#allocation148_spill] sm:$0xff] }
 0x332   : > { %9673 = vst [vmem:[#allocation141_spill] sm:$0xff] %v8571_v28  ;;  %v2271_v22 = vadd.f32 %v2270_v56, %v2256_v37  ;;  %v1732_v33 = vmul.f32 %v1673_v38, %v9675_v54  ;;  %v2167_v19 = vcombine.high %v2163_v62, %v2163_v62  ;;  %v1612_v26 = vcombine.high %v1604_v50, %v1604_v50  ;;  %v9681_v56 = vld [vmem:[#allocation149_spill] sm:$0xff] }
 0x333   : > { %v1613_v17 = vcombine.high %v1611_v39, %v1611_v39  ;;  %v8579_v34 = vpop.eup %6294  ;;  %v2211_v57 = vrot.slane %v2164_v44, %v6445_v13  ;;  %v2215_v63 = vrot.slane %v2166_v1, %v6445_v13  ;;  %v2219_v59 = vrot.slane %v2149_v32, %v6445_v13  ;;  %v5872_v32 = vpop.f32.mrf.mxu1 }
 0x334   : > { %9676 = vst [vmem:[#allocation84_spill] sm:$0xff] %v8579_v34  ;;  %v2257_v23 = vmul.f32 %v2207_v58, %v9677_v42  ;;  %v2223_v61 = vrot.slane %v2163_v62, %v6445_v13  ;;  %v2227_v2 = vrot.slane %v2165_v27, %v6445_v13  ;;  %v1620_v18 = vrot.slane %v1604_v50, %v6699_v48 }
 0x335   : > { %v1733_v7 = vmul.f32 %v1677_v60, %v9678_v25  ;;  %v8589_v46 = vpop.eup %6296  ;;  %v2258_v52 = vmul.f32 %v2211_v57, %v9680_v9  ;;  %v8593_v38 = vmul.f32 %v2219_v59, %v9681_v56  ;;  %v1747_v21 = vadd.f32 %v1746_v53, %v1732_v33  ;;  %v9684_v60 = vld [vmem:[#allocation147_spill] sm:$0xff]  ;;  %v1082_v42 = vpop.f32.mrf.mxu1 }
 0x336   : > { %9679 = vst [vmem:[#allocation38_spill] sm:$0xff] %v8589_v46  ;;  %v2272_v10 = vadd.f32 %v2271_v22, %v2257_v23  ;;  %v8596_v44 = vrot.slane %v2167_v19, %v6445_v13  ;;  %v8599_v62 = vrot.slane %v1611_v39, %v6699_v48  ;;  %v1634_v50 = vrot.slane %v1612_v26, %v6699_v48  ;;  %v9685_v39 = vld [vmem:[#allocation150_spill] sm:$0xff] }
 0x337   : > { %v3104_v1 = vcombine.high %v5872_v32, %v5872_v32  ;;  %v8602_v37 = vpop.eup %6298  ;;  %v8605_v27 = vmul.f32 %v2215_v63, %v9684_v60  ;;  %v8608_v16 = vrot.slane %v1613_v17, %v6699_v48  ;;  %v1681_v53 = vrot.slane %v1620_v18, %v6445_v13 }
 0x338   : > { %9682 = vst [vmem:[#allocation126_spill] sm:$0xff] %v8596_v44  ;;  %9683 = vst [vmem:[#allocation138_spill] sm:$0xff] %v8602_v37  ;;  %v3111_v58 = vrot.slane %v5872_v32, %v6699_v48  ;;  %v8613_v22 = vmul.f32 %v2223_v61, %v8302_v31  ;;  %v8616_v54 = vmul.f32 %v2227_v2, %v9685_v39  ;;  %v9694_v37 = vld [vmem:[#allocation41_spill] sm:$0xff] }
 0x339   : > { %v1642_v33 = vcombine.high %v1620_v18, %v1620_v18  ;;  %v1685_v19 = vrot.slane %v1634_v50, %v6445_v13  ;;  %v8619_v26 = vpop.eup %6300  ;;  %v2273_v57 = vadd.f32 %v2272_v10, %v2258_v52  ;;  %v1748_v63 = vadd.f32 %v1747_v21, %v1733_v7  ;;  %v9688_v18 = vld [vmem:[#allocation103_spill] sm:$0xff] }
 0x33a   : > { %9686 = vst [vmem:[#allocation139_spill] sm:$0xff] %v8616_v54  ;;  %9687 = vst [vmem:[#allocation45_spill] sm:$0xff] %v8619_v26  ;;  %v3119_v59 = vcombine.high %v3111_v58, %v3111_v58  ;;  %v3127_v17 = vrot.slane %v3111_v58, %v6699_v48  ;;  %v1644_v25 = vcombine.high %v1634_v50, %v1634_v50  ;;  %v9689_v21 = vld [vmem:[#allocation31_spill] sm:$0xff]  ;;  %v9695_v54 = vld [vmem:[#allocation42_spill] sm:$0xff] }
 0x33b   : > { %v3118_v31 = vrot.slane %v3104_v1, %v6699_v48  ;;  %v2594_v61 = vrot.slane %v1082_v42, %v6699_v48  ;;  %v1734_v9 = vmul.f32 %v1681_v53, %v9688_v18  ;;  %v1689_v56 = vrot.slane %v1642_v33, %v6445_v13  ;;  %v9691_v18 = vld [vmem:[#allocation39_spill] sm:$0xff] }
 0x33c   : > { %v3141_v52 = vrot.slane %v3119_v59, %v6699_v48  ;;  %v3149_v7 = vcombine.high %v3127_v17, %v3127_v17  ;;  %v1735_v32 = vmul.f32 %v1685_v19, %v9689_v21  ;;  %v3205_v50 = vrot.slane %v3127_v17, %v6445_v13  ;;  %v9692_v17 = vld [vmem:[#allocation40_spill] sm:$0xff] }
 0x33d   : > { %v8635_v1 = vpop.eup %6302  ;;  %v1749_v60 = vadd.f32 %v1748_v63, %v1734_v9  ;;  %v2587_v2 = vcombine.high %v1082_v42, %v1082_v42  ;;  %v3120_v53 = vcombine.high %v3118_v31, %v3118_v31  ;;  %v2602_v23 = vcombine.high %v2594_v61, %v2594_v61  ;;  %v9693_v9 = vld [vmem:[#allocation143_spill] sm:$0xff] }
 0x33e   : > { %9690 = vst [vmem:[#allocation142_spill] sm:$0xff] %v8635_v1  ;;  %v3151_v58 = vcombine.high %v3141_v52, %v3141_v52  ;;  %v3209_v39 = vrot.slane %v3141_v52, %v6445_v13  ;;  %v3282_v59 = vmul.f32 %v3205_v50, %v9691_v18  ;;  %v2610_v33 = vrot.slane %v2594_v61, %v6699_v48  ;;  %v5873_v1 = vpop.f32.mrf.mxu1 }
 0x33f   : > { %v3134_v26 = vrot.slane %v3118_v31, %v6699_v48  ;;  %v3213_v10 = vrot.slane %v3149_v7, %v6445_v13  ;;  %v1693_v63 = vrot.slane %v1644_v25, %v6445_v13  ;;  %v1701_v42 = vrot.slane %v8608_v16, %v6445_v13 }
 0x340   : > { %v3217_v19 = vrot.slane %v3151_v58, %v6445_v13  ;;  %v3283_v21 = vmul.f32 %v3209_v39, %v9692_v17  ;;  %v1736_v52 = vmul.f32 %v1689_v56, %v9693_v9  ;;  %v3153_v50 = vcombine.high %v5873_v1, %v5873_v1 }
 0x341   : > { %v1750_v18 = vadd.f32 %v1749_v60, %v1735_v32  ;;  %v3284_v61 = vmul.f32 %v3213_v10, %v9694_v37  ;;  %v3160_v31 = vrot.slane %v5873_v1, %v6699_v48  ;;  %v2601_v7 = vrot.slane %v2587_v2, %v6699_v48 }
 0x342   : > { %v3298_v28 = vadd.f32 %v3283_v21, %v3282_v59  ;;  %v2624_v58 = vrot.slane %v2602_v23, %v6699_v48  ;;  %v2632_v39 = vcombine.high %v2610_v33, %v2610_v33  ;;  %v2688_v17 = vrot.slane %v2610_v33, %v6445_v13  ;;  %v9696_v59 = vld [vmem:[#allocation87_spill] sm:$0xff]  ;;  %v9697_v33 = vld [vmem:[#allocation28_spill] sm:$0xff] }
 0x343   : > { %v3148_v25 = vrot.slane %v3120_v53, %v6699_v48  ;;  %v3150_v46 = vcombine.high %v3134_v26, %v3134_v26  ;;  %v3285_v44 = vmul.f32 %v3217_v19, %v9695_v54  ;;  %v3221_v32 = vrot.slane %v3134_v26, %v6445_v13  ;;  %v9698_v54 = vld [vmem:[#allocation120_spill] sm:$0xff]  ;;  %v9699_v19 = vld [vmem:[#allocation30_spill] sm:$0xff] }
 0x344   : > { %v3299_v56 = vadd.f32 %v3298_v28, %v3284_v61  ;;  %v2634_v60 = vcombine.high %v2624_v58, %v2624_v58  ;;  %v2692_v37 = vrot.slane %v2624_v58, %v6445_v13  ;;  %v2696_v10 = vrot.slane %v2632_v39, %v6445_v13 }
 0x345   : > { %v1751_v1 = vadd.f32 %v1750_v18, %v1736_v52  ;;  %v3225_v2 = vrot.slane %v3148_v25, %v6445_v13  ;;  %v2765_v21 = vmul.f32 %v2688_v17, %v9696_v59  ;;  %v3286_v9 = vmul.f32 %v3221_v32, %v9697_v33  ;;  %v9701_v32 = vld [vmem:[#allocation44_spill] sm:$0xff] }
 0x346   : > { %v3300_v23 = vadd.f32 %v3299_v56, %v3285_v44  ;;  %v2603_v53 = vcombine.high %v2601_v7, %v2601_v7  ;;  %v2700_v55 = vrot.slane %v2634_v60, %v6445_v13  ;;  %v2766_v28 = vmul.f32 %v2692_v37, %v9698_v54  ;;  %v9700_v44 = vld [vmem:[#allocation25_spill] sm:$0xff] }
 0x347   : > { %v2274_v26 = vadd.f32 %v2273_v57, %v8605_v27  ;;  %v1737_v61 = vmul.f32 %v1693_v63, %v9699_v19  ;;  %v3152_v58 = vcombine.high %v3148_v25, %v3148_v25  ;;  %v2617_v39 = vrot.slane %v2601_v7, %v6699_v48  ;;  %v9702_v57 = vld [vmem:[#allocation121_spill] sm:$0xff]  ;;  %v9707_v19 = vld [vmem:[#allocation43_spill] sm:$0xff] }
 0x348   : > { %v3229_v52 = vrot.slane %v3150_v46, %v6445_v13  ;;  %v3301_v18 = vadd.f32 %v3300_v23, %v3286_v9  ;;  %v2767_v56 = vmul.f32 %v2696_v10, %v9700_v44  ;;  %v2781_v17 = vadd.f32 %v2766_v28, %v2765_v21 }
 0x349   : > { %v1752_v59 = vadd.f32 %v1751_v1, %v1737_v61  ;;  %v3287_v33 = vmul.f32 %v3225_v2, %v9701_v32  ;;  %v3167_v60 = vrot.slane %v3153_v50, %v6699_v48  ;;  %v3168_v34 = vcombine.high %v3160_v31, %v3160_v31  ;;  %v9705_v50 = vld [vmem:[#allocation144_spill] sm:$0xff] }
 0x34a   : > { %v2631_v37 = vrot.slane %v2603_v53, %v6699_v48  ;;  %v2704_v27 = vrot.slane %v2617_v39, %v6445_v13  ;;  %v2768_v63 = vmul.f32 %v2700_v55, %v9702_v57  ;;  %v2782_v25 = vadd.f32 %v2781_v17, %v2767_v56  ;;  %v1085_v56 = vpop.f32.mrf.mxu1  ;;  %v9708_v57 = vld [vmem:[#allocation48_spill] sm:$0xff] }
 0x34b   : > { %v9703_v46 = vcombine.high %v8599_v62, %v8599_v62  ;;  %v9704_v10 = vcombine.high %v8608_v16, %v8608_v16  ;;  %v9706_v2 = vrot.slane %v8599_v62, %v6445_v13  ;;  %v2633_v21 = vcombine.high %v2617_v39, %v2617_v39 }
 0x34c   : > { %v2275_v55 = vadd.f32 %v2274_v26, %v8593_v38  ;;  %v3302_v9 = vadd.f32 %v3301_v18, %v3287_v33  ;;  %v2783_v53 = vadd.f32 %v2782_v25, %v2768_v63  ;;  %v3176_v54 = vrot.slane %v3160_v31, %v6699_v48  ;;  %v9709_v26 = vld [vmem:[#allocation146_spill] sm:$0xff] }
 0x34d   : > { %v1705_v7 = vrot.slane %v9703_v46, %v6445_v13  ;;  %v8681_v1 = vrot.slane %v9704_v10, %v6445_v13  ;;  %v1738_v23 = vmul.f32 %v9706_v2, %v9705_v50  ;;  %v3233_v28 = vrot.slane %v3152_v58, %v6445_v13  ;;  %v9710_v46 = vld [vmem:[#allocation46_spill] sm:$0xff]  ;;  %v9712_v50 = vld [vmem:[#allocation35_spill] sm:$0xff] }
 0x34e   : > { %v3288_v61 = vmul.f32 %v3229_v52, %v9707_v19  ;;  %v3169_v44 = vcombine.high %v3167_v60, %v3167_v60  ;;  %v3190_v16 = vrot.slane %v3168_v34, %v6699_v48  ;;  %v2635_v32 = vcombine.high %v2631_v37, %v2631_v37  ;;  %v9711_v10 = vld [vmem:[#allocation22_spill] sm:$0xff] }
 0x34f   : > { %v1753_v17 = vadd.f32 %v1752_v59, %v1738_v23  ;;  %v2708_v62 = vrot.slane %v2631_v37, %v6445_v13  ;;  %v2769_v39 = vmul.f32 %v2704_v27, %v9708_v57  ;;  %v1739_v38 = vmul.f32 %v1701_v42, %v8270_v41 }
 0x350   : > { %v8696_v18 = vmul.f32 %v1705_v7, %v9709_v26  ;;  %v2712_v31 = vrot.slane %v2633_v21, %v6445_v13  ;;  %v3183_v58 = vrot.slane %v3167_v60, %v6699_v48  ;;  %v3198_v33 = vcombine.high %v3176_v54, %v3176_v54 }
 0x351   : > { %v2784_v52 = vadd.f32 %v2783_v53, %v2769_v39  ;;  %v3303_v63 = vadd.f32 %v3302_v9, %v3288_v61  ;;  %v2636_v34 = vcombine.high %v1085_v56, %v1085_v56  ;;  %v8701_v59 = vadd.f32 %v2275_v55, %v8613_v22 }
 0x352   : > { %v3197_v37 = vrot.slane %v3169_v44, %v6699_v48  ;;  %v3200_v25 = vcombine.high %v3190_v16, %v3190_v16  ;;  %v2643_v27 = vrot.slane %v1085_v56, %v6699_v48  ;;  %v8705_v41 = vadd.f32 %v1753_v17, %v1739_v38 }
 0x353   : > { %v2716_v42 = vrot.slane %v2635_v32, %v6445_v13  ;;  %v2770_v7 = vmul.f32 %v2708_v62, %v9710_v46  ;;  %v3289_v60 = vmul.f32 %v3233_v28, %v9711_v10  ;;  %v2771_v2 = vmul.f32 %v2712_v31, %v9712_v50  ;;  %v5876_v28 = vpop.f32.mrf.mxu1 }
 0x354   : > { %v3199_v23 = vcombine.high %v3183_v58, %v3183_v58  ;;  %v3237_v21 = vrot.slane %v3176_v54, %v6445_v13  ;;  %v3241_v22 = vrot.slane %v3190_v16, %v6445_v13  ;;  %v3245_v9 = vrot.slane %v3198_v33, %v6445_v13 }
 0x355   : > { %v2785_v55 = vadd.f32 %v2784_v52, %v2770_v7  ;;  %v3304_v53 = vadd.f32 %v3303_v63, %v3289_v60  ;;  %v2650_v19 = vrot.slane %v2636_v34, %v6699_v48  ;;  %v3201_v61 = vcombine.high %v3197_v37, %v3197_v37  ;;  %v5966_v60 = vld [vmem:[%s9152_s8] sm:$0xff]  }
 0x356   : > { %v3249_v44 = vrot.slane %v3200_v25, %v6445_v13  ;;  %v3253_v56 = vrot.slane %v3183_v58, %v6445_v13  ;;  %v2651_v17 = vcombine.high %v2643_v27, %v2643_v27  ;;  %v3257_v32 = vrot.slane %v3197_v37, %v6445_v13  ;;  %5890 = vmatprep.mubr.msk.bf16.mxu0 %vm875_vm1, %v5966_v60 }
 0x357   : > { %v3290_v62 = vmul.f32 %v3237_v21, %v8281_v0  ;;  %v2659_v54 = vrot.slane %v2643_v27, %v6699_v48  ;;  %v4145_v16 = vrot.slane %v5876_v28, %v6699_v48  ;;  %v3261_v57 = vrot.slane %v3199_v23, %v6445_v13 }
 0x358   : > { %v3291_v39 = vmul.f32 %v3241_v22, %v8285_v51  ;;  %v3292_v38 = vmul.f32 %v3245_v9, %v8292_v49  ;;  %v4138_v26 = vcombine.high %v5876_v28, %v5876_v28  ;;  %v8725_v31 = vmul.f32 %v3253_v56, %v8315_v45  ;;  %v9713_v45 = vld [vmem:[#allocation118_spill] sm:$0xff] }
 0x359   : > { %v3305_v58 = vadd.f32 %v3304_v53, %v3290_v62  ;;  %v2652_v52 = vcombine.high %v2650_v19, %v2650_v19  ;;  %v2786_v33 = vadd.f32 %v2785_v55, %v2771_v2  ;;  %v8728_v63 = vrot.slane %v3201_v61, %v6445_v13  ;;  %v1098_v55 = vpop.f32.mrf.mxu1 }
 0x35a   : > { %v8731_v0 = vmul.f32 %v3249_v44, %v8299_v3  ;;  %v8734_v34 = vrot.slane %v2650_v19, %v6699_v48  ;;  %v2673_v51 = vrot.slane %v2651_v17, %v6699_v48  ;;  %v8738_v49 = vmul.f32 %v3257_v32, %v8349_v4  ;;  %v9714_v17 = vld [vmem:[#allocation79_spill] sm:$0xff] }
 0x35b   : > { %v2681_v37 = vcombine.high %v2659_v54, %v2659_v54  ;;  %v2772_v25 = vmul.f32 %v2716_v42, %v9713_v45  ;;  %v4153_v27 = vcombine.high %v4145_v16, %v4145_v16  ;;  %v8742_v46 = vmul.f32 %v3261_v57, %v8322_v12  ;;  %v9717_v45 = vld [vmem:[#allocation68_spill] sm:$0xff] }
 0x35c   : > { %v2720_v7 = vrot.slane %v2659_v54, %v6445_v13  ;;  %v4152_v3 = vrot.slane %v4138_v26, %v6699_v48  ;;  %v4161_v10 = vrot.slane %v4145_v16, %v6699_v48  ;;  %v3306_v50 = vadd.f32 %v3305_v58, %v3291_v39  ;;  %v9715_v16 = vld [vmem:[#allocation65_spill] sm:$0xff] }
 0x35d   : > { %v8751_v4 = vrot.slane %v2652_v52, %v6699_v48  ;;  %v2787_v2 = vadd.f32 %v2786_v33, %v2772_v25  ;;  %v4175_v42 = vrot.slane %v4153_v27, %v6699_v48  ;;  %v2682_v12 = vcombine.high %v8734_v34, %v8734_v34  ;;  %v9716_v33 = vld [vmem:[#allocation133_spill] sm:$0xff] }
 0x35e   : > { %v2683_v23 = vcombine.high %v2673_v51, %v2673_v51  ;;  %v4183_v21 = vcombine.high %v4161_v10, %v4161_v10  ;;  %v4239_v22 = vrot.slane %v4161_v10, %v6445_v13  ;;  %v2724_v9 = vrot.slane %v2673_v51, %v6445_v13 }
 0x35f   : > { %v2728_v53 = vrot.slane %v2681_v37, %v6445_v13  ;;  %v4185_v19 = vcombine.high %v4175_v42, %v4175_v42  ;;  %v3621_v61 = vcombine.high %v1098_v55, %v1098_v55  ;;  %v4154_v44 = vcombine.high %v4152_v3, %v4152_v3 }
 0x360   : > { %v4243_v56 = vrot.slane %v4175_v42, %v6445_v13  ;;  %v4316_v28 = vmul.f32 %v4239_v22, %v9714_v17  ;;  %v3628_v32 = vrot.slane %v1098_v55, %v6699_v48  ;;  %v3307_v62 = vadd.f32 %v3306_v50, %v3292_v38 }
 0x361   : > { %v2736_v54 = vrot.slane %v8734_v34, %v6445_v13  ;;  %v2773_v57 = vmul.f32 %v2720_v7, %v9715_v16  ;;  %v4168_v39 = vrot.slane %v4152_v3, %v6699_v48  ;;  %v2684_v26 = vcombine.high %v8751_v4, %v8751_v4  ;;  %v9718_v3 = vld [vmem:[#allocation99_spill] sm:$0xff] }
 0x362   : > { %v4247_v58 = vrot.slane %v4183_v21, %v6445_v13  ;;  %v4251_v52 = vrot.slane %v4185_v19, %v6445_v13  ;;  %v4317_v51 = vmul.f32 %v4243_v56, %v9716_v33  ;;  %v2732_v37 = vrot.slane %v2683_v23, %v6445_v13  ;;  %v9719_v19 = vld [vmem:[#allocation51_spill] sm:$0xff] }
 0x363   : > { %v2740_v38 = vrot.slane %v8751_v4, %v6445_v13  ;;  %v2774_v25 = vmul.f32 %v2724_v9, %v9717_v45  ;;  %v3635_v27 = vrot.slane %v3621_v61, %v6699_v48  ;;  %v4182_v7 = vrot.slane %v4154_v44, %v6699_v48 }
 0x364   : > { %v4318_v10 = vmul.f32 %v4247_v58, %v9718_v3  ;;  %v4332_v60 = vadd.f32 %v4317_v51, %v4316_v28  ;;  %v3636_v50 = vcombine.high %v3628_v32, %v3628_v32  ;;  %v2788_v42 = vadd.f32 %v2787_v2, %v2773_v57  ;;  %v9720_v51 = vld [vmem:[#allocation122_spill] sm:$0xff]  ;;  %v5877_v3 = vpop.f32.mrf.mxu1 }
 0x365   : > { %v4184_v21 = vcombine.high %v4168_v39, %v4168_v39  ;;  %v4255_v22 = vrot.slane %v4168_v39, %v6445_v13  ;;  %v3644_v55 = vrot.slane %v3628_v32, %v6699_v48  ;;  %v4259_v23 = vrot.slane %v4182_v7, %v6445_v13 }
 0x366   : > { %v4319_v56 = vmul.f32 %v4251_v52, %v9719_v19  ;;  %v4333_v17 = vadd.f32 %v4332_v60, %v4318_v10  ;;  %v3658_v9 = vrot.slane %v3636_v50, %v6699_v48  ;;  %v3637_v44 = vcombine.high %v3635_v27, %v3635_v27  ;;  %v9721_v60 = vld [vmem:[#allocation89_spill] sm:$0xff]  ;;  %v9722_v19 = vld [vmem:[#allocation56_spill] sm:$0xff] }
 0x367   : > { %v4320_v61 = vmul.f32 %v4255_v22, %v8229_v20  ;;  %v3666_v16 = vcombine.high %v3644_v55, %v3644_v55  ;;  %v3722_v28 = vrot.slane %v3644_v55, %v6445_v13  ;;  %v3651_v2 = vrot.slane %v3635_v27, %v6699_v48 }
 0x368   : > { %v4334_v58 = vadd.f32 %v4333_v17, %v4319_v56  ;;  %v3668_v57 = vcombine.high %v3658_v9, %v3658_v9  ;;  %v3726_v39 = vrot.slane %v3658_v9, %v6445_v13  ;;  %v2744_v32 = vrot.slane %v2682_v12, %v6445_v13  ;;  %v9723_v17 = vld [vmem:[#allocation21_spill] sm:$0xff] }
 0x369   : > { %v2789_v33 = vadd.f32 %v2788_v42, %v2774_v25  ;;  %v3730_v52 = vrot.slane %v3666_v16, %v6445_v13  ;;  %v3799_v45 = vmul.f32 %v3722_v28, %v9720_v51  ;;  %v4194_v22 = vrot.slane %v5877_v3, %v6699_v48  ;;  %v9724_v28 = vld [vmem:[#allocation70_spill] sm:$0xff] }
 0x36a   : > { %v4335_v10 = vadd.f32 %v4334_v58, %v4320_v61  ;;  %v3734_v20 = vrot.slane %v3668_v57, %v6445_v13  ;;  %v3800_v50 = vmul.f32 %v3726_v39, %v9721_v60  ;;  %v4186_v55 = vcombine.high %v4182_v7, %v4182_v7  ;;  %v9725_v51 = vld [vmem:[#allocation98_spill] sm:$0xff] }
 0x36b   : > { %v4263_v27 = vrot.slane %v4184_v21, %v6445_v13  ;;  %v4321_v56 = vmul.f32 %v4259_v23, %v9722_v19  ;;  %v3665_v12 = vrot.slane %v3637_v44, %v6699_v48  ;;  %v3667_v25 = vcombine.high %v3651_v2, %v3651_v2 }
 0x36c   : > { %v3738_v42 = vrot.slane %v3651_v2, %v6445_v13  ;;  %v3801_v9 = vmul.f32 %v3730_v52, %v9723_v17  ;;  %v3815_v16 = vadd.f32 %v3800_v50, %v3799_v45  ;;  %v3308_v61 = vadd.f32 %v3307_v62, %v8731_v0  ;;  %v9726_v62 = vld [vmem:[#allocation69_spill] sm:$0xff]  ;;  %v9727_v50 = vld [vmem:[#allocation66_spill] sm:$0xff] }
 0x36d   : > { %v2775_v58 = vmul.f32 %v2728_v53, %v9724_v28  ;;  %v4336_v57 = vadd.f32 %v4335_v10, %v4321_v56  ;;  %v4187_v39 = vcombine.high %v5877_v3, %v5877_v3  ;;  %v3742_v7 = vrot.slane %v3665_v12, %v6445_v13  ;;  %v1101_v3 = vpop.f32.mrf.mxu1 }
 0x36e   : > { %v3802_v21 = vmul.f32 %v3734_v20, %v9725_v51  ;;  %v3816_v60 = vadd.f32 %v3815_v16, %v3801_v9  ;;  %v4202_v23 = vcombine.high %v4194_v22, %v4194_v22  ;;  %v4267_v44 = vrot.slane %v4186_v55, %v6445_v13  ;;  %v9730_v9 = vld [vmem:[#allocation96_spill] sm:$0xff] }
 0x36f   : > { %v2790_v19 = vadd.f32 %v2789_v33, %v2775_v58  ;;  %v4322_v2 = vmul.f32 %v4263_v27, %v8235_v35  ;;  %v4210_v52 = vrot.slane %v4194_v22, %v6699_v48  ;;  %v3669_v45 = vcombine.high %v3665_v12, %v3665_v12  ;;  %v9728_v35 = vld [vmem:[#allocation75_spill] sm:$0xff]  ;;  %v9729_v22 = vld [vmem:[#allocation102_spill] sm:$0xff] }
 0x370   : > { %v3746_v0 = vrot.slane %v3667_v25, %v6445_v13  ;;  %v3803_v53 = vmul.f32 %v3738_v42, %v9726_v62  ;;  %v3817_v10 = vadd.f32 %v3816_v60, %v3802_v21  ;;  %v2777_v20 = vmul.f32 %v2736_v54, %v9727_v50  ;;  %v9731_v58 = vld [vmem:[#allocation91_spill] sm:$0xff] }
 0x371   : > { %v4201_v33 = vrot.slane %v4187_v39, %v6699_v48  ;;  %v4337_v56 = vadd.f32 %v4336_v57, %v4322_v2  ;;  %v3677_v55 = vrot.slane %v1101_v3, %v6699_v48  ;;  %v2776_v27 = vmul.f32 %v2732_v37, %v9728_v35 }
 0x372   : > { %v3804_v12 = vmul.f32 %v3742_v7, %v9729_v22  ;;  %v3818_v17 = vadd.f32 %v3817_v10, %v3803_v53  ;;  %v4224_v25 = vrot.slane %v4202_v23, %v6699_v48  ;;  %v3309_v42 = vadd.f32 %v3308_v61, %v8725_v31  ;;  %v9733_v53 = vld [vmem:[#allocation131_spill] sm:$0xff] }
 0x373   : > { %v8822_v34 = vrot.slane %v2684_v26, %v6445_v13  ;;  %v4271_v54 = vrot.slane %v4210_v52, %v6445_v13  ;;  %v4323_v16 = vmul.f32 %v4267_v44, %v9730_v9  ;;  %v2791_v28 = vadd.f32 %v2790_v19, %v2776_v27  ;;  %v9732_v44 = vld [vmem:[#allocation74_spill] sm:$0xff]  ;;  %v9734_v27 = vld [vmem:[#allocation76_spill] sm:$0xff] }
 0x374   : > { %v3750_v37 = vrot.slane %v3669_v45, %v6445_v13  ;;  %v3805_v57 = vmul.f32 %v3746_v0, %v9731_v58  ;;  %v3819_v39 = vadd.f32 %v3818_v17, %v3804_v12  ;;  %v4203_v7 = vcombine.high %v4201_v33, %v4201_v33 }
 0x375   : > { %v4324_v51 = vmul.f32 %v4271_v54, %v8450_v15  ;;  %v4338_v31 = vadd.f32 %v4337_v56, %v4323_v16  ;;  %v3685_v61 = vcombine.high %v3677_v55, %v3677_v55  ;;  %v4232_v21 = vcombine.high %v4210_v52, %v4210_v52 }
 0x376   : > { %v4275_v60 = vrot.slane %v4224_v25, %v6445_v13  ;;  %v3693_v26 = vrot.slane %v3677_v55, %v6699_v48  ;;  %v3820_v23 = vadd.f32 %v3819_v39, %v3805_v57  ;;  %v2778_v19 = vmul.f32 %v2740_v38, %v8330_v8  ;;  %v9736_v57 = vld [vmem:[#allocation90_spill] sm:$0xff] }
 0x377   : > { %v8836_v2 = vmul.f32 %v2744_v32, %v9732_v44  ;;  %v4339_v45 = vadd.f32 %v4338_v31, %v4324_v51  ;;  %v3670_v0 = vcombine.high %v1101_v3, %v1101_v3  ;;  %v4234_v62 = vcombine.high %v4224_v25, %v4224_v25  ;;  %v5880_v51 = vpop.f32.mrf.mxu1 }
 0x378   : > { %v4325_v15 = vmul.f32 %v4275_v60, %v8404_v43  ;;  %v3754_v52 = vrot.slane %v3693_v26, %v6445_v13  ;;  %v3806_v10 = vmul.f32 %v3750_v37, %v9733_v53  ;;  %v2792_v50 = vadd.f32 %v2791_v28, %v2777_v20  ;;  %v9735_v20 = vld [vmem:[#allocation80_spill] sm:$0xff] }
 0x379   : > { %v4217_v56 = vrot.slane %v4201_v33, %v6699_v48  ;;  %v4231_v55 = vrot.slane %v4203_v7, %v6699_v48  ;;  %v3707_v4 = vrot.slane %v3685_v61, %v6699_v48  ;;  %v8845_v8 = vadd.f32 %v3309_v42, %v8738_v49  ;;  %v1114_v53 = vpop.f32.mrf.mxu1 }
 0x37a   : > { %v4279_v38 = vrot.slane %v4232_v21, %v6445_v13  ;;  %v4340_v32 = vadd.f32 %v4339_v45, %v4325_v15  ;;  %v3821_v3 = vadd.f32 %v3820_v23, %v3806_v10  ;;  %v3715_v35 = vcombine.high %v3693_v26, %v3693_v26  ;;  %v9737_v15 = vld [vmem:[#allocation95_spill] sm:$0xff] }
 0x37b   : > { %v3758_v43 = vrot.slane %v3707_v4, %v6445_v13  ;;  %v4893_v22 = vmul.f32 %v9604_v30, %v9734_v27  ;;  %v4895_v33 = vmul.f32 %v9604_v30, %v9735_v20  ;;  %v4283_v12 = vrot.slane %v4234_v62, %v6445_v13  ;;  %v9739_v27 = vld [vmem:[#allocation71_spill] sm:$0xff] }
 0x37c   : > { %v4326_v17 = vmul.f32 %v4279_v38, %v8461_v29  ;;  %v3684_v49 = vrot.slane %v3670_v0, %v6699_v48  ;;  %v3807_v25 = vmul.f32 %v3754_v52, %v8396_v11  ;;  %v8857_v42 = vadd.f32 %v2792_v50, %v2778_v19  ;;  %v9740_v20 = vld [vmem:[#allocation27_spill] sm:$0xff] }
 0x37d   : > { %v4233_v54 = vcombine.high %v4217_v56, %v4217_v56  ;;  %v4235_v9 = vcombine.high %v4231_v55, %v4231_v55  ;;  %v4287_v16 = vrot.slane %v4217_v56, %v6445_v13  ;;  %v3717_v37 = vcombine.high %v3707_v4, %v3707_v4 }
 0x37e   : > { %v4341_v28 = vadd.f32 %v4340_v32, %v4326_v17  ;;  %v3822_v58 = vadd.f32 %v3821_v3, %v3807_v25  ;;  %v4897_v39 = vmul.f32 %v9604_v30, %v9736_v57  ;;  %v3762_v7 = vrot.slane %v3715_v35, %v6445_v13 }
 0x37f   : > { %v3808_v29 = vmul.f32 %v3758_v43, %v8360_v40  ;;  %v4909_v31 = vmul.f32 1.442695, %v4893_v22  ;;  %v4913_v61 = vmul.f32 1.442695, %v4895_v33  ;;  %v4291_v11 = vrot.slane %v4231_v55, %v6445_v13  ;;  %v9738_v55 = vld [vmem:[#allocation34_spill] sm:$0xff]  ;;  %v9741_v33 = vld [vmem:[#allocation53_spill] sm:$0xff] }
 0x380   : > { %v4327_v21 = vmul.f32 %v4283_v12, %v8407_v6  ;;  %v3686_v60 = vcombine.high %v3684_v49, %v3684_v49  ;;  %v4917_v26 = vmul.f32 1.442695, %v4897_v39  ;;  %v4295_v23 = vrot.slane %v4233_v54, %v6445_v13  ;;  %v9742_v54 = vld [vmem:[#allocation97_spill] sm:$0xff] }
 0x381   : > { %v3700_v19 = vrot.slane %v3684_v49, %v6699_v48  ;;  %v3823_v44 = vadd.f32 %v3822_v58, %v3808_v29  ;;  %6304 = vpow2.f32 %v4909_v31  ;;  %v4328_v45 = vmul.f32 %v4287_v16, %v8464_v47 }
 0x382   : > { %v4342_v0 = vadd.f32 %v4341_v28, %v4327_v21  ;;  %v3766_v40 = vrot.slane %v3717_v37, %v6445_v13  ;;  %6306 = vpow2.f32 %v4913_v61  ;;  %v3809_v62 = vmul.f32 %v3762_v7, %v8415_v5  ;;  %v9744_v28 = vld [vmem:[#allocation88_spill] sm:$0xff] }
 0x383   : > { %v4899_v52 = vmul.f32 %v9604_v30, %v9737_v15  ;;  %6308 = vpow2.f32 %v4917_v26  ;;  %v5179_v6 = vrot.slane %v5880_v51, %v6699_v48  ;;  %v8875_v10 = vrot.slane %v4235_v9, %v6445_v13  ;;  %v9743_v9 = vld [vmem:[#allocation63_spill] sm:$0xff]  ;;  %v9745_v37 = vld [vmem:[#allocation72_spill] sm:$0xff] }
 0x384   : > { %v4329_v50 = vmul.f32 %v4291_v11, %v8445_v36  ;;  %v8879_v47 = vrot.slane %v3686_v60, %v6699_v48  ;;  %v4662_v56 = vrot.slane %v1114_v53, %v6699_v48  ;;  %v8883_v4 = vmul.f32 %v4295_v23, %v9738_v55  ;;  %v9746_v61 = vld [vmem:[#allocation52_spill] sm:$0xff]  ;;  %v9748_v23 = vld [vmem:[#allocation153_spill] sm:$0xff] }
 0x385   : > { %v3716_v5 = vcombine.high %v3700_v19, %v3700_v19  ;;  %v3824_v38 = vadd.f32 %v3823_v44, %v3809_v62  ;;  %v5172_v32 = vcombine.high %v5880_v51, %v5880_v51  ;;  %v4343_v3 = vadd.f32 %v4342_v0, %v4328_v45  ;;  %v9747_v21 = vld [vmem:[#allocation36_spill] sm:$0xff]  ;;  %v9749_v0 = vld [vmem:[#allocation49_spill] sm:$0xff]  ;;  %v9750_v62 = vld [vmem:[#allocation50_spill] sm:$0xff] }
 0x386   : > { %v3770_v35 = vrot.slane %v3700_v19, %v6445_v13  ;;  %v3774_v43 = vrot.slane %v8879_v47, %v6445_v13  ;;  %v3810_v22 = vmul.f32 %v3766_v40, %v9739_v27  ;;  %v4921_v36 = vmul.f32 1.442695, %v4899_v52  ;;  %v9751_v55 = vld [vmem:[#allocation33_spill] sm:$0xff] }
 0x387   : > { %v4942_v12 = vmul.f32 %v9741_v33, %v9740_v20  ;;  %v5187_v17 = vcombine.high %v5179_v6, %v5179_v6  ;;  %v4670_v49 = vcombine.high %v4662_v56, %v4662_v56  ;;  %v3718_v25 = vcombine.high %v8879_v47, %v8879_v47 }
 0x388   : > { %v4944_v16 = vmul.f32 %v9743_v9, %v9742_v54  ;;  %v4946_v58 = vmul.f32 %v9745_v37, %v9744_v28  ;;  %v4655_v57 = vcombine.high %v1114_v53, %v1114_v53  ;;  %v8898_v39 = vrot.slane %v3716_v5, %v6445_v13  ;;  %v9753_v9 = vld [vmem:[#allocation85_spill] sm:$0xff] }
 0x389   : > { %v3825_v7 = vadd.f32 %v3824_v38, %v3810_v22  ;;  %v5186_v29 = vrot.slane %v5172_v32, %v6699_v48  ;;  %v4678_v51 = vrot.slane %v4662_v56, %v6699_v48  ;;  %v8902_v31 = vadd.f32 %v4343_v3, %v4329_v50  ;;  %v9752_v22 = vld [vmem:[#allocation82_spill] sm:$0xff] }
 0x38a   : > { %v3811_v11 = vmul.f32 %v3770_v35, %v9746_v61  ;;  %v8906_v60 = vmul.f32 %v3774_v43, %v9747_v21  ;;  %v5195_v26 = vrot.slane %v5179_v6, %v6699_v48  ;;  %6310 = vpow2.f32 %v4921_v36 }
 0x38b   : > { %v5155_v19 = vadd.f32 %v9748_v23, %v4942_v12  ;;  %v5209_v44 = vrot.slane %v5187_v17, %v6699_v48  ;;  %v4692_v45 = vrot.slane %v4670_v49, %v6699_v48  ;;  %v5157_v40 = vadd.f32 %v9749_v0, %v4944_v16 }
 0x38c   : > { %v8914_v15 = vadd.f32 %v9750_v62, %v4946_v58  ;;  %v4669_v52 = vrot.slane %v4655_v57, %v6699_v48  ;;  %v4700_v53 = vcombine.high %v4678_v51, %v4678_v51  ;;  %v8917_v50 = vadd.f32 %v3825_v7, %v3811_v11  ;;  %v9754_v7 = vld [vmem:[#allocation24_spill] sm:$0xff] }
 0x38d   : > { %v5188_v56 = vcombine.high %v5186_v29, %v5186_v29  ;;  %v4756_v6 = vrot.slane %v4678_v51, %v6445_v13  ;;  %v4901_v5 = vmul.f32 %v9604_v30, %v9751_v55  ;;  %v5202_v32 = vrot.slane %v5186_v29, %v6699_v48  ;;  %v9755_v51 = vld [vmem:[#allocation151_spill] sm:$0xff] }
 0x38e   : > { %v6305_v38 = vpop.eup %6304  ;;  %v5217_v3 = vcombine.high %v5195_v26, %v5195_v26  ;;  %v5273_v35 = vrot.slane %v5195_v26, %v6445_v13  ;;  %v4760_v43 = vrot.slane %v4692_v45, %v6445_v13  ;;  %v5219_v33 = vcombine.high %v5209_v44, %v5209_v44  ;;  %v9756_v26 = vld [vmem:[#allocation154_spill] sm:$0xff] }
 0x38f   : > { %v6307_v27 = vpop.eup %6306  ;;  %v4941_v36 = vmul.f32 %v6305_v38, %v9752_v22  ;;  %v5277_v12 = vrot.slane %v5209_v44, %v6445_v13  ;;  %v4702_v17 = vcombine.high %v4692_v45, %v4692_v45  ;;  %v4764_v37 = vrot.slane %v4700_v53, %v6445_v13 }
 0x390   : > { %v6309_v49 = vpop.eup %6308  ;;  %v4943_v16 = vmul.f32 %v6307_v27, %v9753_v9  ;;  %v4833_v58 = vmul.f32 %v4756_v6, %v9752_v22  ;;  %v4834_v57 = vmul.f32 %v4760_v43, %v9740_v20  ;;  %v4671_v21 = vcombine.high %v4669_v52, %v4669_v52  ;;  %v9757_v6 = vld [vmem:[#allocation127_spill] sm:$0xff] }
 0x391   : > { %v4945_v29 = vmul.f32 %v6309_v49, %v9754_v7  ;;  %v5154_v61 = vadd.f32 %v9755_v51, %v4941_v36  ;;  %v5351_v11 = vmul.f32 %v5277_v12, %v5155_v19  ;;  %v5216_v44 = vrot.slane %v5188_v56, %v6699_v48  ;;  %v9758_v22 = vld [vmem:[#allocation155_spill] sm:$0xff] }
 0x392   : > { %v5156_v23 = vadd.f32 %v9756_v26, %v4943_v16  ;;  %v5218_v45 = vcombine.high %v5202_v32, %v5202_v32  ;;  %v5281_v0 = vrot.slane %v5217_v3, %v6445_v13  ;;  %v5285_v62 = vrot.slane %v5219_v33, %v6445_v13 }
 0x393   : > { %v5350_v53 = vmul.f32 %v5273_v35, %v5154_v61  ;;  %v4849_v55 = vadd.f32 %v4834_v57, %v4833_v58  ;;  %v4903_v20 = vmul.f32 %v9604_v30, %v9757_v6  ;;  %v5289_v38 = vrot.slane %v5202_v32, %v6445_v13  ;;  %v9759_v35 = vld [vmem:[#allocation134_spill] sm:$0xff]  ;;  %v9760_v61 = vld [vmem:[#allocation61_spill] sm:$0xff] }
 0x394   : > { %v4685_v43 = vrot.slane %v4669_v52, %v6699_v48  ;;  %v4768_v19 = vrot.slane %v4702_v17, %v6445_v13  ;;  %v4835_v27 = vmul.f32 %v4764_v37, %v9753_v9  ;;  %v5158_v56 = vadd.f32 %v9758_v22, %v4945_v29  ;;  %v5881_v52 = vpop.f32.mrf.mxu1 }
 0x395   : > { %v5352_v36 = vmul.f32 %v5281_v0, %v5156_v23  ;;  %v5366_v12 = vadd.f32 %v5351_v11, %v5350_v53  ;;  %v4925_v3 = vmul.f32 1.442695, %v4901_v5  ;;  %v5220_v49 = vcombine.high %v5216_v44, %v5216_v44 }
 0x396   : > { %v4850_v33 = vadd.f32 %v4849_v55, %v4835_v27  ;;  %v4905_v16 = vmul.f32 %v9604_v30, %v9759_v35  ;;  %v4929_v58 = vmul.f32 1.442695, %v4903_v20  ;;  %v5293_v57 = vrot.slane %v5216_v44, %v6445_v13  ;;  %v9761_v55 = vld [vmem:[#allocation137_spill] sm:$0xff]  ;;  %v9762_v27 = vld [vmem:[#allocation67_spill] sm:$0xff] }
 0x397   : > { %v5353_v32 = vmul.f32 %v5285_v62, %v5157_v40  ;;  %v5367_v51 = vadd.f32 %v5366_v12, %v5352_v36  ;;  %6312 = vpow2.f32 %v4925_v3  ;;  %v6311_v17 = vpop.eup %6310  ;;  %v4699_v9 = vrot.slane %v4671_v21, %v6699_v48  ;;  %v9763_v12 = vld [vmem:[#allocation101_spill] sm:$0xff]  ;;  %v9764_v3 = vld [vmem:[#allocation94_spill] sm:$0xff] }
 0x398   : > { %v4701_v37 = vcombine.high %v4685_v43, %v4685_v43  ;;  %v4772_v29 = vrot.slane %v4685_v43, %v6445_v13  ;;  %v4836_v5 = vmul.f32 %v4768_v19, %v9742_v54  ;;  %v4947_v11 = vmul.f32 %v6311_v17, %v9760_v61  ;;  %v1117_v43 = vpop.f32.mrf.mxu1 }
 0x399   : > { %v5354_v26 = vmul.f32 %v5289_v38, %v5158_v56  ;;  %v5368_v23 = vadd.f32 %v5367_v51, %v5353_v32  ;;  %6314 = vpow2.f32 %v4929_v58  ;;  %v5297_v0 = vrot.slane %v5218_v45, %v6445_v13  ;;  %v9765_v58 = vld [vmem:[#allocation73_spill] sm:$0xff]  ;;  %v9767_v32 = vld [vmem:[#allocation123_spill] sm:$0xff]  ;;  %v9768_v51 = vld [vmem:[#allocation152_spill] sm:$0xff] }
 0x39a   : > { %v5301_v40 = vrot.slane %v5220_v49, %v6445_v13  ;;  %v4851_v44 = vadd.f32 %v4850_v33, %v4836_v5  ;;  %v4933_v62 = vmul.f32 1.442695, %v4905_v16  ;;  %v4907_v21 = vmul.f32 %v9604_v30, %v9761_v55 }
 0x39b   : > { %v5369_v53 = vadd.f32 %v5368_v23, %v5354_v26  ;;  %v5221_v6 = vcombine.high %v5881_v52, %v5881_v52  ;;  %v5228_v20 = vrot.slane %v5881_v52, %v6699_v48  ;;  %v5355_v54 = vmul.f32 %v5293_v57, %v8914_v15  ;;  %v9766_v57 = vld [vmem:[#allocation124_spill] sm:$0xff] }
 0x39c   : > { %v4776_v38 = vrot.slane %v4699_v9, %v6445_v13  ;;  %v4837_v19 = vmul.f32 %v4772_v29, %v9754_v7  ;;  %v4711_v45 = vrot.slane %v1117_v43, %v6699_v48  ;;  %v5160_v22 = vadd.f32 %v9762_v27, %v4947_v11 }
 0x39d   : > { %v4703_v56 = vcombine.high %v4699_v9, %v4699_v9  ;;  %v4780_v36 = vrot.slane %v4701_v37, %v6445_v13  ;;  %v4948_v30 = vmul.f32 %v9764_v3, %v9763_v12  ;;  %6316 = vpow2.f32 %v4933_v62  ;;  %v9769_v9 = vld [vmem:[#allocation59_spill] sm:$0xff]  ;;  %v9770_v37 = vld [vmem:[#allocation78_spill] sm:$0xff]  ;;  %v9771_v62 = vld [vmem:[#allocation100_spill] sm:$0xff] }
 0x39e   : > { %v4852_v49 = vadd.f32 %v4851_v44, %v4837_v19  ;;  %v5235_v33 = vrot.slane %v5221_v6, %v6699_v48  ;;  %v5236_v35 = vcombine.high %v5228_v20, %v5228_v20  ;;  %v5370_v15 = vadd.f32 %v5369_v53, %v5355_v54  ;;  %v9773_v19 = vld [vmem:[#allocation32_spill] sm:$0xff] }
 0x39f   : > { %v4937_v16 = vmul.f32 1.442695, %v4907_v21  ;;  %v4950_v7 = vmul.f32 %v9766_v57, %v9765_v58  ;;  %v4952_v52 = vmul.f32 %v9768_v51, %v9767_v32  ;;  %v4838_v17 = vmul.f32 %v4776_v38, %v9744_v28  ;;  %v9772_v28 = vld [vmem:[#allocation92_spill] sm:$0xff] }
 0x3a0   : > { %v4954_v29 = vmul.f32 %v9770_v37, %v9769_v9  ;;  %v4704_v5 = vcombine.high %v1117_v43, %v1117_v43  ;;  %v4719_v11 = vcombine.high %v4711_v45, %v4711_v45  ;;  %v5356_v26 = vmul.f32 %v5297_v0, %v5160_v22  ;;  %v9774_v0 = vld [vmem:[#allocation54_spill] sm:$0xff] }
 0x3a1   : > { %v4784_v23 = vrot.slane %v4703_v56, %v6445_v13  ;;  %v4839_v44 = vmul.f32 %v4780_v36, %v9760_v61  ;;  %v5161_v53 = vadd.f32 %v9771_v62, %v4948_v30  ;;  %v4853_v55 = vadd.f32 %v4852_v49, %v4838_v17  ;;  %v9775_v30 = vld [vmem:[#allocation60_spill] sm:$0xff] }
 0x3a2   : > { %v5237_v21 = vcombine.high %v5235_v33, %v5235_v33  ;;  %v5244_v6 = vrot.slane %v5228_v20, %v6699_v48  ;;  %v5258_v54 = vrot.slane %v5236_v35, %v6699_v48  ;;  %6318 = vpow2.f32 %v4937_v16  ;;  %v9776_v17 = vld [vmem:[#allocation136_spill] sm:$0xff] }
 0x3a3   : > { %v5163_v38 = vadd.f32 %v9772_v28, %v4950_v7  ;;  %v5165_v27 = vadd.f32 %v9773_v19, %v4952_v52  ;;  %v5371_v43 = vadd.f32 %v5370_v15, %v5356_v26  ;;  %v8980_v22 = vadd.f32 %v9774_v0, %v4954_v29 }
 0x3a4   : > { %v6313_v3 = vpop.eup %6312  ;;  %v4718_v61 = vrot.slane %v4704_v5, %v6699_v48  ;;  %v4727_v56 = vrot.slane %v4711_v45, %v6699_v48  ;;  %v4741_v36 = vrot.slane %v4719_v11, %v6699_v48  ;;  %v8987_v49 = vrot.slane %v5235_v33, %v6699_v48  ;;  %v9777_v45 = vld [vmem:[#allocation26_spill] sm:$0xff] }
 0x3a5   : > { %v4949_v20 = vmul.f32 %v6313_v3, %v9775_v30  ;;  %v5357_v35 = vmul.f32 %v5301_v40, %v5161_v53  ;;  %v4840_v16 = vmul.f32 %v4784_v23, %v9763_v12  ;;  %v8991_v15 = vrot.slane %v5237_v21, %v6699_v48 }
 0x3a6   : > { %v6315_v57 = vpop.eup %6314  ;;  %v5266_v7 = vcombine.high %v5244_v6, %v5244_v6  ;;  %v5268_v51 = vcombine.high %v5258_v54, %v5258_v54  ;;  %v4854_v52 = vadd.f32 %v4853_v55, %v4839_v44  ;;  %v5305_v5 = vrot.slane %v5244_v6, %v6445_v13 }
 0x3a7   : > { %v4951_v37 = vmul.f32 %v6315_v57, %v9776_v17  ;;  %v5162_v29 = vadd.f32 %v9777_v45, %v4949_v20  ;;  %v5372_v11 = vadd.f32 %v5371_v43, %v5357_v35  ;;  %v4720_v26 = vcombine.high %v4718_v61, %v4718_v61  ;;  %v9778_v43 = vld [vmem:[#allocation81_spill] sm:$0xff]  ;;  %v9779_v20 = vld [vmem:[#allocation140_spill] sm:$0xff] }
 0x3a8   : > { %v8997_v33 = vrot.slane %v4718_v61, %v6699_v48  ;;  %v4749_v40 = vcombine.high %v4727_v56, %v4727_v56  ;;  %v4751_v12 = vcombine.high %v4741_v36, %v4741_v36  ;;  %v5267_v23 = vcombine.high %v8987_v49, %v8987_v49 }
 0x3a9   : > { %v5309_v62 = vrot.slane %v5258_v54, %v6445_v13  ;;  %v5358_v53 = vmul.f32 %v5305_v5, %v5162_v29  ;;  %v4788_v44 = vrot.slane %v4727_v56, %v6445_v13  ;;  %v5269_v55 = vcombine.high %v8991_v15, %v8991_v15 }
 0x3aa   : > { %v5313_v21 = vrot.slane %v5266_v7, %v6445_v13  ;;  %v5317_v6 = vrot.slane %v5268_v51, %v6445_v13  ;;  %v5321_v28 = vrot.slane %v8987_v49, %v6445_v13  ;;  %v6317_v19 = vpop.eup %6316  ;;  %v5164_v3 = vadd.f32 %v9778_v43, %v4951_v37 }
 0x3ab   : > { %v5359_v0 = vmul.f32 %v5309_v62, %v5163_v38  ;;  %v5373_v61 = vadd.f32 %v5372_v11, %v5358_v53  ;;  %v4792_v54 = vrot.slane %v4741_v36, %v6445_v13  ;;  %v4953_v35 = vmul.f32 %v6317_v19, %v9779_v20  ;;  %v9780_v53 = vld [vmem:[#allocation77_spill] sm:$0xff] }
 0x3ac   : > { %v5325_v56 = vrot.slane %v8991_v15, %v6445_v13  ;;  %v4796_v57 = vrot.slane %v4749_v40, %v6445_v13  ;;  %v4800_v7 = vrot.slane %v4751_v12, %v6445_v13  ;;  %v4841_v45 = vmul.f32 %v4788_v44, %v9775_v30  ;;  %v9809_v15 = vld [vmem:[#allocation4_spill] sm:$0xff] }
 0x3ad   : > { %v5374_v51 = vadd.f32 %v5373_v61, %v5359_v0  ;;  %v4855_v29 = vadd.f32 %v4854_v52, %v4840_v16  ;;  %v2371_v37 = vmul.f32 %v8550_v24, %v8575_v14  ;;  %v5361_v38 = vmul.f32 %v5317_v6, %v5165_v27  ;;  %v9028_v52 = vpop.permute.xlu1 %1759  ;;  %v9781_v24 = vld [vmem:[#allocation83_spill] sm:$0xff]  ;;  %v9782_v6 = vld [vmem:[#allocation84_spill] sm:$0xff] }
 0x3ae   : > { %v9020_v5 = vrot.slane %v4720_v26, %v6699_v48  ;;  %v4750_v36 = vcombine.high %v8997_v33, %v8997_v33  ;;  %v4804_v11 = vrot.slane %v8997_v33, %v6445_v13  ;;  %v5360_v40 = vmul.f32 %v5313_v21, %v5164_v3  ;;  %v9783_v0 = vld [vmem:[#allocation64_spill] sm:$0xff] }
 0x3af   : > { %v4842_v12 = vmul.f32 %v4792_v54, %v9765_v58  ;;  %v4856_v62 = vadd.f32 %v4855_v29, %v4841_v45  ;;  %v2584_v30 = vadd.f32 %v9780_v53, %v2371_v37  ;;  %v6319_v16 = vpop.eup %6318  ;;  %v5166_v27 = vadd.f32 %v9781_v24, %v4953_v35  ;;  %v9784_v35 = vld [vmem:[#allocation62_spill] sm:$0xff]  ;;  %v9787_v45 = vld [vmem:[#allocation139_spill] sm:$0xff] }
 0x3b0   : > { %v4808_v48 = vrot.slane %v9020_v5, %v6445_v13  ;;  %v4843_v26 = vmul.f32 %v4796_v57, %v9776_v17  ;;  %v2794_v44 = vadd.f32 %v8857_v42, %v8836_v2  ;;  %v5375_v33 = vadd.f32 %v5374_v51, %v5360_v40  ;;  %v9785_v42 = vld [vmem:[#allocation9_spill] sm:$0xff] }
 0x3b1   : > { %v4844_v21 = vmul.f32 %v4800_v7, %v9767_v32  ;;  %v4857_v58 = vadd.f32 %v4856_v62, %v4842_v12  ;;  %v2888_v19 = vmul.f32 %v9782_v6, %v2584_v30  ;;  %v4845_v43 = vmul.f32 %v4804_v11, %v9779_v20  ;;  %v9786_v20 = vld [vmem:[#allocation126_spill] sm:$0xff]  ;;  %v9789_v11 = vld [vmem:[#allocation7_spill] sm:$0xff]  ;;  %v9790_v62 = vld [vmem:[#allocation8_spill] sm:$0xff] }
 0x3b2   : > { %v2780_v3 = vmul.f32 %v8822_v34, %v2584_v30  ;;  %v1741_v61 = vmul.f32 %v8681_v1, %v9783_v0  ;;  %v1755_v54 = vadd.f32 %v8705_v41, %v8696_v18  ;;  %v3311_v2 = vadd.f32 %v8845_v8, %v8742_v46  ;;  %v9788_v18 = vld [vmem:[#allocation38_spill] sm:$0xff]  ;;  %v9791_v30 = vld [vmem:[#allocation141_spill] sm:$0xff] }
 0x3b3   : > { %v4858_v17 = vadd.f32 %v4857_v58, %v4843_v26  ;;  %v3101_v57 = vadd.f32 %v9784_v35, %v2888_v19  ;;  %v1762_v32 = vmul.f32 %v9028_v52, %v9785_v42  ;;  %v2263_v34 = vmul.f32 %v9786_v20, %v8575_v14  ;;  %v9794_v0 = vld [vmem:[#allocation138_spill] sm:$0xff]  ;;  %v9798_v42 = vld [vmem:[#allocation55_spill] sm:$0xff] }
 0x3b4   : > { %v2795_v7 = vadd.f32 %v2794_v44, %v2780_v3  ;;  %v1756_v51 = vadd.f32 %v1755_v54, %v1741_v61  ;;  %v2277_v1 = vadd.f32 %v8701_v59, %v9787_v45  ;;  %v5376_v29 = vadd.f32 %v5375_v33, %v5361_v38  ;;  %v9792_v44 = vld [vmem:[#allocation29_spill] sm:$0xff] }
 0x3b5   : > { %v4859_v37 = vadd.f32 %v4858_v17, %v4844_v21  ;;  %v3405_v41 = vmul.f32 %v9788_v18, %v3101_v57  ;;  %v2796_v40 = vmul.f32 %v9028_v52, %v9789_v11  ;;  %v3297_v46 = vmul.f32 %v8728_v63, %v3101_v57  ;;  %v9793_v21 = vld [vmem:[#allocation6_spill] sm:$0xff]  ;;  %v9796_v54 = vld [vmem:[#allocation17_spill] sm:$0xff] }
 0x3b6   : > { %v1763_v8 = vadd.f32 %v1762_v32, %v1756_v51  ;;  %v2278_v12 = vadd.f32 %v2277_v1, %v2263_v34  ;;  %v2279_v53 = vmul.f32 %v9028_v52, %v9790_v62  ;;  %v4955_v24 = vmul.f32 %v6319_v16, %v9791_v30  ;;  %v9806_v62 = vld [vmem:[#allocation142_spill] sm:$0xff] }
 0x3b7   : > { %v5362_v14 = vmul.f32 %v5321_v28, %v5166_v27  ;;  %v4860_v26 = vadd.f32 %v4859_v37, %v4845_v43  ;;  %v3618_v59 = vadd.f32 %v9792_v44, %v3405_v41  ;;  %v2797_v38 = vadd.f32 %v2796_v40, %v2795_v7  ;;  %v9795_v27 = vld [vmem:[#allocation15_spill] sm:$0xff]  ;;  %v9800_v7 = vld [vmem:[#allocation16_spill] sm:$0xff]  ;;  %v9802_v37 = vld [vmem:[#allocation57_spill] sm:$0xff] }
 0x3b8   : > { %v3312_v33 = vadd.f32 %v3311_v2, %v3297_v46  ;;  %v3313_v58 = vmul.f32 %v9028_v52, %v9793_v21  ;;  %v2280_v6 = vadd.f32 %v2279_v53, %v2278_v12  ;;  %v4752_v63 = vcombine.high %v9020_v5, %v9020_v5  ;;  %v9797_v2 = vld [vmem:[#allocation132_spill] sm:$0xff]  ;;  %v9803_v41 = vld [vmem:[#allocation58_spill] sm:$0xff] }
 0x3b9   : > { %v4812_v19 = vrot.slane %v4750_v36, %v6445_v13  ;;  %v4846_v3 = vmul.f32 %v4808_v48, %v9769_v9  ;;  %v3922_v61 = vmul.f32 %v9794_v0, %v3618_v59  ;;  %v5377_v16 = vadd.f32 %v5376_v29, %v5362_v14  ;;  %v9799_v48 = vld [vmem:[#allocation14_spill] sm:$0xff] }
 0x3ba   : > { %v3314_v28 = vadd.f32 %v3313_v58, %v3312_v33  ;;  %v1771_v43 = vmul.f32 %v9795_v27, %v1763_v8  ;;  %v2288_v17 = vmul.f32 %v9796_v54, %v2280_v6  ;;  %v5329_v35 = vrot.slane %v5267_v23, %v6445_v13  ;;  %v9801_v23 = vld [vmem:[#allocation45_spill] sm:$0xff]  ;;  %v9805_v46 = vld [vmem:[#allocation86_spill] sm:$0xff]  ;;  %v9816_v54 = vld [vmem:[#allocation23_spill] sm:$0xff] }
 0x3bb   : > { %v5363_v57 = vmul.f32 %v5325_v56, %v8980_v22  ;;  %v4861_v5 = vadd.f32 %v4860_v26, %v4846_v3  ;;  %v4135_v36 = vadd.f32 %v9797_v2, %v3922_v61  ;;  %v5168_v9 = vadd.f32 %v9798_v42, %v4955_v24  ;;  %v9808_v58 = vld [vmem:[#allocation2_spill] sm:$0xff]  ;;  %v9818_v2 = vld [vmem:[#allocation19_spill] sm:$0xff] }
 0x3bc   : > { %v2805_v32 = vmul.f32 %v9799_v48, %v2797_v38  ;;  %v3322_v51 = vmul.f32 %v9800_v7, %v3314_v28  ;;  %v5395_v20 = vpack.c.bf16 %v2288_v17, %v1771_v43  ;;  %v3827_v34 = vadd.f32 %v8917_v50, %v8906_v60  ;;  %v9804_v50 = vld [vmem:[#allocation37_spill] sm:$0xff]  ;;  %v9811_v0 = vld [vmem:[#allocation10_spill] sm:$0xff]  ;;  %v9814_v28 = vld [vmem:[#allocation20_spill] sm:$0xff] }
 0x3bd   : > { %v4816_v45 = vrot.slane %v4752_v63, %v6445_v13  ;;  %v4847_v49 = vmul.f32 %v4812_v19, %v9791_v30  ;;  %v4439_v1 = vmul.f32 %v9801_v23, %v4135_v36  ;;  %v3782_v22 = vrot.slane %v3718_v25, %v6445_v13  ;;  %v9810_v19 = vld [vmem:[#allocation5_spill] sm:$0xff] }
 0x3be   : > { %v5378_v56 = vadd.f32 %v5377_v16, %v5363_v57  ;;  %v5396_v29 = vpack.c.bf16 %v3322_v51, %v2805_v32  ;;  %v3813_v18 = vmul.f32 %v8898_v39, %v9802_v37  ;;  %v4345_v60 = vadd.f32 %v8902_v31, %v8883_v4  ;;  %v9807_v31 = vld [vmem:[#allocation3_spill] sm:$0xff]  ;;  %v9813_v16 = vld [vmem:[#allocation12_spill] sm:$0xff]  ;;  %v9815_v43 = vld [vmem:[#allocation13_spill] sm:$0xff] }
 0x3bf   : > { %v4652_v11 = vadd.f32 %v9803_v41, %v4439_v1  ;;  %v4862_v40 = vadd.f32 %v4861_v5, %v4847_v49  ;;  %v5153_v8 = vmul.f32 %v9805_v46, %v9804_v50  ;;  %v5333_v47 = vrot.slane %v5269_v55, %v6445_v13  ;;  %v9817_v5 = vld [vmem:[#allocation11_spill] sm:$0xff] }
 0x3c0   : > { %v5364_v25 = vmul.f32 %v5329_v35, %v5168_v9  ;;  %v3828_v30 = vadd.f32 %v3827_v34, %v3813_v18  ;;  %v4331_v39 = vmul.f32 %v8875_v10, %v4135_v36  ;;  %v3814_v44 = vmul.f32 %v3782_v22, %v3618_v59  ;;  %v9812_v59 = vld [vmem:[#allocation18_spill] sm:$0xff]  ;;  %v5967_v51 = vld [vmem:[%s9152_s8 + $0x8] sm:$0xff]  }
 0x3c1   : > { %v4848_v12 = vmul.f32 %v4816_v45, %v4652_v11  ;;  %v4956_v53 = vmul.f32 %v9806_v62, %v4652_v11  ;;  %v4864_v38 = vmul.f32 %v9028_v52, %v9807_v31  ;;  %v4347_v13 = vmul.f32 %v9028_v52, %v9808_v58 }
 0x3c2   : > { %v5379_v24 = vadd.f32 %v5378_v56, %v5364_v25  ;;  %v4346_v4 = vadd.f32 %v4345_v60, %v4331_v39  ;;  %v3829_v21 = vadd.f32 %v3828_v30, %v3814_v44  ;;  %v5381_v55 = vmul.f32 %v9028_v52, %v9809_v15 }
 0x3c3   : > { %v4863_v14 = vadd.f32 %v4862_v40, %v4848_v12  ;;  %v5169_v26 = vadd.f32 %v5153_v8, %v4956_v53  ;;  %v3830_v10 = vmul.f32 %v9028_v52, %v9810_v19  ;;  %v4872_v61 = vmul.f32 %v9812_v59, %v9811_v0 }
 0x3c4   : > { %v4348_v3 = vadd.f32 %v4347_v13, %v4346_v4  ;;  %v5389_v27 = vmul.f32 %v9814_v28, %v9813_v16  ;;  %v4355_v17 = vmul.f32 %v9816_v54, %v9815_v43  ;;  %v3838_v36 = vmul.f32 %v9818_v2, %v9817_v5 }
 0x3c5   : > { %v5365_v33 = vmul.f32 %v5333_v47, %v5169_v26  ;;  %v4865_v6 = vadd.f32 %v4864_v38, %v4863_v14  ;;  %v3831_v57 = vadd.f32 %v3830_v10, %v3829_v21  ;;  %v9819_v34 = vlaneseq }
 0x3c6   : > { %v4356_v48 = vmul.f32 %v4355_v17, %v4348_v3  ;;  %v6349_v49 = vmov 0.0  }
 0x3c7   : > { %v5380_v63 = vadd.f32 %v5379_v24, %v5365_v33  ;;  %v4873_v42 = vmul.f32 %v4872_v61, %v4865_v6  ;;  %v3839_v52 = vmul.f32 %v3838_v36, %v3831_v57  ;;  %v5466_v45 = vand.u32 127, %v9819_v34 }
 0x3c9   : > { %v5382_v35 = vadd.f32 %v5381_v55, %v5380_v63  ;;  %v5397_v7 = vpack.c.bf16 %v4356_v48, %v3839_v52  ;;  %vm5469_vm3 = vcmp.lt.s32.totalorder %v5466_v45, 64 }
 0x3ca   : > { %v5749_v23 = vsel %vm5469_vm3, 1.0, %v6349_v49 }
 0x3cb   : > { %v5390_v9 = vmul.f32 %v5389_v27, %v5382_v35 }
 0x3cd   : > { %v5398_v32 = vpack.c.bf16 %v5390_v9, %v4873_v42 }
 0x3cf   : > { %5882 = vmatprep.subr.bf16.mxu0 %v5398_v32 }
 0x3d0   : > { %5883 = vmatpush3.bf16.msra.mxu0 %v5398_v32 }
 0x3d1   : > { %5884 = vmatprep.subr.bf16.mxu0 %v5397_v7 }
 0x3d4   : > { %5885 = vmatpush3.bf16.msra.mxu0 %v5397_v7 }
 0x3d5   : > { %5886 = vmatprep.subr.bf16.mxu0 %v5396_v29 }
 0x3d8   : > { %5887 = vmatpush3.bf16.msra.mxu0 %v5396_v29 }
 0x3d9   : > { %5888 = vmatprep.subr.bf16.mxu0 %v5395_v20 }
 0x3dc   : > { %5889 = vmatpush3.bf16.msra.mxu0 %v5395_v20 }
 0x3df   : > { %5891 = vmatmul.mubr.msk.bf16.vlgmr.msra.gmra.mxu0 %vm875_vm1, %v5967_v51  ;;  %vm5496_vm1 = vcmask 7168  }
 0x49f   : > { %v5892_v1 = vpop.f32.mrf.mxu0 }
 0x4a0   : > { %v5474_v22 = vmul.f32 %v5892_v1, %v5749_v23 }
 0x4a1   : > { %v5449_v56 = vpop.f32.mrf.mxu0 }
 0x4a2   : > { %5480 = vadd.xlane.f32.xlu0 %v5474_v22  ;;  %v5472_v37 = vmul.f32 %v5749_v23, %v5449_v56  ;;  %v5486_v46 = vmul.f32 %v5892_v1, %v5474_v22 }
 0x4a3   : > { %v5893_v29 = vpop.f32.mrf.mxu0 }
 0x4a4   : > { %v5771_v18 = vpack.c.bf16 %v5893_v29, %v5892_v1  ;;  %v5484_v20 = vmul.f32 %v5472_v37, %v5449_v56  ;;  %v5475_v40 = vmul.f32 %v5893_v29, %v5749_v23 }
 0x4a5   : > { %v5452_v41 = vpop.f32.mrf.mxu0 }
 0x4a6   : > { %5476 = vadd.xlane.f32.xlu0 %v5472_v37  ;;  %v5766_v11 = vpack.c.bf16 %v5452_v41, %v5449_v56  ;;  %5773 = vst [vmem:[%s404_s21 + $0x8] sm:$0xff] %v5771_v18   ;;  %5488 = vadd.xlane.f32.xlu1 %v5484_v20  ;;  %v5473_v60 = vmul.f32 %v5749_v23, %v5452_v41 }
 0x4a7   : > { %v5487_v8 = vmul.f32 %v5893_v29, %v5475_v40 }
 0x4a8   : > { %5767 = vst [vmem:[%s404_s21] sm:$0xff] %v5766_v11   ;;  %v5485_v50 = vmul.f32 %v5473_v60, %v5452_v41 }
 0x4aa   : > { %5482 = vadd.xlane.f32.xlu0 %v5475_v40  ;;  %5478 = vadd.xlane.f32.xlu1 %v5473_v60 }
 0x4ae   : > { %5490 = vadd.xlane.f32.xlu0 %v5485_v50  ;;  %5492 = vadd.xlane.f32.xlu1 %v5486_v46 }
 0x4b2   : > { %5494 = vadd.xlane.f32.xlu0 %v5487_v8 }
 0x52b   : > { %v5481_v47 = vpop.xlane.xlu0 %5480 }
 0x52f   : > { %v5477_v25 = vpop.xlane.xlu0 %5476  ;;  %v5489_v12 = vpop.xlane.xlu1 %5488 }
 0x530   : > { %v5497_v62 = vsel %vm5496_vm1, %v5477_v25, %v5489_v12 }
 0x531   : > { %5502 = vst.msk [vmem:[%s413_s24] sm:$0xff] %vm5501_vm4, %v5497_v62 }
 0x533   : > { %v5483_v53 = vpop.xlane.xlu0 %5482  ;;  %v5479_v30 = vpop.xlane.xlu1 %5478 }
 0x537   : > { %v5491_v39 = vpop.xlane.xlu0 %5490  ;;  %v5493_v24 = vpop.xlane.xlu1 %5492 }
 0x538   : > { %v5498_v14 = vsel %vm5496_vm1, %v5479_v30, %v5491_v39  ;;  %v5499_v26 = vsel %vm5496_vm1, %v5481_v47, %v5493_v24 }
 0x539   : > { %5503 = vst.msk [vmem:[%s413_s24 + $0x8] sm:$0xff] %vm5501_vm4, %v5498_v14  ;;  %5504 = vst.msk [vmem:[%s413_s24 + $0x10] sm:$0xff] %vm5501_vm4, %v5499_v26 }
 0x53b   : > { %v5495_v44 = vpop.xlane.xlu0 %5494 }
 0x53c   : > { %v5500_v4 = vsel %vm5496_vm1, %v5483_v53, %v5495_v44 }
 0x53d   : > { %5505 = vst.msk [vmem:[%s413_s24 + $0x18] sm:$0xff] %vm5501_vm4, %v5500_v4 }
 0x53e PF: > { %s21_s15 = sadd.s32 1, %s6342_s15   ;;  %s9820_s13 = smov %s6338_s14 }
 0x53f   : > { %p18_p5 = scmp.ge.s32.totalorder %s21_s15, 4   ;;  %s9821_s14 = smov %s9823_s16 }
 0x541   :  { %20 = sbr.rel (!%p18_p5) target bundleno = 2 (0x2), region = 98 }

</bundles_post_ra>
